<compile_context>
chip_gen: v5e
topology: v5e:2x2
jax: 0.10.0
libtpu: 0.0.40
codegen_flags: <defaults>
</compile_context>

<pallas_src>
import functools
import math
import types

import jax
import jax.numpy as jnp
from jax.experimental import pallas as pl
from jax.experimental.pallas import tpu as pltpu

F32 = jnp.float32
BF16 = jnp.bfloat16


# ----------------------------------------------------------------------------
# Small helpers
# ----------------------------------------------------------------------------
def _ln(x, g, b, eps):
    mu = jnp.mean(x, axis=-1, keepdims=True)
    xc = x - mu
    var = jnp.mean(xc * xc, axis=-1, keepdims=True)
    return xc * jax.lax.rsqrt(var + eps) * g + b


def _mm(x, w):
    """bf16 MXU inputs with f32 accumulation."""
    return jnp.dot(x.astype(BF16), w.astype(BF16), preferred_element_type=F32)


def _row_tile(m, target=512):
    """Largest multiple-of-8 row tile <= target that divides m (m itself if small).

    target=512 keeps double-buffered tiles near the HBM roofline while staying
    far below the 32 MiB scoped-VMEM budget for the widths used here.
    """
    if m <= target:
        return m
    t = target
    while t >= 8:
        if m % t == 0:
            return t
        t -= 8
    return m  # TODO(synk): pad rows to a multiple of 8 for awkward production M


def _cparams():
    # Explicit VMEM budget (review item); "parallel" is a no-op at grid=1 but
    # correct for the tiled row kernels.
    return pltpu.CompilerParams(
        dimension_semantics=("parallel",),
        vmem_limit_bytes=32 * 1024 * 1024,
    )


def _const_spec(shape):
    """Full-array block, block index always 0 (resident weights)."""
    zero = (0,) * len(shape)
    return pl.BlockSpec(shape, lambda i, _z=zero: _z)


def _causal_mask(m, seq_len):
    """Block-diagonal causal mask generated in-kernel (no mask DMA)."""
    r = jax.lax.broadcasted_iota(jnp.int32, (m, m), 0)
    c = jax.lax.broadcasted_iota(jnp.int32, (m, m), 1)
    if (seq_len & (seq_len - 1)) == 0:   # power-of-two: shifts always lower
        sh = seq_len.bit_length() - 1
        same = (r >> sh) == (c >> sh)
    else:
        same = (r // seq_len) == (c // seq_len)
    keep = jnp.logical_and(same, c <= r)
    # -1e9 instead of -inf: numerically identical after softmax, NaN-robust.
    return jnp.where(keep, 0.0, -1e9).astype(F32)


# ----------------------------------------------------------------------------
# In-kernel transformer building blocks (operate on loaded values)
# ----------------------------------------------------------------------------
def _mha(qn, kn, vn, wh, wo, bq, bk, bv, mask, bias_list, nh, dh):
    """Multi-head attention with per-head weight column blocks.

    wh: (nh, 3, H, dh) bf16 (q/k/v per-head column blocks), wo: (H, H) bf16.
    Returns (attention output already projected by Wo, per-head probs).
    """
    scale = 1.0 / math.sqrt(dh)
    head_outs = []
    probs = []
    for h in range(nh):
        cs = slice(h * dh, (h + 1) * dh)
        qh = _mm(qn, wh[h, 0]) + bq[:, cs]
        kh = _mm(kn, wh[h, 1]) + bk[:, cs]
        vh = _mm(vn, wh[h, 2]) + bv[:, cs]
        s = jax.lax.dot_general(
            qh.astype(BF16), kh.astype(BF16),
            (((1,), (1,)), ((), ())),
            preferred_element_type=F32) * scale
        s = s + mask
        if bias_list is not None:
            s = s + bias_list[h]
        s = s - jnp.max(s, axis=-1, keepdims=True)
        e = jnp.exp(s)
        p = e * pl.reciprocal(jnp.sum(e, axis=-1, keepdims=True), approx=True)
        probs.append(p)
        head_outs.append(jnp.dot(p.astype(BF16), vh.astype(BF16),
                                 preferred_element_type=F32))
    o_cat = jnp.concatenate(head_outs, axis=-1) if nh > 1 else head_outs[0]
    return _mm(o_cat, wo), probs     # Wo hoisted out of the head loop


def _shared_block(x, keep, mask, bias_list, vecs, wh, wm, nh, dh, eps, last_ln):
    """One Shared_Transformer block.  vecs rows:
    0 attn_ln_g, 1 attn_ln_b, 2 bq, 3 bk, 4 bv, 5 bo, 6 fwd_g, 7 fwd_b,
    8 b1, 9 b2, 10 last_g, 11 last_b.  wm: [Wo, W1, W2]."""
    q_in = _ln(x, vecs[0:1], vecs[1:2], eps)
    attn, _ = _mha(q_in, x, x, wh, wm[0], vecs[2:3], vecs[3:4], vecs[4:5],
                   mask, bias_list, nh, dh)
    h1 = attn + vecs[5:6] + q_in                         # residual adds Q
    h1 = _ln(h1, vecs[6:7], vecs[7:8], eps)
    f = jnp.maximum(_mm(h1, wm[1]) + vecs[8:9], 0.0)
    y = _mm(f, wm[2]) + vecs[9:10] + h1                  # PWFF residual
    y = y * keep                                          # timeline mask
    if last_ln:
        y = _ln(y, vecs[10:11], vecs[11:12], eps)
    return y


def _text_block(q, k, v, s_keep, mask, vecs, wh, wm, nh, dh, eps, last_ln):
    """One Text_aware_Transformer block.  vecs rows:
    0 q_ln_g, 1 q_ln_b, 2 k_ln_g, 3 k_ln_b, 4 v_ln_g, 5 v_ln_b,
    6 bq, 7 bk, 8 bv, 9 bo, 10 fwd_g, 11 fwd_b, 12 b1, 13 b2,
    14 last_g, 15 last_b."""
    qn = _ln(q, vecs[0:1], vecs[1:2], eps)
    kn = _ln(k, vecs[2:3], vecs[3:4], eps)
    vn = _ln(v, vecs[4:5], vecs[5:6], eps)
    attn, probs = _mha(qn, kn, vn, wh, wm[0], vecs[6:7], vecs[7:8], vecs[8:9],
                       mask, None, nh, dh)
    h1 = attn + vecs[9:10] + kn                          # residual adds K (reference)
    h1 = _ln(h1, vecs[10:11], vecs[11:12], eps)
    f = jnp.maximum(_mm(h1, wm[1]) + vecs[12:13], 0.0)
    y = _mm(f, wm[2]) + vecs[13:14] + h1
    y = y * s_keep                                        # source timeline mask
    if last_ln:
        y = _ln(y, vecs[14:15], vecs[15:16], eps)
    return y, probs


# ----------------------------------------------------------------------------
# Kernel 1: fused embedding prep (both Linear+LN, both LN, pos add, masks)
# ----------------------------------------------------------------------------
def _prep_kernel(titem_ref, sitem_ref, traw_ref, sraw_ref, pos_ref,
                 tk_ref, sk_ref, wfeat_ref, vecs_ref, o_ref, *, eps):
    v = vecs_ref[...]
    wf = wfeat_ref[...]
    pos = pos_ref[...].astype(F32)
    tk = tk_ref[...]
    sk = sk_ref[...]
    ttext = (_ln(_mm(traw_ref[...], wf[0]) + v[0:1], v[1:2], v[2:3], eps) + pos) * tk
    stext = (_ln(_mm(sraw_ref[...], wf[1]) + v[3:4], v[4:5], v[5:6], eps) + pos) * sk
    tseq = (_ln(titem_ref[...].astype(F32), v[6:7], v[7:8], eps) + pos) * tk
    sseq = (_ln(sitem_ref[...].astype(F32), v[8:9], v[9:10], eps) + pos) * sk
    # Lane-dense packed output: (tm, 4H) = (tm, 128) for H=32.
    o_ref[...] = jnp.concatenate([tseq, ttext, stext, sseq], axis=-1)


def prep_call(t_item, s_item, t_raw, s_raw, pos_t, t_keep, s_keep, pp, eps):
    m, h = t_item.shape
    e = t_raw.shape[1]
    tm = _row_tile(m)
    weights = [pp["prep_wfeat"], pp["prep_vecs"]]
    return pl.pallas_call(
        functools.partial(_prep_kernel, eps=float(eps)),
        out_shape=jax.ShapeDtypeStruct((m, 4 * h), F32),
        grid=(m // tm,),
        in_specs=[
            pl.BlockSpec((tm, h), lambda i: (i, 0)),
            pl.BlockSpec((tm, h), lambda i: (i, 0)),
            pl.BlockSpec((tm, e), lambda i: (i, 0)),
            pl.BlockSpec((tm, e), lambda i: (i, 0)),
            pl.BlockSpec((tm, h), lambda i: (i, 0)),
            pl.BlockSpec((tm, 1), lambda i: (i, 0)),
            pl.BlockSpec((tm, 1), lambda i: (i, 0)),
        ] + [_const_spec(w.shape) for w in weights],
        out_specs=pl.BlockSpec((tm, 4 * h), lambda i: (i, 0)),
        compiler_params=_cparams(),
    )(t_item, s_item, t_raw, s_raw, pos_t, t_keep, s_keep, *weights)


# ----------------------------------------------------------------------------
# Kernel 2: fused block-0 (text block + both shared-block applications);
# attention probabilities stay in VMEM (no HBM round trip).
# ----------------------------------------------------------------------------
def _block0_kernel(tseq_ref, ttext_ref, stext_ref, sseq_ref, tk_ref, sk_ref,
                   sv_ref, swh_ref, swm_ref, tv_ref, twh_ref, twm_ref,
                   o1_ref, o2_ref, o3_ref,
                   *, nh, dh, seq_len, eps, last_shared, last_text):
    tseq = tseq_ref[...]
    ttext = ttext_ref[...]
    stext = stext_ref[...]
    sseq = sseq_ref[...]
    tk = tk_ref[...]
    sk = sk_ref[...]
    sv = sv_ref[...]
    swh = swh_ref[...]
    swm = swm_ref[...]
    tv = tv_ref[...]
    twh = twh_ref[...]
    twm = twm_ref[...]
    mask = _causal_mask(tseq.shape[0], seq_len)
    # Text-aware block 0 (produces the attention maps used as bias below).
    cross, probs = _text_block(ttext, stext, sseq, sk, mask, tv, twh, twm,
                               nh, dh, eps, last_text)
    o2_ref[...] = cross
    # Shared block 0 on targetSeqs (no bias).
    o1_ref[...] = _shared_block(tseq, tk, mask, None, sv, swh, swm,
                                nh, dh, eps, last_shared)
    # Shared block 0 on target_text_feat with the attribute attention map bias.
    o3_ref[...] = _shared_block(ttext, tk, mask, probs, sv, swh, swm,
                                nh, dh, eps, last_shared)


def block0_call(sh, tx, tseq, ttext, stext, sseq, t_keep, s_keep,
                *, nh, dh, seq_len, eps, last_shared, last_text):
    m, h = tseq.shape
    data = [tseq, ttext, stext, sseq, t_keep, s_keep]
    dspecs = ([pl.BlockSpec((m, h), lambda i: (0, 0))] * 4
              + [pl.BlockSpec((m, 1), lambda i: (0, 0))] * 2)
    weights = [sh["vecs"], sh["wh"], sh["wm"], tx["vecs"], tx["wh"], tx["wm"]]
    return pl.pallas_call(
        functools.partial(_block0_kernel, nh=nh, dh=dh, seq_len=seq_len,
                          eps=float(eps), last_shared=last_shared,
                          last_text=last_text),
        out_shape=tuple(jax.ShapeDtypeStruct((m, h), F32) for _ in range(3)),
        grid=(1,),
        in_specs=dspecs + [_const_spec(w.shape) for w in weights],
        out_specs=tuple(pl.BlockSpec((m, h), lambda i: (0, 0)) for _ in range(3)),
        compiler_params=_cparams(),
    )(*data, *weights)


# ----------------------------------------------------------------------------
# Standalone block kernels (only used when num_blocks > 1)
# ----------------------------------------------------------------------------
def _shared_block_kernel(x_ref, keep_ref, vecs_ref, wh_ref, wm_ref, o_ref,
                         *, nh, dh, seq_len, eps, last):
    x = x_ref[...]
    mask = _causal_mask(x.shape[0], seq_len)
    o_ref[...] = _shared_block(x, keep_ref[...], mask, None, vecs_ref[...],
                               wh_ref[...], wm_ref[...], nh, dh, eps, last)


def shared_block_call(blk, x, keep, *, nh, dh, seq_len, eps, last):
    r, h = x.shape
    weights = [blk["vecs"], blk["wh"], blk["wm"]]
    return pl.pallas_call(
        functools.partial(_shared_block_kernel, nh=nh, dh=dh, seq_len=seq_len,
                          eps=float(eps), last=last),
        out_shape=jax.ShapeDtypeStruct((r, h), F32),
        grid=(1,),
        in_specs=[pl.BlockSpec((r, h), lambda i: (0, 0)),
                  pl.BlockSpec((r, 1), lambda i: (0, 0))]
                 + [_const_spec(w.shape) for w in weights],
        out_specs=pl.BlockSpec((r, h), lambda i: (0, 0)),
        compiler_params=_cparams(),
    )(x, keep, *weights)


def _text_block_kernel(q_ref, k_ref, v_ref, sk_ref, vecs_ref, wh_ref, wm_ref,
                       o_ref, *, nh, dh, seq_len, eps, last):
    q = q_ref[...]
    mask = _causal_mask(q.shape[0], seq_len)
    y, _ = _text_block(q, k_ref[...], v_ref[...], sk_ref[...], mask,
                       vecs_ref[...], wh_ref[...], wm_ref[...],
                       nh, dh, eps, last)
    o_ref[...] = y


def text_block_call(blk, q, k, v, s_keep, *, nh, dh, seq_len, eps, last):
    m, h = q.shape
    weights = [blk["vecs"], blk["wh"], blk["wm"]]
    return pl.pallas_call(
        functools.partial(_text_block_kernel, nh=nh, dh=dh, seq_len=seq_len,
                          eps=float(eps), last=last),
        out_shape=jax.ShapeDtypeStruct((m, h), F32),
        grid=(1,),
        in_specs=[pl.BlockSpec((m, h), lambda i: (0, 0))] * 3
                 + [pl.BlockSpec((m, 1), lambda i: (0, 0))]
                 + [_const_spec(w.shape) for w in weights],
        out_specs=pl.BlockSpec((m, h), lambda i: (0, 0)),
        compiler_params=_cparams(),
    )(q, k, v, s_keep, *weights)


# ----------------------------------------------------------------------------
# Kernel 3: candidate item embedding (pos & neg rows in one call)
# ----------------------------------------------------------------------------
def _feat_align_kernel(item_ref, raw_ref, wfeat_ref, wsf_ref, vecs_ref, o_ref,
                       *, eps):
    v = vecs_ref[...]
    wsf = wsf_ref[...]
    f = _ln(_mm(raw_ref[...], wfeat_ref[...][0]) + v[0:1], v[1:2], v[2:3], eps)
    o_ref[...] = _mm(item_ref[...], wsf[0]) + _mm(f, wsf[1]) + v[3:4]


def feat_align_call(item, raw, pp, eps):
    r, h = item.shape
    e = raw.shape[1]
    tm = _row_tile(r)
    weights = [pp["prep_wfeat"], pp["w_sf"], pp["align_vecs"]]
    return pl.pallas_call(
        functools.partial(_feat_align_kernel, eps=float(eps)),
        out_shape=jax.ShapeDtypeStruct((r, h), F32),
        grid=(r // tm,),
        in_specs=[pl.BlockSpec((tm, h), lambda i: (i, 0)),
                  pl.BlockSpec((tm, e), lambda i: (i, 0))]
                 + [_const_spec(w.shape) for w in weights],
        out_specs=pl.BlockSpec((tm, h), lambda i: (i, 0)),
        compiler_params=_cparams(),
    )(item, raw, *weights)


# ----------------------------------------------------------------------------
# Kernel 4: fused head (project + seq_feat_align + last linear + last LN +
# pos/neg logits + SSL dots).  Single packed (M, 4) output.
# ----------------------------------------------------------------------------
def _head_kernel(tseq_ref, ttext_ref, cross_ref, corr_ref, cand_ref,
                 wp_ref, wsf_ref, wl_ref, vecs_ref, o_ref, *, eps):
    v = vecs_ref[...]
    wp = wp_ref[...]
    wsf = wsf_ref[...]
    wl = wl_ref[...]
    cross = _mm(cross_ref[...], wp) + v[0:1]          # project_linear(cross_res)
    corr = _mm(corr_ref[...], wp) + v[0:1]            # project(shuffled) == shuffle(project)
    seq = _mm(tseq_ref[...], wsf[0]) + _mm(ttext_ref[...], wsf[1]) + v[1:2]
    s = _mm(seq, wl[0]) + _mm(cross, wl[1]) + v[2:3]
    logits = _ln(s, v[3:4], v[4:5], eps)
    cand = cand_ref[...]
    o_ref[...] = jnp.concatenate(
        [jnp.sum(logits * cand[0], axis=-1, keepdims=True),
         jnp.sum(logits * cand[1], axis=-1, keepdims=True),
         jnp.sum(seq * cross, axis=-1, keepdims=True),
         jnp.sum(seq * corr, axis=-1, keepdims=True)], axis=-1)


def head_call(tseq, ttext, cross, corr, cand, pp, eps):
    m, h = tseq.shape
    tm = _row_tile(m)
    weights = [pp["w_p"], pp["w_sf"], pp["w_l"], pp["head_vecs"]]
    return pl.pallas_call(
        functools.partial(_head_kernel, eps=float(eps)),
        out_shape=jax.ShapeDtypeStruct((m, 4), F32),
        grid=(m // tm,),
        in_specs=[pl.BlockSpec((tm, h), lambda i: (i, 0))] * 4
                 + [pl.BlockSpec((2, tm, h), lambda i: (0, i, 0))]
                 + [_const_spec(w.shape) for w in weights],
        out_specs=pl.BlockSpec((tm, 4), lambda i: (i, 0)),
        compiler_params=_cparams(),
    )(tseq, ttext, cross, corr, cand, *weights)


# ----------------------------------------------------------------------------
# Transformer stack glue
# ----------------------------------------------------------------------------
def apply_transformers(pp, tseq, ttext, stext, sseq, t_keep, s_keep, cfg, seq_len):
    nh = cfg.num_heads
    dh = cfg.hidden_units // nh
    eps = cfg.eps
    nb = cfg.num_blocks
    m = tseq.shape[0]
    last0 = (nb == 1)
    pass1, cross, pass3 = block0_call(
        pp["shared_blocks"][0], pp["text_blocks"][0],
        tseq, ttext, stext, sseq, t_keep, s_keep,
        nh=nh, dh=dh, seq_len=seq_len, eps=eps,
        last_shared=last0, last_text=last0)
    for i in range(1, nb):
        last = (i == nb - 1)
        # Blocks >0 of both shared-transformer applications share weights and
        # have no bias -> run them stacked (2M rows) in one call.
        stacked = jnp.concatenate([pass1, pass3], axis=0)
        keep2 = jnp.concatenate([t_keep, t_keep], axis=0)
        y = shared_block_call(pp["shared_blocks"][i], stacked, keep2,
                              nh=nh, dh=dh, seq_len=seq_len, eps=eps, last=last)
        pass1, pass3 = y[:m], y[m:]
        cross = text_block_call(pp["text_blocks"][i], cross, stext, sseq, s_keep,
                                nh=nh, dh=dh, seq_len=seq_len, eps=eps, last=last)
    return pass1, cross, pass3


# ----------------------------------------------------------------------------
# Forward pass
# ----------------------------------------------------------------------------
def model_forward(pp, targetSeq, sourceSeq, pos, neg, cfg, ssl_key):
    B, L = targetSeq.shape
    M = B * L
    H = cfg.hidden_units
    eps = cfg.eps

    t_keep = (targetSeq != 0).astype(F32).reshape(M, 1)
    s_keep = (sourceSeq != 0).astype(F32).reshape(M, 1)

    tflat = targetSeq.reshape(M)
    sflat = sourceSeq.reshape(M)
    t_item = pp["item_emb"][tflat].astype(BF16)
    s_item = pp["item_emb"][sflat].astype(BF16)
    t_raw = (pp["review_emb"][tflat] + pp["meta_emb"][tflat]).astype(BF16)
    s_raw = (pp["review_emb"][sflat] + pp["meta_emb"][sflat]).astype(BF16)
    pos_t = jnp.tile(pp["pos_emb"][:L], (B, 1)).astype(BF16)

    prep = prep_call(t_item, s_item, t_raw, s_raw, pos_t, t_keep, s_keep, pp, eps)
    tseq = prep[:, 0:H]
    ttext = prep[:, H:2 * H]
    stext = prep[:, 2 * H:3 * H]
    sseq = prep[:, 3 * H:4 * H]

    pass1, cross, pass3 = apply_transformers(
        pp, tseq, ttext, stext, sseq, t_keep, s_keep, cfg, L)

    # Candidate (pos & neg) embeddings in a single fused call.
    cand_idx = jnp.concatenate([pos.reshape(M), neg.reshape(M)])
    cand_item = pp["item_emb"][cand_idx].astype(BF16)
    cand_raw = (pp["review_emb"][cand_idx] + pp["meta_emb"][cand_idx]).astype(BF16)
    cand = feat_align_call(cand_item, cand_raw, pp, eps).reshape(2, M, H)

    # SSL row/column shuffle.  project_linear is position-wise, so shuffling
    # before the (kernel-fused) projection equals shuffling after it.
    k1, k2 = jax.random.split(ssl_key)
    cross_b = cross.reshape(B, L, H)
    corr = cross_b[jax.random.permutation(k1, B)][:, jax.random.permutation(k2, L)]
    corr = corr.reshape(M, H)

    head = head_call(pass1, pass3, cross, corr, cand, pp, eps)   # (M, 4)
    pos_logits = head[:, 0].reshape(B, L)
    neg_logits = head[:, 1].reshape(B, L)
    ssl_pos = head[:, 2]
    ssl_neg = head[:, 3]
    con_loss = jnp.sum(
        -jnp.log(1e-07 + jax.nn.sigmoid(ssl_pos))
        - jnp.log(1e-07 + (1.0 - jax.nn.sigmoid(ssl_neg))))
    return pos_logits, neg_logits, con_loss / (B * L)


# ----------------------------------------------------------------------------
# Parameter packing (runs once, OUTSIDE jit): stacked vectors, per-head weight
# column blocks, stacked matrices, bf16 casts.
# ----------------------------------------------------------------------------
def prepare_params(p, cfg):
    H = cfg.hidden_units
    nh = cfg.num_heads
    dh = H // nh

    def rows(*vs):
        return jnp.stack([v.reshape(H) for v in vs], axis=0).astype(F32)

    def per_head(w):  # (H, H) -> (nh, H, dh) per-head column blocks
        return jnp.transpose(w.reshape(H, nh, dh), (1, 0, 2))

    def heads(attn):
        return jnp.stack([per_head(attn["q"]["w"]), per_head(attn["k"]["w"]),
                          per_head(attn["v"]["w"])], axis=1).astype(BF16)

    def mats(blk):
        return jnp.stack([blk["attn"]["o"]["w"], blk["pwff"]["w1"]["w"],
                          blk["pwff"]["w2"]["w"]], axis=0).astype(BF16)

    def block_shared(blk, last_ln):
        a = blk["attn"]
        return {
            "vecs": rows(blk["attn_ln"]["g"], blk["attn_ln"]["b"],
                         a["q"]["b"], a["k"]["b"], a["v"]["b"], a["o"]["b"],
                         blk["fwd_ln"]["g"], blk["fwd_ln"]["b"],
                         blk["pwff"]["w1"]["b"], blk["pwff"]["w2"]["b"],
                         last_ln["g"], last_ln["b"]),
            "wh": heads(a), "wm": mats(blk),
        }

    def block_text(blk, last_ln):
        a = blk["attn"]
        return {
            "vecs": rows(blk["q_ln"]["g"], blk["q_ln"]["b"],
                         blk["k_ln"]["g"], blk["k_ln"]["b"],
                         blk["v_ln"]["g"], blk["v_ln"]["b"],
                         a["q"]["b"], a["k"]["b"], a["v"]["b"], a["o"]["b"],
                         blk["fwd_ln"]["g"], blk["fwd_ln"]["b"],
                         blk["pwff"]["w1"]["b"], blk["pwff"]["w2"]["b"],
                         last_ln["g"], last_ln["b"]),
            "wh": heads(a), "wm": mats(blk),
        }

    wsf = p["seqFeat"]["w"]
    wl = p["last"]["w"]
    return {
        "item_emb": p["item_emb"], "review_emb": p["review_emb"],
        "meta_emb": p["meta_emb"], "pos_emb": p["pos_emb"],
        "prep_wfeat": jnp.stack([p["feat_target"]["w"],
                                 p["feat_source"]["w"]], axis=0).astype(BF16),
        "prep_vecs": rows(p["feat_target"]["b"], p["target_text_ln"]["g"],
                          p["target_text_ln"]["b"], p["feat_source"]["b"],
                          p["source_text_ln"]["g"], p["source_text_ln"]["b"],
                          p["target_ln"]["g"], p["target_ln"]["b"],
                          p["source_ln"]["g"], p["source_ln"]["b"]),
        "align_vecs": rows(p["feat_target"]["b"], p["target_text_ln"]["g"],
                           p["target_text_ln"]["b"], p["seqFeat"]["b"]),
        "head_vecs": rows(p["project"]["b"], p["seqFeat"]["b"], p["last"]["b"],
                          p["last_ln"]["g"], p["last_ln"]["b"]),
        "w_sf": jnp.stack([wsf[:H], wsf[H:]], axis=0).astype(BF16),
        "w_l": jnp.stack([wl[:H], wl[H:]], axis=0).astype(BF16),
        "w_p": p["project"]["w"].astype(BF16),
        "shared_blocks": [block_shared(b, p["shared_tr"]["last_ln"])
                          for b in p["shared_tr"]["blocks"]],
        "text_blocks": [block_text(b, p["text_tr"]["last_ln"])
                        for b in p["text_tr"]["blocks"]],
    }


# ----------------------------------------------------------------------------
# Deterministic parameter init
# ----------------------------------------------------------------------------
def init_params(key, itemnum, hidden, emb_size, maxlen, num_blocks):
    keys = iter(jax.random.split(key, 256))

    def nk():
        return next(keys)

    def dense(in_d, out_d):
        return {
            "w": 0.05 * jax.random.normal(nk(), (in_d, out_d), F32),
            "b": 0.02 * jax.random.normal(nk(), (out_d,), F32),
        }

    def ln(d):
        return {
            "g": 1.0 + 0.01 * jax.random.normal(nk(), (d,), F32),
            "b": 0.01 * jax.random.normal(nk(), (d,), F32),
        }

    def mha(d):
        return {"q": dense(d, d), "k": dense(d, d), "v": dense(d, d), "o": dense(d, d)}

    def block(d):
        return {
            "attn_ln": ln(d), "q_ln": ln(d), "k_ln": ln(d), "v_ln": ln(d),
            "attn": mha(d), "fwd_ln": ln(d),
            "pwff": {"w1": dense(d, d), "w2": dense(d, d)},
        }

    def transformer(d):
        return {"blocks": [block(d) for _ in range(num_blocks)], "last_ln": ln(d)}

    return {
        "item_emb": 0.05 * jax.random.normal(nk(), (itemnum + 1, hidden), F32),
        "pos_emb": 0.05 * jax.random.normal(nk(), (maxlen, hidden), F32),
        "source_ln": ln(hidden),
        "target_ln": ln(hidden),
        "feat_target": dense(emb_size, hidden),
        "target_text_ln": ln(hidden),
        "feat_source": dense(emb_size, hidden),
        "source_text_ln": ln(hidden),
        "shared_tr": transformer(hidden),
        "text_tr": transformer(hidden),
        "project": dense(hidden, hidden),
        "seqFeat": dense(2 * hidden, hidden),
        "seqFeat_ln": ln(hidden),  # defined in __init__, unused in forward
        "last": dense(2 * hidden, hidden),
        "last_ln": ln(hidden),
    }


# ----------------------------------------------------------------------------
if __name__ == "__main__":
    cfg = types.SimpleNamespace(
        hidden_units=32, embedding_size=16, maxlen=8,
        num_blocks=1, num_heads=2, eps=1e-8, dropout_rate=0.2,
    )
    B, L = 2, cfg.maxlen
    itemnum = 20

    key = jax.random.PRNGKey(0)
    k_param, k_rev, k_meta, k_seq, k_ssl = jax.random.split(key, 5)

    params = init_params(
        k_param, itemnum, cfg.hidden_units, cfg.embedding_size, cfg.maxlen,
        cfg.num_blocks)
    params["review_emb"] = 0.1 * jax.random.normal(
        k_rev, (itemnum + 1, cfg.embedding_size), F32)
    params["meta_emb"] = 0.1 * jax.random.normal(
        k_meta, (itemnum + 1, cfg.embedding_size), F32)

    # Pack / bf16-cast weights once, outside jit (per performance review).
    pp = prepare_params(params, cfg)

    ks = jax.random.split(k_seq, 4)
    targetSeq = jax.random.randint(ks[0], (B, L), 0, itemnum + 1)  # 0 = padding
    sourceSeq = jax.random.randint(ks[1], (B, L), 0, itemnum + 1)
    pos = jax.random.randint(ks[2], (B, L), 1, itemnum + 1)
    neg = jax.random.randint(ks[3], (B, L), 1, itemnum + 1)

    fwd = jax.jit(functools.partial(model_forward, cfg=cfg))
    pos_logits, neg_logits, con_loss = fwd(
        pp, targetSeq, sourceSeq, pos, neg, ssl_key=k_ssl)
    jax.block_until_ready((pos_logits, neg_logits, con_loss))

    assert pos_logits.shape == (B, L) and neg_logits.shape == (B, L)
    assert bool(jnp.all(jnp.isfinite(pos_logits)))
    assert bool(jnp.all(jnp.isfinite(neg_logits)))
    assert bool(jnp.isfinite(con_loss))
    print("KERNEL_OK")
</pallas_src>

<mosaic_0001>
module attributes {stable_mosaic.version = 11 : i64} {
  func.func @_prep_kernel(%arg0: i32, %arg1: memref<16x32xbf16, #tpu.memory_space<vmem>>, %arg2: memref<16x32xbf16, #tpu.memory_space<vmem>>, %arg3: memref<16x16xbf16, #tpu.memory_space<vmem>>, %arg4: memref<16x16xbf16, #tpu.memory_space<vmem>>, %arg5: memref<16x32xbf16, #tpu.memory_space<vmem>>, %arg6: memref<16x1xf32, #tpu.memory_space<vmem>>, %arg7: memref<16x1xf32, #tpu.memory_space<vmem>>, %arg8: memref<2x16x32xbf16, #tpu.memory_space<vmem>>, %arg9: memref<10x32xf32, #tpu.memory_space<vmem>>, %arg10: memref<16x128xf32, #tpu.memory_space<vmem>>) attributes {dimension_semantics = [#tpu.dimension_semantics<parallel>], iteration_bounds = array<i64: 1>, scalar_prefetch = 0 : i64, scratch_operands = 0 : i64, tpu.core_type = #tpu.core_type<tc>, window_params = [{transform_indices = @transform_0, window_bounds = array<i64: 16, 32>}, {transform_indices = @transform_1, window_bounds = array<i64: 16, 32>}, {transform_indices = @transform_2, window_bounds = array<i64: 16, 16>}, {transform_indices = @transform_3, window_bounds = array<i64: 16, 16>}, {transform_indices = @transform_4, window_bounds = array<i64: 16, 32>}, {transform_indices = @transform_5, window_bounds = array<i64: 16, 1>}, {transform_indices = @transform_6, window_bounds = array<i64: 16, 1>}, {pipeline_mode = #tpu.pipeline_mode<synchronous>, transform_indices = @transform_7, window_bounds = array<i64: 2, 16, 32>}, {pipeline_mode = #tpu.pipeline_mode<synchronous>, transform_indices = @transform_8, window_bounds = array<i64: 10, 32>}, {transform_indices = @transform_9, window_bounds = array<i64: 16, 128>}]} {
    %c0 = arith.constant 0 : index
    %c0_0 = arith.constant 0 : index
    %0 = vector.load %arg9[%c0, %c0_0] : memref<10x32xf32, #tpu.memory_space<vmem>>, vector<10x32xf32>
    %c0_1 = arith.constant 0 : index
    %c0_2 = arith.constant 0 : index
    %c0_3 = arith.constant 0 : index
    %1 = vector.load %arg8[%c0_1, %c0_2, %c0_3] : memref<2x16x32xbf16, #tpu.memory_space<vmem>>, vector<2x16x32xbf16>
    %c0_4 = arith.constant 0 : index
    %c0_5 = arith.constant 0 : index
    %2 = vector.load %arg5[%c0_4, %c0_5] : memref<16x32xbf16, #tpu.memory_space<vmem>>, vector<16x32xbf16>
    %3 = arith.extf %2 : vector<16x32xbf16> to vector<16x32xf32>
    %c0_6 = arith.constant 0 : index
    %c0_7 = arith.constant 0 : index
    %4 = vector.load %arg6[%c0_6, %c0_7] : memref<16x1xf32, #tpu.memory_space<vmem>>, vector<16x1xf32>
    %c0_8 = arith.constant 0 : index
    %c0_9 = arith.constant 0 : index
    %5 = vector.load %arg7[%c0_8, %c0_9] : memref<16x1xf32, #tpu.memory_space<vmem>>, vector<16x1xf32>
    %c0_10 = arith.constant 0 : index
    %c0_11 = arith.constant 0 : index
    %6 = vector.load %arg3[%c0_10, %c0_11] : memref<16x16xbf16, #tpu.memory_space<vmem>>, vector<16x16xbf16>
    %7 = vector.extract_strided_slice %1 {offsets = [0, 0, 0], sizes = [1, 16, 32], strides = [1, 1, 1]} : vector<2x16x32xbf16> to vector<1x16x32xbf16>
    %8 = vector.shape_cast %7 : vector<1x16x32xbf16> to vector<16x32xbf16>
    %cst = arith.constant dense<0.000000e+00> : vector<16x32xf32>
    %9 = tpu.matmul %6, %8, %cst {dimension_numbers = #tpu.dot_dimension_numbers<[1], [0], [0], [1], [0, 0, 1, 1], [], []>} : vector<16x16xbf16>, vector<16x32xbf16>, vector<16x32xf32> -> vector<16x32xf32>
    %10 = vector.extract_strided_slice %0 {offsets = [0, 0], sizes = [1, 32], strides = [1, 1]} : vector<10x32xf32> to vector<1x32xf32>
    %11 = vector.broadcast %10 : vector<1x32xf32> to vector<16x32xf32>
    %12 = arith.addf %9, %11 : vector<16x32xf32>
    %13 = vector.extract_strided_slice %0 {offsets = [1, 0], sizes = [1, 32], strides = [1, 1]} : vector<10x32xf32> to vector<1x32xf32>
    %14 = vector.extract_strided_slice %0 {offsets = [2, 0], sizes = [1, 32], strides = [1, 1]} : vector<10x32xf32> to vector<1x32xf32>
    %cst_12 = arith.constant dense<0.000000e+00> : vector<16xf32>
    %15 = vector.multi_reduction <add>, %12, %cst_12 [1] : vector<16x32xf32> to vector<16xf32>
    %16 = vector.shape_cast %15 : vector<16xf32> to vector<16x1xf32>
    %cst_13 = arith.constant 3.200000e+01 : f32
    %17 = vector.broadcast %cst_13 : f32 to vector<16x1xf32>
    %18 = arith.divf %16, %17 : vector<16x1xf32>
    %19 = vector.broadcast %18 : vector<16x1xf32> to vector<16x32xf32>
    %20 = arith.subf %12, %19 : vector<16x32xf32>
    %21 = arith.mulf %20, %20 : vector<16x32xf32>
    %cst_14 = arith.constant dense<0.000000e+00> : vector<16xf32>
    %22 = vector.multi_reduction <add>, %21, %cst_14 [1] : vector<16x32xf32> to vector<16xf32>
    %23 = vector.shape_cast %22 : vector<16xf32> to vector<16x1xf32>
    %cst_15 = arith.constant 3.200000e+01 : f32
    %24 = vector.broadcast %cst_15 : f32 to vector<16x1xf32>
    %25 = arith.divf %23, %24 : vector<16x1xf32>
    %cst_16 = arith.constant 9.99999993E-9 : f32
    %26 = vector.broadcast %cst_16 : f32 to vector<16x1xf32>
    %27 = arith.addf %25, %26 : vector<16x1xf32>
    %28 = math.rsqrt %27 : vector<16x1xf32>
    %29 = vector.broadcast %28 : vector<16x1xf32> to vector<16x32xf32>
    %30 = arith.mulf %20, %29 : vector<16x32xf32>
    %31 = vector.broadcast %13 : vector<1x32xf32> to vector<16x32xf32>
    %32 = arith.mulf %30, %31 : vector<16x32xf32>
    %33 = vector.broadcast %14 : vector<1x32xf32> to vector<16x32xf32>
    %34 = arith.addf %32, %33 : vector<16x32xf32>
    %35 = arith.addf %34, %3 : vector<16x32xf32>
    %36 = vector.broadcast %4 : vector<16x1xf32> to vector<16x32xf32>
    %37 = arith.mulf %35, %36 : vector<16x32xf32>
    %c0_17 = arith.constant 0 : index
    %c0_18 = arith.constant 0 : index
    %38 = vector.load %arg4[%c0_17, %c0_18] : memref<16x16xbf16, #tpu.memory_space<vmem>>, vector<16x16xbf16>
    %39 = vector.extract_strided_slice %1 {offsets = [1, 0, 0], sizes = [1, 16, 32], strides = [1, 1, 1]} : vector<2x16x32xbf16> to vector<1x16x32xbf16>
    %40 = vector.shape_cast %39 : vector<1x16x32xbf16> to vector<16x32xbf16>
    %cst_19 = arith.constant dense<0.000000e+00> : vector<16x32xf32>
    %41 = tpu.matmul %38, %40, %cst_19 {dimension_numbers = #tpu.dot_dimension_numbers<[1], [0], [0], [1], [0, 0, 1, 1], [], []>} : vector<16x16xbf16>, vector<16x32xbf16>, vector<16x32xf32> -> vector<16x32xf32>
    %42 = vector.extract_strided_slice %0 {offsets = [3, 0], sizes = [1, 32], strides = [1, 1]} : vector<10x32xf32> to vector<1x32xf32>
    %43 = vector.broadcast %42 : vector<1x32xf32> to vector<16x32xf32>
    %44 = arith.addf %41, %43 : vector<16x32xf32>
    %45 = vector.extract_strided_slice %0 {offsets = [4, 0], sizes = [1, 32], strides = [1, 1]} : vector<10x32xf32> to vector<1x32xf32>
    %46 = vector.extract_strided_slice %0 {offsets = [5, 0], sizes = [1, 32], strides = [1, 1]} : vector<10x32xf32> to vector<1x32xf32>
    %cst_20 = arith.constant dense<0.000000e+00> : vector<16xf32>
    %47 = vector.multi_reduction <add>, %44, %cst_20 [1] : vector<16x32xf32> to vector<16xf32>
    %48 = vector.shape_cast %47 : vector<16xf32> to vector<16x1xf32>
    %cst_21 = arith.constant 3.200000e+01 : f32
    %49 = vector.broadcast %cst_21 : f32 to vector<16x1xf32>
    %50 = arith.divf %48, %49 : vector<16x1xf32>
    %51 = vector.broadcast %50 : vector<16x1xf32> to vector<16x32xf32>
    %52 = arith.subf %44, %51 : vector<16x32xf32>
    %53 = arith.mulf %52, %52 : vector<16x32xf32>
    %cst_22 = arith.constant dense<0.000000e+00> : vector<16xf32>
    %54 = vector.multi_reduction <add>, %53, %cst_22 [1] : vector<16x32xf32> to vector<16xf32>
    %55 = vector.shape_cast %54 : vector<16xf32> to vector<16x1xf32>
    %cst_23 = arith.constant 3.200000e+01 : f32
    %56 = vector.broadcast %cst_23 : f32 to vector<16x1xf32>
    %57 = arith.divf %55, %56 : vector<16x1xf32>
    %cst_24 = arith.constant 9.99999993E-9 : f32
    %58 = vector.broadcast %cst_24 : f32 to vector<16x1xf32>
    %59 = arith.addf %57, %58 : vector<16x1xf32>
    %60 = math.rsqrt %59 : vector<16x1xf32>
    %61 = vector.broadcast %60 : vector<16x1xf32> to vector<16x32xf32>
    %62 = arith.mulf %52, %61 : vector<16x32xf32>
    %63 = vector.broadcast %45 : vector<1x32xf32> to vector<16x32xf32>
    %64 = arith.mulf %62, %63 : vector<16x32xf32>
    %65 = vector.broadcast %46 : vector<1x32xf32> to vector<16x32xf32>
    %66 = arith.addf %64, %65 : vector<16x32xf32>
    %67 = arith.addf %66, %3 : vector<16x32xf32>
    %68 = vector.broadcast %5 : vector<16x1xf32> to vector<16x32xf32>
    %69 = arith.mulf %67, %68 : vector<16x32xf32>
    %c0_25 = arith.constant 0 : index
    %c0_26 = arith.constant 0 : index
    %70 = vector.load %arg1[%c0_25, %c0_26] : memref<16x32xbf16, #tpu.memory_space<vmem>>, vector<16x32xbf16>
    %71 = arith.extf %70 : vector<16x32xbf16> to vector<16x32xf32>
    %72 = vector.extract_strided_slice %0 {offsets = [6, 0], sizes = [1, 32], strides = [1, 1]} : vector<10x32xf32> to vector<1x32xf32>
    %73 = vector.extract_strided_slice %0 {offsets = [7, 0], sizes = [1, 32], strides = [1, 1]} : vector<10x32xf32> to vector<1x32xf32>
    %cst_27 = arith.constant dense<0.000000e+00> : vector<16xf32>
    %74 = vector.multi_reduction <add>, %71, %cst_27 [1] : vector<16x32xf32> to vector<16xf32>
    %75 = vector.shape_cast %74 : vector<16xf32> to vector<16x1xf32>
    %cst_28 = arith.constant 3.200000e+01 : f32
    %76 = vector.broadcast %cst_28 : f32 to vector<16x1xf32>
    %77 = arith.divf %75, %76 : vector<16x1xf32>
    %78 = vector.broadcast %77 : vector<16x1xf32> to vector<16x32xf32>
    %79 = arith.subf %71, %78 : vector<16x32xf32>
    %80 = arith.mulf %79, %79 : vector<16x32xf32>
    %cst_29 = arith.constant dense<0.000000e+00> : vector<16xf32>
    %81 = vector.multi_reduction <add>, %80, %cst_29 [1] : vector<16x32xf32> to vector<16xf32>
    %82 = vector.shape_cast %81 : vector<16xf32> to vector<16x1xf32>
    %cst_30 = arith.constant 3.200000e+01 : f32
    %83 = vector.broadcast %cst_30 : f32 to vector<16x1xf32>
    %84 = arith.divf %82, %83 : vector<16x1xf32>
    %cst_31 = arith.constant 9.99999993E-9 : f32
    %85 = vector.broadcast %cst_31 : f32 to vector<16x1xf32>
    %86 = arith.addf %84, %85 : vector<16x1xf32>
    %87 = math.rsqrt %86 : vector<16x1xf32>
    %88 = vector.broadcast %87 : vector<16x1xf32> to vector<16x32xf32>
    %89 = arith.mulf %79, %88 : vector<16x32xf32>
    %90 = vector.broadcast %72 : vector<1x32xf32> to vector<16x32xf32>
    %91 = arith.mulf %89, %90 : vector<16x32xf32>
    %92 = vector.broadcast %73 : vector<1x32xf32> to vector<16x32xf32>
    %93 = arith.addf %91, %92 : vector<16x32xf32>
    %94 = arith.addf %93, %3 : vector<16x32xf32>
    %95 = vector.broadcast %4 : vector<16x1xf32> to vector<16x32xf32>
    %96 = arith.mulf %94, %95 : vector<16x32xf32>
    %c0_32 = arith.constant 0 : index
    %c0_33 = arith.constant 0 : index
    %97 = vector.load %arg2[%c0_32, %c0_33] : memref<16x32xbf16, #tpu.memory_space<vmem>>, vector<16x32xbf16>
    %98 = arith.extf %97 : vector<16x32xbf16> to vector<16x32xf32>
    %99 = vector.extract_strided_slice %0 {offsets = [8, 0], sizes = [1, 32], strides = [1, 1]} : vector<10x32xf32> to vector<1x32xf32>
    %100 = vector.extract_strided_slice %0 {offsets = [9, 0], sizes = [1, 32], strides = [1, 1]} : vector<10x32xf32> to vector<1x32xf32>
    %cst_34 = arith.constant dense<0.000000e+00> : vector<16xf32>
    %101 = vector.multi_reduction <add>, %98, %cst_34 [1] : vector<16x32xf32> to vector<16xf32>
    %102 = vector.shape_cast %101 : vector<16xf32> to vector<16x1xf32>
    %cst_35 = arith.constant 3.200000e+01 : f32
    %103 = vector.broadcast %cst_35 : f32 to vector<16x1xf32>
    %104 = arith.divf %102, %103 : vector<16x1xf32>
    %105 = vector.broadcast %104 : vector<16x1xf32> to vector<16x32xf32>
    %106 = arith.subf %98, %105 : vector<16x32xf32>
    %107 = arith.mulf %106, %106 : vector<16x32xf32>
    %cst_36 = arith.constant dense<0.000000e+00> : vector<16xf32>
    %108 = vector.multi_reduction <add>, %107, %cst_36 [1] : vector<16x32xf32> to vector<16xf32>
    %109 = vector.shape_cast %108 : vector<16xf32> to vector<16x1xf32>
    %cst_37 = arith.constant 3.200000e+01 : f32
    %110 = vector.broadcast %cst_37 : f32 to vector<16x1xf32>
    %111 = arith.divf %109, %110 : vector<16x1xf32>
    %cst_38 = arith.constant 9.99999993E-9 : f32
    %112 = vector.broadcast %cst_38 : f32 to vector<16x1xf32>
    %113 = arith.addf %111, %112 : vector<16x1xf32>
    %114 = math.rsqrt %113 : vector<16x1xf32>
    %115 = vector.broadcast %114 : vector<16x1xf32> to vector<16x32xf32>
    %116 = arith.mulf %106, %115 : vector<16x32xf32>
    %117 = vector.broadcast %99 : vector<1x32xf32> to vector<16x32xf32>
    %118 = arith.mulf %116, %117 : vector<16x32xf32>
    %119 = vector.broadcast %100 : vector<1x32xf32> to vector<16x32xf32>
    %120 = arith.addf %118, %119 : vector<16x32xf32>
    %121 = arith.addf %120, %3 : vector<16x32xf32>
    %122 = vector.broadcast %5 : vector<16x1xf32> to vector<16x32xf32>
    %123 = arith.mulf %121, %122 : vector<16x32xf32>
    %124 = tpu.concatenate %96, %37, %69, %123 in 1 : vector<16x32xf32>, vector<16x32xf32>, vector<16x32xf32>, vector<16x32xf32> -> vector<16x128xf32>
    %c0_39 = arith.constant 0 : index
    %c0_40 = arith.constant 0 : index
    %125 = vector.load %arg10[%c0_39, %c0_40] : memref<16x128xf32, #tpu.memory_space<vmem>>, vector<16x128xf32>
    tpu.vector_store %arg10[%c0_39, %c0_40], %124 {strides = array<i32>} : memref<16x128xf32, #tpu.memory_space<vmem>>, vector<16x128xf32>,
    return
  }
  func.func @transform_0(%arg0: i32) -> (i32, i32) {
    %c0_i32 = arith.constant 0 : i32
    %c0_i32_0 = arith.constant 0 : i32
    return %arg0, %c0_i32 : i32, i32
  }
  func.func @transform_1(%arg0: i32) -> (i32, i32) {
    %c0_i32 = arith.constant 0 : i32
    %c0_i32_0 = arith.constant 0 : i32
    return %arg0, %c0_i32 : i32, i32
  }
  func.func @transform_2(%arg0: i32) -> (i32, i32) {
    %c0_i32 = arith.constant 0 : i32
    %c0_i32_0 = arith.constant 0 : i32
    return %arg0, %c0_i32 : i32, i32
  }
  func.func @transform_3(%arg0: i32) -> (i32, i32) {
    %c0_i32 = arith.constant 0 : i32
    %c0_i32_0 = arith.constant 0 : i32
    return %arg0, %c0_i32 : i32, i32
  }
  func.func @transform_4(%arg0: i32) -> (i32, i32) {
    %c0_i32 = arith.constant 0 : i32
    %c0_i32_0 = arith.constant 0 : i32
    return %arg0, %c0_i32 : i32, i32
  }
  func.func @transform_5(%arg0: i32) -> (i32, i32) {
    %c0_i32 = arith.constant 0 : i32
    %c0_i32_0 = arith.constant 0 : i32
    return %arg0, %c0_i32 : i32, i32
  }
  func.func @transform_6(%arg0: i32) -> (i32, i32) {
    %c0_i32 = arith.constant 0 : i32
    %c0_i32_0 = arith.constant 0 : i32
    return %arg0, %c0_i32 : i32, i32
  }
  func.func @transform_7(%arg0: i32) -> (i32, i32, i32) {
    %c0_i32 = arith.constant 0 : i32
    %c0_i32_0 = arith.constant 0 : i32
    %c0_i32_1 = arith.constant 0 : i32
    %c0_i32_2 = arith.constant 0 : i32
    return %c0_i32, %c0_i32_0, %c0_i32_1 : i32, i32, i32
  }
  func.func @transform_8(%arg0: i32) -> (i32, i32) {
    %c0_i32 = arith.constant 0 : i32
    %c0_i32_0 = arith.constant 0 : i32
    %c0_i32_1 = arith.constant 0 : i32
    return %c0_i32, %c0_i32_0 : i32, i32
  }
  func.func @transform_9(%arg0: i32) -> (i32, i32) {
    %c0_i32 = arith.constant 0 : i32
    %c0_i32_0 = arith.constant 0 : i32
    return %arg0, %c0_i32 : i32, i32
  }
}

module attributes {stable_mosaic.version = 11 : i64} {
  func.func @_feat_align_kernel(%arg0: i32, %arg1: memref<32x32xbf16, #tpu.memory_space<vmem>>, %arg2: memref<32x16xbf16, #tpu.memory_space<vmem>>, %arg3: memref<2x16x32xbf16, #tpu.memory_space<vmem>>, %arg4: memref<2x32x32xbf16, #tpu.memory_space<vmem>>, %arg5: memref<4x32xf32, #tpu.memory_space<vmem>>, %arg6: memref<32x32xf32, #tpu.memory_space<vmem>>) attributes {dimension_semantics = [#tpu.dimension_semantics<parallel>], iteration_bounds = array<i64: 1>, scalar_prefetch = 0 : i64, scratch_operands = 0 : i64, tpu.core_type = #tpu.core_type<tc>, window_params = [{transform_indices = @transform_0, window_bounds = array<i64: 32, 32>}, {transform_indices = @transform_1, window_bounds = array<i64: 32, 16>}, {pipeline_mode = #tpu.pipeline_mode<synchronous>, transform_indices = @transform_2, window_bounds = array<i64: 2, 16, 32>}, {pipeline_mode = #tpu.pipeline_mode<synchronous>, transform_indices = @transform_3, window_bounds = array<i64: 2, 32, 32>}, {pipeline_mode = #tpu.pipeline_mode<synchronous>, transform_indices = @transform_4, window_bounds = array<i64: 4, 32>}, {transform_indices = @transform_5, window_bounds = array<i64: 32, 32>}]} {
    %c0 = arith.constant 0 : index
    %c0_0 = arith.constant 0 : index
    %0 = vector.load %arg5[%c0, %c0_0] : memref<4x32xf32, #tpu.memory_space<vmem>>, vector<4x32xf32>
    %c0_1 = arith.constant 0 : index
    %c0_2 = arith.constant 0 : index
    %c0_3 = arith.constant 0 : index
    %1 = vector.load %arg4[%c0_1, %c0_2, %c0_3] : memref<2x32x32xbf16, #tpu.memory_space<vmem>>, vector<2x32x32xbf16>
    %c0_4 = arith.constant 0 : index
    %c0_5 = arith.constant 0 : index
    %2 = vector.load %arg2[%c0_4, %c0_5] : memref<32x16xbf16, #tpu.memory_space<vmem>>, vector<32x16xbf16>
    %c0_6 = arith.constant 0 : index
    %c0_7 = arith.constant 0 : index
    %c0_8 = arith.constant 0 : index
    %3 = vector.load %arg3[%c0_6, %c0_7, %c0_8] : memref<2x16x32xbf16, #tpu.memory_space<vmem>>, vector<2x16x32xbf16>
    %4 = vector.extract_strided_slice %3 {offsets = [0, 0, 0], sizes = [1, 16, 32], strides = [1, 1, 1]} : vector<2x16x32xbf16> to vector<1x16x32xbf16>
    %5 = vector.shape_cast %4 : vector<1x16x32xbf16> to vector<16x32xbf16>
    %cst = arith.constant dense<0.000000e+00> : vector<32x32xf32>
    %6 = tpu.matmul %2, %5, %cst {dimension_numbers = #tpu.dot_dimension_numbers<[1], [0], [0], [1], [0, 0, 1, 1], [], []>} : vector<32x16xbf16>, vector<16x32xbf16>, vector<32x32xf32> -> vector<32x32xf32>
    %7 = vector.extract_strided_slice %0 {offsets = [0, 0], sizes = [1, 32], strides = [1, 1]} : vector<4x32xf32> to vector<1x32xf32>
    %8 = vector.broadcast %7 : vector<1x32xf32> to vector<32x32xf32>
    %9 = arith.addf %6, %8 : vector<32x32xf32>
    %10 = vector.extract_strided_slice %0 {offsets = [1, 0], sizes = [1, 32], strides = [1, 1]} : vector<4x32xf32> to vector<1x32xf32>
    %11 = vector.extract_strided_slice %0 {offsets = [2, 0], sizes = [1, 32], strides = [1, 1]} : vector<4x32xf32> to vector<1x32xf32>
    %cst_9 = arith.constant dense<0.000000e+00> : vector<32xf32>
    %12 = vector.multi_reduction <add>, %9, %cst_9 [1] : vector<32x32xf32> to vector<32xf32>
    %13 = vector.shape_cast %12 : vector<32xf32> to vector<32x1xf32>
    %cst_10 = arith.constant 3.200000e+01 : f32
    %14 = vector.broadcast %cst_10 : f32 to vector<32x1xf32>
    %15 = arith.divf %13, %14 : vector<32x1xf32>
    %16 = vector.broadcast %15 : vector<32x1xf32> to vector<32x32xf32>
    %17 = arith.subf %9, %16 : vector<32x32xf32>
    %18 = arith.mulf %17, %17 : vector<32x32xf32>
    %cst_11 = arith.constant dense<0.000000e+00> : vector<32xf32>
    %19 = vector.multi_reduction <add>, %18, %cst_11 [1] : vector<32x32xf32> to vector<32xf32>
    %20 = vector.shape_cast %19 : vector<32xf32> to vector<32x1xf32>
    %cst_12 = arith.constant 3.200000e+01 : f32
    %21 = vector.broadcast %cst_12 : f32 to vector<32x1xf32>
    %22 = arith.divf %20, %21 : vector<32x1xf32>
    %cst_13 = arith.constant 9.99999993E-9 : f32
    %23 = vector.broadcast %cst_13 : f32 to vector<32x1xf32>
    %24 = arith.addf %22, %23 : vector<32x1xf32>
    %25 = math.rsqrt %24 : vector<32x1xf32>
    %26 = vector.broadcast %25 : vector<32x1xf32> to vector<32x32xf32>
    %27 = arith.mulf %17, %26 : vector<32x32xf32>
    %28 = vector.broadcast %10 : vector<1x32xf32> to vector<32x32xf32>
    %29 = arith.mulf %27, %28 : vector<32x32xf32>
    %30 = vector.broadcast %11 : vector<1x32xf32> to vector<32x32xf32>
    %31 = arith.addf %29, %30 : vector<32x32xf32>
    %c0_14 = arith.constant 0 : index
    %c0_15 = arith.constant 0 : index
    %32 = vector.load %arg1[%c0_14, %c0_15] : memref<32x32xbf16, #tpu.memory_space<vmem>>, vector<32x32xbf16>
    %33 = vector.extract_strided_slice %1 {offsets = [0, 0, 0], sizes = [1, 32, 32], strides = [1, 1, 1]} : vector<2x32x32xbf16> to vector<1x32x32xbf16>
    %34 = vector.shape_cast %33 : vector<1x32x32xbf16> to vector<32x32xbf16>
    %cst_16 = arith.constant dense<0.000000e+00> : vector<32x32xf32>
    %35 = tpu.matmul %32, %34, %cst_16 {dimension_numbers = #tpu.dot_dimension_numbers<[1], [0], [0], [1], [0, 0, 1, 1], [], []>} : vector<32x32xbf16>, vector<32x32xbf16>, vector<32x32xf32> -> vector<32x32xf32>
    %36 = vector.extract_strided_slice %1 {offsets = [1, 0, 0], sizes = [1, 32, 32], strides = [1, 1, 1]} : vector<2x32x32xbf16> to vector<1x32x32xbf16>
    %37 = vector.shape_cast %36 : vector<1x32x32xbf16> to vector<32x32xbf16>
    %38 = arith.truncf %31 : vector<32x32xf32> to vector<32x32xbf16>
    %cst_17 = arith.constant dense<0.000000e+00> : vector<32x32xf32>
    %39 = tpu.matmul %38, %37, %cst_17 {dimension_numbers = #tpu.dot_dimension_numbers<[1], [0], [0], [1], [0, 0, 1, 1], [], []>} : vector<32x32xbf16>, vector<32x32xbf16>, vector<32x32xf32> -> vector<32x32xf32>
    %40 = arith.addf %35, %39 : vector<32x32xf32>
    %41 = vector.extract_strided_slice %0 {offsets = [3, 0], sizes = [1, 32], strides = [1, 1]} : vector<4x32xf32> to vector<1x32xf32>
    %42 = vector.broadcast %41 : vector<1x32xf32> to vector<32x32xf32>
    %43 = arith.addf %40, %42 : vector<32x32xf32>
    %c0_18 = arith.constant 0 : index
    %c0_19 = arith.constant 0 : index
    %44 = vector.load %arg6[%c0_18, %c0_19] : memref<32x32xf32, #tpu.memory_space<vmem>>, vector<32x32xf32>
    tpu.vector_store %arg6[%c0_18, %c0_19], %43 {strides = array<i32>} : memref<32x32xf32, #tpu.memory_space<vmem>>, vector<32x32xf32>,
    return
  }
  func.func @transform_0(%arg0: i32) -> (i32, i32) {
    %c0_i32 = arith.constant 0 : i32
    %c0_i32_0 = arith.constant 0 : i32
    return %arg0, %c0_i32 : i32, i32
  }
  func.func @transform_1(%arg0: i32) -> (i32, i32) {
    %c0_i32 = arith.constant 0 : i32
    %c0_i32_0 = arith.constant 0 : i32
    return %arg0, %c0_i32 : i32, i32
  }
  func.func @transform_2(%arg0: i32) -> (i32, i32, i32) {
    %c0_i32 = arith.constant 0 : i32
    %c0_i32_0 = arith.constant 0 : i32
    %c0_i32_1 = arith.constant 0 : i32
    %c0_i32_2 = arith.constant 0 : i32
    return %c0_i32, %c0_i32_0, %c0_i32_1 : i32, i32, i32
  }
  func.func @transform_3(%arg0: i32) -> (i32, i32, i32) {
    %c0_i32 = arith.constant 0 : i32
    %c0_i32_0 = arith.constant 0 : i32
    %c0_i32_1 = arith.constant 0 : i32
    %c0_i32_2 = arith.constant 0 : i32
    return %c0_i32, %c0_i32_0, %c0_i32_1 : i32, i32, i32
  }
  func.func @transform_4(%arg0: i32) -> (i32, i32) {
    %c0_i32 = arith.constant 0 : i32
    %c0_i32_0 = arith.constant 0 : i32
    %c0_i32_1 = arith.constant 0 : i32
    return %c0_i32, %c0_i32_0 : i32, i32
  }
  func.func @transform_5(%arg0: i32) -> (i32, i32) {
    %c0_i32 = arith.constant 0 : i32
    %c0_i32_0 = arith.constant 0 : i32
    return %arg0, %c0_i32 : i32, i32
  }
}

module attributes {stable_mosaic.version = 11 : i64} {
  func.func @_block0_kernel(%arg0: i32, %arg1: memref<16x32xf32, #tpu.memory_space<vmem>>, %arg2: memref<16x32xf32, #tpu.memory_space<vmem>>, %arg3: memref<16x32xf32, #tpu.memory_space<vmem>>, %arg4: memref<16x32xf32, #tpu.memory_space<vmem>>, %arg5: memref<16x1xf32, #tpu.memory_space<vmem>>, %arg6: memref<16x1xf32, #tpu.memory_space<vmem>>, %arg7: memref<12x32xf32, #tpu.memory_space<vmem>>, %arg8: memref<2x3x32x16xbf16, #tpu.memory_space<vmem>>, %arg9: memref<3x32x32xbf16, #tpu.memory_space<vmem>>, %arg10: memref<16x32xf32, #tpu.memory_space<vmem>>, %arg11: memref<2x3x32x16xbf16, #tpu.memory_space<vmem>>, %arg12: memref<3x32x32xbf16, #tpu.memory_space<vmem>>, %arg13: memref<16x32xf32, #tpu.memory_space<vmem>>, %arg14: memref<16x32xf32, #tpu.memory_space<vmem>>, %arg15: memref<16x32xf32, #tpu.memory_space<vmem>>) attributes {dimension_semantics = [#tpu.dimension_semantics<parallel>], iteration_bounds = array<i64: 1>, scalar_prefetch = 0 : i64, scratch_operands = 0 : i64, tpu.core_type = #tpu.core_type<tc>, window_params = [{pipeline_mode = #tpu.pipeline_mode<synchronous>, transform_indices = @transform_0, window_bounds = array<i64: 16, 32>}, {pipeline_mode = #tpu.pipeline_mode<synchronous>, transform_indices = @transform_1, window_bounds = array<i64: 16, 32>}, {pipeline_mode = #tpu.pipeline_mode<synchronous>, transform_indices = @transform_2, window_bounds = array<i64: 16, 32>}, {pipeline_mode = #tpu.pipeline_mode<synchronous>, transform_indices = @transform_3, window_bounds = array<i64: 16, 32>}, {pipeline_mode = #tpu.pipeline_mode<synchronous>, transform_indices = @transform_4, window_bounds = array<i64: 16, 1>}, {pipeline_mode = #tpu.pipeline_mode<synchronous>, transform_indices = @transform_5, window_bounds = array<i64: 16, 1>}, {pipeline_mode = #tpu.pipeline_mode<synchronous>, transform_indices = @transform_6, window_bounds = array<i64: 12, 32>}, {pipeline_mode = #tpu.pipeline_mode<synchronous>, transform_indices = @transform_7, window_bounds = array<i64: 2, 3, 32, 16>}, {pipeline_mode = #tpu.pipeline_mode<synchronous>, transform_indices = @transform_8, window_bounds = array<i64: 3, 32, 32>}, {pipeline_mode = #tpu.pipeline_mode<synchronous>, transform_indices = @transform_9, window_bounds = array<i64: 16, 32>}, {pipeline_mode = #tpu.pipeline_mode<synchronous>, transform_indices = @transform_10, window_bounds = array<i64: 2, 3, 32, 16>}, {pipeline_mode = #tpu.pipeline_mode<synchronous>, transform_indices = @transform_11, window_bounds = array<i64: 3, 32, 32>}, {pipeline_mode = #tpu.pipeline_mode<synchronous>, transform_indices = @transform_12, window_bounds = array<i64: 16, 32>}, {pipeline_mode = #tpu.pipeline_mode<synchronous>, transform_indices = @transform_13, window_bounds = array<i64: 16, 32>}, {pipeline_mode = #tpu.pipeline_mode<synchronous>, transform_indices = @transform_14, window_bounds = array<i64: 16, 32>}]} {
    %c0 = arith.constant 0 : index
    %c0_0 = arith.constant 0 : index
    %0 = vector.load %arg1[%c0, %c0_0] : memref<16x32xf32, #tpu.memory_space<vmem>>, vector<16x32xf32>
    %c0_1 = arith.constant 0 : index
    %c0_2 = arith.constant 0 : index
    %1 = vector.load %arg2[%c0_1, %c0_2] : memref<16x32xf32, #tpu.memory_space<vmem>>, vector<16x32xf32>
    %c0_3 = arith.constant 0 : index
    %c0_4 = arith.constant 0 : index
    %2 = vector.load %arg3[%c0_3, %c0_4] : memref<16x32xf32, #tpu.memory_space<vmem>>, vector<16x32xf32>
    %c0_5 = arith.constant 0 : index
    %c0_6 = arith.constant 0 : index
    %3 = vector.load %arg4[%c0_5, %c0_6] : memref<16x32xf32, #tpu.memory_space<vmem>>, vector<16x32xf32>
    %c0_7 = arith.constant 0 : index
    %c0_8 = arith.constant 0 : index
    %4 = vector.load %arg5[%c0_7, %c0_8] : memref<16x1xf32, #tpu.memory_space<vmem>>, vector<16x1xf32>
    %c0_9 = arith.constant 0 : index
    %c0_10 = arith.constant 0 : index
    %5 = vector.load %arg6[%c0_9, %c0_10] : memref<16x1xf32, #tpu.memory_space<vmem>>, vector<16x1xf32>
    %c0_11 = arith.constant 0 : index
    %c0_12 = arith.constant 0 : index
    %6 = vector.load %arg7[%c0_11, %c0_12] : memref<12x32xf32, #tpu.memory_space<vmem>>, vector<12x32xf32>
    %c0_13 = arith.constant 0 : index
    %c0_14 = arith.constant 0 : index
    %c0_15 = arith.constant 0 : index
    %c0_16 = arith.constant 0 : index
    %7 = vector.load %arg8[%c0_13, %c0_14, %c0_15, %c0_16] : memref<2x3x32x16xbf16, #tpu.memory_space<vmem>>, vector<2x3x32x16xbf16>
    %c0_17 = arith.constant 0 : index
    %c0_18 = arith.constant 0 : index
    %c0_19 = arith.constant 0 : index
    %8 = vector.load %arg9[%c0_17, %c0_18, %c0_19] : memref<3x32x32xbf16, #tpu.memory_space<vmem>>, vector<3x32x32xbf16>
    %c0_20 = arith.constant 0 : index
    %c0_21 = arith.constant 0 : index
    %9 = vector.load %arg10[%c0_20, %c0_21] : memref<16x32xf32, #tpu.memory_space<vmem>>, vector<16x32xf32>
    %c0_22 = arith.constant 0 : index
    %c0_23 = arith.constant 0 : index
    %c0_24 = arith.constant 0 : index
    %c0_25 = arith.constant 0 : index
    %10 = vector.load %arg11[%c0_22, %c0_23, %c0_24, %c0_25] : memref<2x3x32x16xbf16, #tpu.memory_space<vmem>>, vector<2x3x32x16xbf16>
    %c0_26 = arith.constant 0 : index
    %c0_27 = arith.constant 0 : index
    %c0_28 = arith.constant 0 : index
    %11 = vector.load %arg12[%c0_26, %c0_27, %c0_28] : memref<3x32x32xbf16, #tpu.memory_space<vmem>>, vector<3x32x32xbf16>
    %12 = tpu.iota {dimensions = array<i32: 0>} : vector<16x16xi32>
    %13 = tpu.iota {dimensions = array<i32: 1>} : vector<16x16xi32>
    %c3_i32 = arith.constant 3 : i32
    %14 = vector.broadcast %c3_i32 : i32 to vector<16x16xi32>
    %15 = arith.shrsi %12, %14 : vector<16x16xi32>
    %c3_i32_29 = arith.constant 3 : i32
    %16 = vector.broadcast %c3_i32_29 : i32 to vector<16x16xi32>
    %17 = arith.shrsi %13, %16 : vector<16x16xi32>
    %18 = arith.cmpi eq, %15, %17 : vector<16x16xi32>
    %19 = arith.cmpi sle, %13, %12 : vector<16x16xi32>
    %20 = arith.andi %18, %19 : vector<16x16xi1>
    %cst = arith.constant 0.000000e+00 : f32
    %cst_30 = arith.constant -1.000000e+09 : f32
    %21 = vector.broadcast %cst : f32 to vector<16x16xf32>
    %22 = vector.broadcast %cst_30 : f32 to vector<16x16xf32>
    %23 = arith.select %20, %21, %22 : vector<16x16xi1>, vector<16x16xf32>
    %24 = vector.extract_strided_slice %9 {offsets = [0, 0], sizes = [1, 32], strides = [1, 1]} : vector<16x32xf32> to vector<1x32xf32>
    %25 = vector.extract_strided_slice %9 {offsets = [1, 0], sizes = [1, 32], strides = [1, 1]} : vector<16x32xf32> to vector<1x32xf32>
    %cst_31 = arith.constant dense<0.000000e+00> : vector<16xf32>
    %26 = vector.multi_reduction <add>, %1, %cst_31 [1] : vector<16x32xf32> to vector<16xf32>
    %27 = vector.shape_cast %26 : vector<16xf32> to vector<16x1xf32>
    %cst_32 = arith.constant 3.200000e+01 : f32
    %28 = vector.broadcast %cst_32 : f32 to vector<16x1xf32>
    %29 = arith.divf %27, %28 : vector<16x1xf32>
    %30 = vector.broadcast %29 : vector<16x1xf32> to vector<16x32xf32>
    %31 = arith.subf %1, %30 : vector<16x32xf32>
    %32 = arith.mulf %31, %31 : vector<16x32xf32>
    %cst_33 = arith.constant dense<0.000000e+00> : vector<16xf32>
    %33 = vector.multi_reduction <add>, %32, %cst_33 [1] : vector<16x32xf32> to vector<16xf32>
    %34 = vector.shape_cast %33 : vector<16xf32> to vector<16x1xf32>
    %cst_34 = arith.constant 3.200000e+01 : f32
    %35 = vector.broadcast %cst_34 : f32 to vector<16x1xf32>
    %36 = arith.divf %34, %35 : vector<16x1xf32>
    %cst_35 = arith.constant 9.99999993E-9 : f32
    %37 = vector.broadcast %cst_35 : f32 to vector<16x1xf32>
    %38 = arith.addf %36, %37 : vector<16x1xf32>
    %39 = math.rsqrt %38 : vector<16x1xf32>
    %40 = vector.broadcast %39 : vector<16x1xf32> to vector<16x32xf32>
    %41 = arith.mulf %31, %40 : vector<16x32xf32>
    %42 = vector.broadcast %24 : vector<1x32xf32> to vector<16x32xf32>
    %43 = arith.mulf %41, %42 : vector<16x32xf32>
    %44 = vector.broadcast %25 : vector<1x32xf32> to vector<16x32xf32>
    %45 = arith.addf %43, %44 : vector<16x32xf32>
    %46 = vector.extract_strided_slice %9 {offsets = [2, 0], sizes = [1, 32], strides = [1, 1]} : vector<16x32xf32> to vector<1x32xf32>
    %47 = vector.extract_strided_slice %9 {offsets = [3, 0], sizes = [1, 32], strides = [1, 1]} : vector<16x32xf32> to vector<1x32xf32>
    %cst_36 = arith.constant dense<0.000000e+00> : vector<16xf32>
    %48 = vector.multi_reduction <add>, %2, %cst_36 [1] : vector<16x32xf32> to vector<16xf32>
    %49 = vector.shape_cast %48 : vector<16xf32> to vector<16x1xf32>
    %cst_37 = arith.constant 3.200000e+01 : f32
    %50 = vector.broadcast %cst_37 : f32 to vector<16x1xf32>
    %51 = arith.divf %49, %50 : vector<16x1xf32>
    %52 = vector.broadcast %51 : vector<16x1xf32> to vector<16x32xf32>
    %53 = arith.subf %2, %52 : vector<16x32xf32>
    %54 = arith.mulf %53, %53 : vector<16x32xf32>
    %cst_38 = arith.constant dense<0.000000e+00> : vector<16xf32>
    %55 = vector.multi_reduction <add>, %54, %cst_38 [1] : vector<16x32xf32> to vector<16xf32>
    %56 = vector.shape_cast %55 : vector<16xf32> to vector<16x1xf32>
    %cst_39 = arith.constant 3.200000e+01 : f32
    %57 = vector.broadcast %cst_39 : f32 to vector<16x1xf32>
    %58 = arith.divf %56, %57 : vector<16x1xf32>
    %cst_40 = arith.constant 9.99999993E-9 : f32
    %59 = vector.broadcast %cst_40 : f32 to vector<16x1xf32>
    %60 = arith.addf %58, %59 : vector<16x1xf32>
    %61 = math.rsqrt %60 : vector<16x1xf32>
    %62 = vector.broadcast %61 : vector<16x1xf32> to vector<16x32xf32>
    %63 = arith.mulf %53, %62 : vector<16x32xf32>
    %64 = vector.broadcast %46 : vector<1x32xf32> to vector<16x32xf32>
    %65 = arith.mulf %63, %64 : vector<16x32xf32>
    %66 = vector.broadcast %47 : vector<1x32xf32> to vector<16x32xf32>
    %67 = arith.addf %65, %66 : vector<16x32xf32>
    %68 = vector.extract_strided_slice %9 {offsets = [4, 0], sizes = [1, 32], strides = [1, 1]} : vector<16x32xf32> to vector<1x32xf32>
    %69 = vector.extract_strided_slice %9 {offsets = [5, 0], sizes = [1, 32], strides = [1, 1]} : vector<16x32xf32> to vector<1x32xf32>
    %cst_41 = arith.constant dense<0.000000e+00> : vector<16xf32>
    %70 = vector.multi_reduction <add>, %3, %cst_41 [1] : vector<16x32xf32> to vector<16xf32>
    %71 = vector.shape_cast %70 : vector<16xf32> to vector<16x1xf32>
    %cst_42 = arith.constant 3.200000e+01 : f32
    %72 = vector.broadcast %cst_42 : f32 to vector<16x1xf32>
    %73 = arith.divf %71, %72 : vector<16x1xf32>
    %74 = vector.broadcast %73 : vector<16x1xf32> to vector<16x32xf32>
    %75 = arith.subf %3, %74 : vector<16x32xf32>
    %76 = arith.mulf %75, %75 : vector<16x32xf32>
    %cst_43 = arith.constant dense<0.000000e+00> : vector<16xf32>
    %77 = vector.multi_reduction <add>, %76, %cst_43 [1] : vector<16x32xf32> to vector<16xf32>
    %78 = vector.shape_cast %77 : vector<16xf32> to vector<16x1xf32>
    %cst_44 = arith.constant 3.200000e+01 : f32
    %79 = vector.broadcast %cst_44 : f32 to vector<16x1xf32>
    %80 = arith.divf %78, %79 : vector<16x1xf32>
    %cst_45 = arith.constant 9.99999993E-9 : f32
    %81 = vector.broadcast %cst_45 : f32 to vector<16x1xf32>
    %82 = arith.addf %80, %81 : vector<16x1xf32>
    %83 = math.rsqrt %82 : vector<16x1xf32>
    %84 = vector.broadcast %83 : vector<16x1xf32> to vector<16x32xf32>
    %85 = arith.mulf %75, %84 : vector<16x32xf32>
    %86 = vector.broadcast %68 : vector<1x32xf32> to vector<16x32xf32>
    %87 = arith.mulf %85, %86 : vector<16x32xf32>
    %88 = vector.broadcast %69 : vector<1x32xf32> to vector<16x32xf32>
    %89 = arith.addf %87, %88 : vector<16x32xf32>
    %90 = vector.extract_strided_slice %11 {offsets = [0, 0, 0], sizes = [1, 32, 32], strides = [1, 1, 1]} : vector<3x32x32xbf16> to vector<1x32x32xbf16>
    %91 = vector.shape_cast %90 : vector<1x32x32xbf16> to vector<32x32xbf16>
    %92 = vector.extract_strided_slice %9 {offsets = [6, 0], sizes = [1, 32], strides = [1, 1]} : vector<16x32xf32> to vector<1x32xf32>
    %93 = vector.extract_strided_slice %9 {offsets = [7, 0], sizes = [1, 32], strides = [1, 1]} : vector<16x32xf32> to vector<1x32xf32>
    %94 = vector.extract_strided_slice %9 {offsets = [8, 0], sizes = [1, 32], strides = [1, 1]} : vector<16x32xf32> to vector<1x32xf32>
    %95 = vector.extract_strided_slice %10 {offsets = [0, 0, 0, 0], sizes = [1, 1, 32, 16], strides = [1, 1, 1, 1]} : vector<2x3x32x16xbf16> to vector<1x1x32x16xbf16>
    %96 = vector.shape_cast %95 : vector<1x1x32x16xbf16> to vector<32x16xbf16>
    %97 = arith.truncf %45 : vector<16x32xf32> to vector<16x32xbf16>
    %cst_46 = arith.constant dense<0.000000e+00> : vector<16x16xf32>
    %98 = tpu.matmul %97, %96, %cst_46 {dimension_numbers = #tpu.dot_dimension_numbers<[1], [0], [0], [1], [0, 0, 1, 1], [], []>} : vector<16x32xbf16>, vector<32x16xbf16>, vector<16x16xf32> -> vector<16x16xf32>
    %99 = vector.extract_strided_slice %92 {offsets = [0, 0], sizes = [1, 16], strides = [1, 1]} : vector<1x32xf32> to vector<1x16xf32>
    %100 = vector.broadcast %99 : vector<1x16xf32> to vector<16x16xf32>
    %101 = arith.addf %98, %100 : vector<16x16xf32>
    %102 = vector.extract_strided_slice %10 {offsets = [0, 1, 0, 0], sizes = [1, 1, 32, 16], strides = [1, 1, 1, 1]} : vector<2x3x32x16xbf16> to vector<1x1x32x16xbf16>
    %103 = vector.shape_cast %102 : vector<1x1x32x16xbf16> to vector<32x16xbf16>
    %104 = arith.truncf %67 : vector<16x32xf32> to vector<16x32xbf16>
    %cst_47 = arith.constant dense<0.000000e+00> : vector<16x16xf32>
    %105 = tpu.matmul %104, %103, %cst_47 {dimension_numbers = #tpu.dot_dimension_numbers<[1], [0], [0], [1], [0, 0, 1, 1], [], []>} : vector<16x32xbf16>, vector<32x16xbf16>, vector<16x16xf32> -> vector<16x16xf32>
    %106 = vector.extract_strided_slice %93 {offsets = [0, 0], sizes = [1, 16], strides = [1, 1]} : vector<1x32xf32> to vector<1x16xf32>
    %107 = vector.broadcast %106 : vector<1x16xf32> to vector<16x16xf32>
    %108 = arith.addf %105, %107 : vector<16x16xf32>
    %109 = vector.extract_strided_slice %10 {offsets = [0, 2, 0, 0], sizes = [1, 1, 32, 16], strides = [1, 1, 1, 1]} : vector<2x3x32x16xbf16> to vector<1x1x32x16xbf16>
    %110 = vector.shape_cast %109 : vector<1x1x32x16xbf16> to vector<32x16xbf16>
    %111 = arith.truncf %89 : vector<16x32xf32> to vector<16x32xbf16>
    %cst_48 = arith.constant dense<0.000000e+00> : vector<16x16xf32>
    %112 = tpu.matmul %111, %110, %cst_48 {dimension_numbers = #tpu.dot_dimension_numbers<[1], [0], [0], [1], [0, 0, 1, 1], [], []>} : vector<16x32xbf16>, vector<32x16xbf16>, vector<16x16xf32> -> vector<16x16xf32>
    %113 = vector.extract_strided_slice %94 {offsets = [0, 0], sizes = [1, 16], strides = [1, 1]} : vector<1x32xf32> to vector<1x16xf32>
    %114 = vector.broadcast %113 : vector<1x16xf32> to vector<16x16xf32>
    %115 = arith.addf %112, %114 : vector<16x16xf32>
    %116 = arith.truncf %101 : vector<16x16xf32> to vector<16x16xbf16>
    %117 = arith.truncf %108 : vector<16x16xf32> to vector<16x16xbf16>
    %cst_49 = arith.constant dense<0.000000e+00> : vector<16x16xf32>
    %118 = tpu.matmul %116, %117, %cst_49 {dimension_numbers = #tpu.dot_dimension_numbers<[1], [1], [0], [0], [0, 0, 1, 0], [], []>} : vector<16x16xbf16>, vector<16x16xbf16>, vector<16x16xf32> -> vector<16x16xf32>
    %cst_50 = arith.constant 2.500000e-01 : f32
    %119 = vector.broadcast %cst_50 : f32 to vector<16x16xf32>
    %120 = arith.mulf %118, %119 : vector<16x16xf32>
    %121 = arith.addf %120, %23 : vector<16x16xf32>
    %cst_51 = arith.constant dense<0xFF800000> : vector<16xf32>
    %122 = vector.multi_reduction <maximumf>, %121, %cst_51 [1] : vector<16x16xf32> to vector<16xf32>
    %123 = vector.shape_cast %122 : vector<16xf32> to vector<16x1xf32>
    %124 = vector.broadcast %123 : vector<16x1xf32> to vector<16x16xf32>
    %125 = arith.subf %121, %124 : vector<16x16xf32>
    %126 = math.exp %125 : vector<16x16xf32>
    %cst_52 = arith.constant dense<0.000000e+00> : vector<16xf32>
    %127 = vector.multi_reduction <add>, %126, %cst_52 [1] : vector<16x16xf32> to vector<16xf32>
    %128 = vector.shape_cast %127 : vector<16xf32> to vector<16x1xf32>
    %129 = tpu.reciprocal %128 {approx = true} : vector<16x1xf32> -> vector<16x1xf32>
    %130 = vector.broadcast %129 : vector<16x1xf32> to vector<16x16xf32>
    %131 = arith.mulf %126, %130 : vector<16x16xf32>
    %132 = arith.truncf %131 : vector<16x16xf32> to vector<16x16xbf16>
    %133 = arith.truncf %115 : vector<16x16xf32> to vector<16x16xbf16>
    %cst_53 = arith.constant dense<0.000000e+00> : vector<16x16xf32>
    %134 = tpu.matmul %132, %133, %cst_53 {dimension_numbers = #tpu.dot_dimension_numbers<[1], [0], [0], [1], [0, 0, 1, 1], [], []>} : vector<16x16xbf16>, vector<16x16xbf16>, vector<16x16xf32> -> vector<16x16xf32>
    %135 = vector.extract_strided_slice %10 {offsets = [1, 0, 0, 0], sizes = [1, 1, 32, 16], strides = [1, 1, 1, 1]} : vector<2x3x32x16xbf16> to vector<1x1x32x16xbf16>
    %136 = vector.shape_cast %135 : vector<1x1x32x16xbf16> to vector<32x16xbf16>
    %137 = arith.truncf %45 : vector<16x32xf32> to vector<16x32xbf16>
    %cst_54 = arith.constant dense<0.000000e+00> : vector<16x16xf32>
    %138 = tpu.matmul %137, %136, %cst_54 {dimension_numbers = #tpu.dot_dimension_numbers<[1], [0], [0], [1], [0, 0, 1, 1], [], []>} : vector<16x32xbf16>, vector<32x16xbf16>, vector<16x16xf32> -> vector<16x16xf32>
    %139 = vector.extract_strided_slice %92 {offsets = [0, 16], sizes = [1, 16], strides = [1, 1]} : vector<1x32xf32> to vector<1x16xf32>
    %140 = vector.broadcast %139 : vector<1x16xf32> to vector<16x16xf32>
    %141 = arith.addf %138, %140 : vector<16x16xf32>
    %142 = vector.extract_strided_slice %10 {offsets = [1, 1, 0, 0], sizes = [1, 1, 32, 16], strides = [1, 1, 1, 1]} : vector<2x3x32x16xbf16> to vector<1x1x32x16xbf16>
    %143 = vector.shape_cast %142 : vector<1x1x32x16xbf16> to vector<32x16xbf16>
    %144 = arith.truncf %67 : vector<16x32xf32> to vector<16x32xbf16>
    %cst_55 = arith.constant dense<0.000000e+00> : vector<16x16xf32>
    %145 = tpu.matmul %144, %143, %cst_55 {dimension_numbers = #tpu.dot_dimension_numbers<[1], [0], [0], [1], [0, 0, 1, 1], [], []>} : vector<16x32xbf16>, vector<32x16xbf16>, vector<16x16xf32> -> vector<16x16xf32>
    %146 = vector.extract_strided_slice %93 {offsets = [0, 16], sizes = [1, 16], strides = [1, 1]} : vector<1x32xf32> to vector<1x16xf32>
    %147 = vector.broadcast %146 : vector<1x16xf32> to vector<16x16xf32>
    %148 = arith.addf %145, %147 : vector<16x16xf32>
    %149 = vector.extract_strided_slice %10 {offsets = [1, 2, 0, 0], sizes = [1, 1, 32, 16], strides = [1, 1, 1, 1]} : vector<2x3x32x16xbf16> to vector<1x1x32x16xbf16>
    %150 = vector.shape_cast %149 : vector<1x1x32x16xbf16> to vector<32x16xbf16>
    %151 = arith.truncf %89 : vector<16x32xf32> to vector<16x32xbf16>
    %cst_56 = arith.constant dense<0.000000e+00> : vector<16x16xf32>
    %152 = tpu.matmul %151, %150, %cst_56 {dimension_numbers = #tpu.dot_dimension_numbers<[1], [0], [0], [1], [0, 0, 1, 1], [], []>} : vector<16x32xbf16>, vector<32x16xbf16>, vector<16x16xf32> -> vector<16x16xf32>
    %153 = vector.extract_strided_slice %94 {offsets = [0, 16], sizes = [1, 16], strides = [1, 1]} : vector<1x32xf32> to vector<1x16xf32>
    %154 = vector.broadcast %153 : vector<1x16xf32> to vector<16x16xf32>
    %155 = arith.addf %152, %154 : vector<16x16xf32>
    %156 = arith.truncf %141 : vector<16x16xf32> to vector<16x16xbf16>
    %157 = arith.truncf %148 : vector<16x16xf32> to vector<16x16xbf16>
    %cst_57 = arith.constant dense<0.000000e+00> : vector<16x16xf32>
    %158 = tpu.matmul %156, %157, %cst_57 {dimension_numbers = #tpu.dot_dimension_numbers<[1], [1], [0], [0], [0, 0, 1, 0], [], []>} : vector<16x16xbf16>, vector<16x16xbf16>, vector<16x16xf32> -> vector<16x16xf32>
    %cst_58 = arith.constant 2.500000e-01 : f32
    %159 = vector.broadcast %cst_58 : f32 to vector<16x16xf32>
    %160 = arith.mulf %158, %159 : vector<16x16xf32>
    %161 = arith.addf %160, %23 : vector<16x16xf32>
    %cst_59 = arith.constant dense<0xFF800000> : vector<16xf32>
    %162 = vector.multi_reduction <maximumf>, %161, %cst_59 [1] : vector<16x16xf32> to vector<16xf32>
    %163 = vector.shape_cast %162 : vector<16xf32> to vector<16x1xf32>
    %164 = vector.broadcast %163 : vector<16x1xf32> to vector<16x16xf32>
    %165 = arith.subf %161, %164 : vector<16x16xf32>
    %166 = math.exp %165 : vector<16x16xf32>
    %cst_60 = arith.constant dense<0.000000e+00> : vector<16xf32>
    %167 = vector.multi_reduction <add>, %166, %cst_60 [1] : vector<16x16xf32> to vector<16xf32>
    %168 = vector.shape_cast %167 : vector<16xf32> to vector<16x1xf32>
    %169 = tpu.reciprocal %168 {approx = true} : vector<16x1xf32> -> vector<16x1xf32>
    %170 = vector.broadcast %169 : vector<16x1xf32> to vector<16x16xf32>
    %171 = arith.mulf %166, %170 : vector<16x16xf32>
    %172 = arith.truncf %171 : vector<16x16xf32> to vector<16x16xbf16>
    %173 = arith.truncf %155 : vector<16x16xf32> to vector<16x16xbf16>
    %cst_61 = arith.constant dense<0.000000e+00> : vector<16x16xf32>
    %174 = tpu.matmul %172, %173, %cst_61 {dimension_numbers = #tpu.dot_dimension_numbers<[1], [0], [0], [1], [0, 0, 1, 1], [], []>} : vector<16x16xbf16>, vector<16x16xbf16>, vector<16x16xf32> -> vector<16x16xf32>
    %175 = tpu.concatenate %134, %174 in 1 : vector<16x16xf32>, vector<16x16xf32> -> vector<16x32xf32>
    %176 = arith.truncf %175 : vector<16x32xf32> to vector<16x32xbf16>
    %cst_62 = arith.constant dense<0.000000e+00> : vector<16x32xf32>
    %177 = tpu.matmul %176, %91, %cst_62 {dimension_numbers = #tpu.dot_dimension_numbers<[1], [0], [0], [1], [0, 0, 1, 1], [], []>} : vector<16x32xbf16>, vector<32x32xbf16>, vector<16x32xf32> -> vector<16x32xf32>
    %178 = vector.extract_strided_slice %9 {offsets = [9, 0], sizes = [1, 32], strides = [1, 1]} : vector<16x32xf32> to vector<1x32xf32>
    %179 = vector.broadcast %178 : vector<1x32xf32> to vector<16x32xf32>
    %180 = arith.addf %177, %179 : vector<16x32xf32>
    %181 = arith.addf %180, %67 : vector<16x32xf32>
    %182 = vector.extract_strided_slice %9 {offsets = [10, 0], sizes = [1, 32], strides = [1, 1]} : vector<16x32xf32> to vector<1x32xf32>
    %183 = vector.extract_strided_slice %9 {offsets = [11, 0], sizes = [1, 32], strides = [1, 1]} : vector<16x32xf32> to vector<1x32xf32>
    %cst_63 = arith.constant dense<0.000000e+00> : vector<16xf32>
    %184 = vector.multi_reduction <add>, %181, %cst_63 [1] : vector<16x32xf32> to vector<16xf32>
    %185 = vector.shape_cast %184 : vector<16xf32> to vector<16x1xf32>
    %cst_64 = arith.constant 3.200000e+01 : f32
    %186 = vector.broadcast %cst_64 : f32 to vector<16x1xf32>
    %187 = arith.divf %185, %186 : vector<16x1xf32>
    %188 = vector.broadcast %187 : vector<16x1xf32> to vector<16x32xf32>
    %189 = arith.subf %181, %188 : vector<16x32xf32>
    %190 = arith.mulf %189, %189 : vector<16x32xf32>
    %cst_65 = arith.constant dense<0.000000e+00> : vector<16xf32>
    %191 = vector.multi_reduction <add>, %190, %cst_65 [1] : vector<16x32xf32> to vector<16xf32>
    %192 = vector.shape_cast %191 : vector<16xf32> to vector<16x1xf32>
    %cst_66 = arith.constant 3.200000e+01 : f32
    %193 = vector.broadcast %cst_66 : f32 to vector<16x1xf32>
    %194 = arith.divf %192, %193 : vector<16x1xf32>
    %cst_67 = arith.constant 9.99999993E-9 : f32
    %195 = vector.broadcast %cst_67 : f32 to vector<16x1xf32>
    %196 = arith.addf %194, %195 : vector<16x1xf32>
    %197 = math.rsqrt %196 : vector<16x1xf32>
    %198 = vector.broadcast %197 : vector<16x1xf32> to vector<16x32xf32>
    %199 = arith.mulf %189, %198 : vector<16x32xf32>
    %200 = vector.broadcast %182 : vector<1x32xf32> to vector<16x32xf32>
    %201 = arith.mulf %199, %200 : vector<16x32xf32>
    %202 = vector.broadcast %183 : vector<1x32xf32> to vector<16x32xf32>
    %203 = arith.addf %201, %202 : vector<16x32xf32>
    %204 = vector.extract_strided_slice %11 {offsets = [1, 0, 0], sizes = [1, 32, 32], strides = [1, 1, 1]} : vector<3x32x32xbf16> to vector<1x32x32xbf16>
    %205 = vector.shape_cast %204 : vector<1x32x32xbf16> to vector<32x32xbf16>
    %206 = arith.truncf %203 : vector<16x32xf32> to vector<16x32xbf16>
    %cst_68 = arith.constant dense<0.000000e+00> : vector<16x32xf32>
    %207 = tpu.matmul %206, %205, %cst_68 {dimension_numbers = #tpu.dot_dimension_numbers<[1], [0], [0], [1], [0, 0, 1, 1], [], []>} : vector<16x32xbf16>, vector<32x32xbf16>, vector<16x32xf32> -> vector<16x32xf32>
    %208 = vector.extract_strided_slice %9 {offsets = [12, 0], sizes = [1, 32], strides = [1, 1]} : vector<16x32xf32> to vector<1x32xf32>
    %209 = vector.broadcast %208 : vector<1x32xf32> to vector<16x32xf32>
    %210 = arith.addf %207, %209 : vector<16x32xf32>
    %cst_69 = arith.constant 0.000000e+00 : f32
    %211 = vector.broadcast %cst_69 : f32 to vector<16x32xf32>
    %212 = arith.maximumf %210, %211 : vector<16x32xf32>
    %213 = vector.extract_strided_slice %11 {offsets = [2, 0, 0], sizes = [1, 32, 32], strides = [1, 1, 1]} : vector<3x32x32xbf16> to vector<1x32x32xbf16>
    %214 = vector.shape_cast %213 : vector<1x32x32xbf16> to vector<32x32xbf16>
    %215 = arith.truncf %212 : vector<16x32xf32> to vector<16x32xbf16>
    %cst_70 = arith.constant dense<0.000000e+00> : vector<16x32xf32>
    %216 = tpu.matmul %215, %214, %cst_70 {dimension_numbers = #tpu.dot_dimension_numbers<[1], [0], [0], [1], [0, 0, 1, 1], [], []>} : vector<16x32xbf16>, vector<32x32xbf16>, vector<16x32xf32> -> vector<16x32xf32>
    %217 = vector.extract_strided_slice %9 {offsets = [13, 0], sizes = [1, 32], strides = [1, 1]} : vector<16x32xf32> to vector<1x32xf32>
    %218 = vector.broadcast %217 : vector<1x32xf32> to vector<16x32xf32>
    %219 = arith.addf %216, %218 : vector<16x32xf32>
    %220 = arith.addf %219, %203 : vector<16x32xf32>
    %221 = vector.broadcast %5 : vector<16x1xf32> to vector<16x32xf32>
    %222 = arith.mulf %220, %221 : vector<16x32xf32>
    %223 = vector.extract_strided_slice %9 {offsets = [14, 0], sizes = [1, 32], strides = [1, 1]} : vector<16x32xf32> to vector<1x32xf32>
    %224 = vector.extract_strided_slice %9 {offsets = [15, 0], sizes = [1, 32], strides = [1, 1]} : vector<16x32xf32> to vector<1x32xf32>
    %cst_71 = arith.constant dense<0.000000e+00> : vector<16xf32>
    %225 = vector.multi_reduction <add>, %222, %cst_71 [1] : vector<16x32xf32> to vector<16xf32>
    %226 = vector.shape_cast %225 : vector<16xf32> to vector<16x1xf32>
    %cst_72 = arith.constant 3.200000e+01 : f32
    %227 = vector.broadcast %cst_72 : f32 to vector<16x1xf32>
    %228 = arith.divf %226, %227 : vector<16x1xf32>
    %229 = vector.broadcast %228 : vector<16x1xf32> to vector<16x32xf32>
    %230 = arith.subf %222, %229 : vector<16x32xf32>
    %231 = arith.mulf %230, %230 : vector<16x32xf32>
    %cst_73 = arith.constant dense<0.000000e+00> : vector<16xf32>
    %232 = vector.multi_reduction <add>, %231, %cst_73 [1] : vector<16x32xf32> to vector<16xf32>
    %233 = vector.shape_cast %232 : vector<16xf32> to vector<16x1xf32>
    %cst_74 = arith.constant 3.200000e+01 : f32
    %234 = vector.broadcast %cst_74 : f32 to vector<16x1xf32>
    %235 = arith.divf %233, %234 : vector<16x1xf32>
    %cst_75 = arith.constant 9.99999993E-9 : f32
    %236 = vector.broadcast %cst_75 : f32 to vector<16x1xf32>
    %237 = arith.addf %235, %236 : vector<16x1xf32>
    %238 = math.rsqrt %237 : vector<16x1xf32>
    %239 = vector.broadcast %238 : vector<16x1xf32> to vector<16x32xf32>
    %240 = arith.mulf %230, %239 : vector<16x32xf32>
    %241 = vector.broadcast %223 : vector<1x32xf32> to vector<16x32xf32>
    %242 = arith.mulf %240, %241 : vector<16x32xf32>
    %243 = vector.broadcast %224 : vector<1x32xf32> to vector<16x32xf32>
    %244 = arith.addf %242, %243 : vector<16x32xf32>
    %c0_76 = arith.constant 0 : index
    %c0_77 = arith.constant 0 : index
    %245 = vector.load %arg14[%c0_76, %c0_77] : memref<16x32xf32, #tpu.memory_space<vmem>>, vector<16x32xf32>
    tpu.vector_store %arg14[%c0_76, %c0_77], %244 {strides = array<i32>} : memref<16x32xf32, #tpu.memory_space<vmem>>, vector<16x32xf32>,
    %246 = vector.extract_strided_slice %6 {offsets = [0, 0], sizes = [1, 32], strides = [1, 1]} : vector<12x32xf32> to vector<1x32xf32>
    %247 = vector.extract_strided_slice %6 {offsets = [1, 0], sizes = [1, 32], strides = [1, 1]} : vector<12x32xf32> to vector<1x32xf32>
    %cst_78 = arith.constant dense<0.000000e+00> : vector<16xf32>
    %248 = vector.multi_reduction <add>, %0, %cst_78 [1] : vector<16x32xf32> to vector<16xf32>
    %249 = vector.shape_cast %248 : vector<16xf32> to vector<16x1xf32>
    %cst_79 = arith.constant 3.200000e+01 : f32
    %250 = vector.broadcast %cst_79 : f32 to vector<16x1xf32>
    %251 = arith.divf %249, %250 : vector<16x1xf32>
    %252 = vector.broadcast %251 : vector<16x1xf32> to vector<16x32xf32>
    %253 = arith.subf %0, %252 : vector<16x32xf32>
    %254 = arith.mulf %253, %253 : vector<16x32xf32>
    %cst_80 = arith.constant dense<0.000000e+00> : vector<16xf32>
    %255 = vector.multi_reduction <add>, %254, %cst_80 [1] : vector<16x32xf32> to vector<16xf32>
    %256 = vector.shape_cast %255 : vector<16xf32> to vector<16x1xf32>
    %cst_81 = arith.constant 3.200000e+01 : f32
    %257 = vector.broadcast %cst_81 : f32 to vector<16x1xf32>
    %258 = arith.divf %256, %257 : vector<16x1xf32>
    %cst_82 = arith.constant 9.99999993E-9 : f32
    %259 = vector.broadcast %cst_82 : f32 to vector<16x1xf32>
    %260 = arith.addf %258, %259 : vector<16x1xf32>
    %261 = math.rsqrt %260 : vector<16x1xf32>
    %262 = vector.broadcast %261 : vector<16x1xf32> to vector<16x32xf32>
    %263 = arith.mulf %253, %262 : vector<16x32xf32>
    %264 = vector.broadcast %246 : vector<1x32xf32> to vector<16x32xf32>
    %265 = arith.mulf %263, %264 : vector<16x32xf32>
    %266 = vector.broadcast %247 : vector<1x32xf32> to vector<16x32xf32>
    %267 = arith.addf %265, %266 : vector<16x32xf32>
    %268 = vector.extract_strided_slice %8 {offsets = [0, 0, 0], sizes = [1, 32, 32], strides = [1, 1, 1]} : vector<3x32x32xbf16> to vector<1x32x32xbf16>
    %269 = vector.shape_cast %268 : vector<1x32x32xbf16> to vector<32x32xbf16>
    %270 = vector.extract_strided_slice %6 {offsets = [2, 0], sizes = [1, 32], strides = [1, 1]} : vector<12x32xf32> to vector<1x32xf32>
    %271 = vector.extract_strided_slice %6 {offsets = [3, 0], sizes = [1, 32], strides = [1, 1]} : vector<12x32xf32> to vector<1x32xf32>
    %272 = vector.extract_strided_slice %6 {offsets = [4, 0], sizes = [1, 32], strides = [1, 1]} : vector<12x32xf32> to vector<1x32xf32>
    %273 = vector.extract_strided_slice %7 {offsets = [0, 0, 0, 0], sizes = [1, 1, 32, 16], strides = [1, 1, 1, 1]} : vector<2x3x32x16xbf16> to vector<1x1x32x16xbf16>
    %274 = vector.shape_cast %273 : vector<1x1x32x16xbf16> to vector<32x16xbf16>
    %275 = arith.truncf %267 : vector<16x32xf32> to vector<16x32xbf16>
    %cst_83 = arith.constant dense<0.000000e+00> : vector<16x16xf32>
    %276 = tpu.matmul %275, %274, %cst_83 {dimension_numbers = #tpu.dot_dimension_numbers<[1], [0], [0], [1], [0, 0, 1, 1], [], []>} : vector<16x32xbf16>, vector<32x16xbf16>, vector<16x16xf32> -> vector<16x16xf32>
    %277 = vector.extract_strided_slice %270 {offsets = [0, 0], sizes = [1, 16], strides = [1, 1]} : vector<1x32xf32> to vector<1x16xf32>
    %278 = vector.broadcast %277 : vector<1x16xf32> to vector<16x16xf32>
    %279 = arith.addf %276, %278 : vector<16x16xf32>
    %280 = vector.extract_strided_slice %7 {offsets = [0, 1, 0, 0], sizes = [1, 1, 32, 16], strides = [1, 1, 1, 1]} : vector<2x3x32x16xbf16> to vector<1x1x32x16xbf16>
    %281 = vector.shape_cast %280 : vector<1x1x32x16xbf16> to vector<32x16xbf16>
    %282 = arith.truncf %0 : vector<16x32xf32> to vector<16x32xbf16>
    %cst_84 = arith.constant dense<0.000000e+00> : vector<16x16xf32>
    %283 = tpu.matmul %282, %281, %cst_84 {dimension_numbers = #tpu.dot_dimension_numbers<[1], [0], [0], [1], [0, 0, 1, 1], [], []>} : vector<16x32xbf16>, vector<32x16xbf16>, vector<16x16xf32> -> vector<16x16xf32>
    %284 = vector.extract_strided_slice %271 {offsets = [0, 0], sizes = [1, 16], strides = [1, 1]} : vector<1x32xf32> to vector<1x16xf32>
    %285 = vector.broadcast %284 : vector<1x16xf32> to vector<16x16xf32>
    %286 = arith.addf %283, %285 : vector<16x16xf32>
    %287 = vector.extract_strided_slice %7 {offsets = [0, 2, 0, 0], sizes = [1, 1, 32, 16], strides = [1, 1, 1, 1]} : vector<2x3x32x16xbf16> to vector<1x1x32x16xbf16>
    %288 = vector.shape_cast %287 : vector<1x1x32x16xbf16> to vector<32x16xbf16>
    %289 = arith.truncf %0 : vector<16x32xf32> to vector<16x32xbf16>
    %cst_85 = arith.constant dense<0.000000e+00> : vector<16x16xf32>
    %290 = tpu.matmul %289, %288, %cst_85 {dimension_numbers = #tpu.dot_dimension_numbers<[1], [0], [0], [1], [0, 0, 1, 1], [], []>} : vector<16x32xbf16>, vector<32x16xbf16>, vector<16x16xf32> -> vector<16x16xf32>
    %291 = vector.extract_strided_slice %272 {offsets = [0, 0], sizes = [1, 16], strides = [1, 1]} : vector<1x32xf32> to vector<1x16xf32>
    %292 = vector.broadcast %291 : vector<1x16xf32> to vector<16x16xf32>
    %293 = arith.addf %290, %292 : vector<16x16xf32>
    %294 = arith.truncf %279 : vector<16x16xf32> to vector<16x16xbf16>
    %295 = arith.truncf %286 : vector<16x16xf32> to vector<16x16xbf16>
    %cst_86 = arith.constant dense<0.000000e+00> : vector<16x16xf32>
    %296 = tpu.matmul %294, %295, %cst_86 {dimension_numbers = #tpu.dot_dimension_numbers<[1], [1], [0], [0], [0, 0, 1, 0], [], []>} : vector<16x16xbf16>, vector<16x16xbf16>, vector<16x16xf32> -> vector<16x16xf32>
    %cst_87 = arith.constant 2.500000e-01 : f32
    %297 = vector.broadcast %cst_87 : f32 to vector<16x16xf32>
    %298 = arith.mulf %296, %297 : vector<16x16xf32>
    %299 = arith.addf %298, %23 : vector<16x16xf32>
    %cst_88 = arith.constant dense<0xFF800000> : vector<16xf32>
    %300 = vector.multi_reduction <maximumf>, %299, %cst_88 [1] : vector<16x16xf32> to vector<16xf32>
    %301 = vector.shape_cast %300 : vector<16xf32> to vector<16x1xf32>
    %302 = vector.broadcast %301 : vector<16x1xf32> to vector<16x16xf32>
    %303 = arith.subf %299, %302 : vector<16x16xf32>
    %304 = math.exp %303 : vector<16x16xf32>
    %cst_89 = arith.constant dense<0.000000e+00> : vector<16xf32>
    %305 = vector.multi_reduction <add>, %304, %cst_89 [1] : vector<16x16xf32> to vector<16xf32>
    %306 = vector.shape_cast %305 : vector<16xf32> to vector<16x1xf32>
    %307 = tpu.reciprocal %306 {approx = true} : vector<16x1xf32> -> vector<16x1xf32>
    %308 = vector.broadcast %307 : vector<16x1xf32> to vector<16x16xf32>
    %309 = arith.mulf %304, %308 : vector<16x16xf32>
    %310 = arith.truncf %309 : vector<16x16xf32> to vector<16x16xbf16>
    %311 = arith.truncf %293 : vector<16x16xf32> to vector<16x16xbf16>
    %cst_90 = arith.constant dense<0.000000e+00> : vector<16x16xf32>
    %312 = tpu.matmul %310, %311, %cst_90 {dimension_numbers = #tpu.dot_dimension_numbers<[1], [0], [0], [1], [0, 0, 1, 1], [], []>} : vector<16x16xbf16>, vector<16x16xbf16>, vector<16x16xf32> -> vector<16x16xf32>
    %313 = vector.extract_strided_slice %7 {offsets = [1, 0, 0, 0], sizes = [1, 1, 32, 16], strides = [1, 1, 1, 1]} : vector<2x3x32x16xbf16> to vector<1x1x32x16xbf16>
    %314 = vector.shape_cast %313 : vector<1x1x32x16xbf16> to vector<32x16xbf16>
    %315 = arith.truncf %267 : vector<16x32xf32> to vector<16x32xbf16>
    %cst_91 = arith.constant dense<0.000000e+00> : vector<16x16xf32>
    %316 = tpu.matmul %315, %314, %cst_91 {dimension_numbers = #tpu.dot_dimension_numbers<[1], [0], [0], [1], [0, 0, 1, 1], [], []>} : vector<16x32xbf16>, vector<32x16xbf16>, vector<16x16xf32> -> vector<16x16xf32>
    %317 = vector.extract_strided_slice %270 {offsets = [0, 16], sizes = [1, 16], strides = [1, 1]} : vector<1x32xf32> to vector<1x16xf32>
    %318 = vector.broadcast %317 : vector<1x16xf32> to vector<16x16xf32>
    %319 = arith.addf %316, %318 : vector<16x16xf32>
    %320 = vector.extract_strided_slice %7 {offsets = [1, 1, 0, 0], sizes = [1, 1, 32, 16], strides = [1, 1, 1, 1]} : vector<2x3x32x16xbf16> to vector<1x1x32x16xbf16>
    %321 = vector.shape_cast %320 : vector<1x1x32x16xbf16> to vector<32x16xbf16>
    %322 = arith.truncf %0 : vector<16x32xf32> to vector<16x32xbf16>
    %cst_92 = arith.constant dense<0.000000e+00> : vector<16x16xf32>
    %323 = tpu.matmul %322, %321, %cst_92 {dimension_numbers = #tpu.dot_dimension_numbers<[1], [0], [0], [1], [0, 0, 1, 1], [], []>} : vector<16x32xbf16>, vector<32x16xbf16>, vector<16x16xf32> -> vector<16x16xf32>
    %324 = vector.extract_strided_slice %271 {offsets = [0, 16], sizes = [1, 16], strides = [1, 1]} : vector<1x32xf32> to vector<1x16xf32>
    %325 = vector.broadcast %324 : vector<1x16xf32> to vector<16x16xf32>
    %326 = arith.addf %323, %325 : vector<16x16xf32>
    %327 = vector.extract_strided_slice %7 {offsets = [1, 2, 0, 0], sizes = [1, 1, 32, 16], strides = [1, 1, 1, 1]} : vector<2x3x32x16xbf16> to vector<1x1x32x16xbf16>
    %328 = vector.shape_cast %327 : vector<1x1x32x16xbf16> to vector<32x16xbf16>
    %329 = arith.truncf %0 : vector<16x32xf32> to vector<16x32xbf16>
    %cst_93 = arith.constant dense<0.000000e+00> : vector<16x16xf32>
    %330 = tpu.matmul %329, %328, %cst_93 {dimension_numbers = #tpu.dot_dimension_numbers<[1], [0], [0], [1], [0, 0, 1, 1], [], []>} : vector<16x32xbf16>, vector<32x16xbf16>, vector<16x16xf32> -> vector<16x16xf32>
    %331 = vector.extract_strided_slice %272 {offsets = [0, 16], sizes = [1, 16], strides = [1, 1]} : vector<1x32xf32> to vector<1x16xf32>
    %332 = vector.broadcast %331 : vector<1x16xf32> to vector<16x16xf32>
    %333 = arith.addf %330, %332 : vector<16x16xf32>
    %334 = arith.truncf %319 : vector<16x16xf32> to vector<16x16xbf16>
    %335 = arith.truncf %326 : vector<16x16xf32> to vector<16x16xbf16>
    %cst_94 = arith.constant dense<0.000000e+00> : vector<16x16xf32>
    %336 = tpu.matmul %334, %335, %cst_94 {dimension_numbers = #tpu.dot_dimension_numbers<[1], [1], [0], [0], [0, 0, 1, 0], [], []>} : vector<16x16xbf16>, vector<16x16xbf16>, vector<16x16xf32> -> vector<16x16xf32>
    %cst_95 = arith.constant 2.500000e-01 : f32
    %337 = vector.broadcast %cst_95 : f32 to vector<16x16xf32>
    %338 = arith.mulf %336, %337 : vector<16x16xf32>
    %339 = arith.addf %338, %23 : vector<16x16xf32>
    %cst_96 = arith.constant dense<0xFF800000> : vector<16xf32>
    %340 = vector.multi_reduction <maximumf>, %339, %cst_96 [1] : vector<16x16xf32> to vector<16xf32>
    %341 = vector.shape_cast %340 : vector<16xf32> to vector<16x1xf32>
    %342 = vector.broadcast %341 : vector<16x1xf32> to vector<16x16xf32>
    %343 = arith.subf %339, %342 : vector<16x16xf32>
    %344 = math.exp %343 : vector<16x16xf32>
    %cst_97 = arith.constant dense<0.000000e+00> : vector<16xf32>
    %345 = vector.multi_reduction <add>, %344, %cst_97 [1] : vector<16x16xf32> to vector<16xf32>
    %346 = vector.shape_cast %345 : vector<16xf32> to vector<16x1xf32>
    %347 = tpu.reciprocal %346 {approx = true} : vector<16x1xf32> -> vector<16x1xf32>
    %348 = vector.broadcast %347 : vector<16x1xf32> to vector<16x16xf32>
    %349 = arith.mulf %344, %348 : vector<16x16xf32>
    %350 = arith.truncf %349 : vector<16x16xf32> to vector<16x16xbf16>
    %351 = arith.truncf %333 : vector<16x16xf32> to vector<16x16xbf16>
    %cst_98 = arith.constant dense<0.000000e+00> : vector<16x16xf32>
    %352 = tpu.matmul %350, %351, %cst_98 {dimension_numbers = #tpu.dot_dimension_numbers<[1], [0], [0], [1], [0, 0, 1, 1], [], []>} : vector<16x16xbf16>, vector<16x16xbf16>, vector<16x16xf32> -> vector<16x16xf32>
    %353 = tpu.concatenate %312, %352 in 1 : vector<16x16xf32>, vector<16x16xf32> -> vector<16x32xf32>
    %354 = arith.truncf %353 : vector<16x32xf32> to vector<16x32xbf16>
    %cst_99 = arith.constant dense<0.000000e+00> : vector<16x32xf32>
    %355 = tpu.matmul %354, %269, %cst_99 {dimension_numbers = #tpu.dot_dimension_numbers<[1], [0], [0], [1], [0, 0, 1, 1], [], []>} : vector<16x32xbf16>, vector<32x32xbf16>, vector<16x32xf32> -> vector<16x32xf32>
    %356 = vector.extract_strided_slice %6 {offsets = [5, 0], sizes = [1, 32], strides = [1, 1]} : vector<12x32xf32> to vector<1x32xf32>
    %357 = vector.broadcast %356 : vector<1x32xf32> to vector<16x32xf32>
    %358 = arith.addf %355, %357 : vector<16x32xf32>
    %359 = arith.addf %358, %267 : vector<16x32xf32>
    %360 = vector.extract_strided_slice %6 {offsets = [6, 0], sizes = [1, 32], strides = [1, 1]} : vector<12x32xf32> to vector<1x32xf32>
    %361 = vector.extract_strided_slice %6 {offsets = [7, 0], sizes = [1, 32], strides = [1, 1]} : vector<12x32xf32> to vector<1x32xf32>
    %cst_100 = arith.constant dense<0.000000e+00> : vector<16xf32>
    %362 = vector.multi_reduction <add>, %359, %cst_100 [1] : vector<16x32xf32> to vector<16xf32>
    %363 = vector.shape_cast %362 : vector<16xf32> to vector<16x1xf32>
    %cst_101 = arith.constant 3.200000e+01 : f32
    %364 = vector.broadcast %cst_101 : f32 to vector<16x1xf32>
    %365 = arith.divf %363, %364 : vector<16x1xf32>
    %366 = vector.broadcast %365 : vector<16x1xf32> to vector<16x32xf32>
    %367 = arith.subf %359, %366 : vector<16x32xf32>
    %368 = arith.mulf %367, %367 : vector<16x32xf32>
    %cst_102 = arith.constant dense<0.000000e+00> : vector<16xf32>
    %369 = vector.multi_reduction <add>, %368, %cst_102 [1] : vector<16x32xf32> to vector<16xf32>
    %370 = vector.shape_cast %369 : vector<16xf32> to vector<16x1xf32>
    %cst_103 = arith.constant 3.200000e+01 : f32
    %371 = vector.broadcast %cst_103 : f32 to vector<16x1xf32>
    %372 = arith.divf %370, %371 : vector<16x1xf32>
    %cst_104 = arith.constant 9.99999993E-9 : f32
    %373 = vector.broadcast %cst_104 : f32 to vector<16x1xf32>
    %374 = arith.addf %372, %373 : vector<16x1xf32>
    %375 = math.rsqrt %374 : vector<16x1xf32>
    %376 = vector.broadcast %375 : vector<16x1xf32> to vector<16x32xf32>
    %377 = arith.mulf %367, %376 : vector<16x32xf32>
    %378 = vector.broadcast %360 : vector<1x32xf32> to vector<16x32xf32>
    %379 = arith.mulf %377, %378 : vector<16x32xf32>
    %380 = vector.broadcast %361 : vector<1x32xf32> to vector<16x32xf32>
    %381 = arith.addf %379, %380 : vector<16x32xf32>
    %382 = vector.extract_strided_slice %8 {offsets = [1, 0, 0], sizes = [1, 32, 32], strides = [1, 1, 1]} : vector<3x32x32xbf16> to vector<1x32x32xbf16>
    %383 = vector.shape_cast %382 : vector<1x32x32xbf16> to vector<32x32xbf16>
    %384 = arith.truncf %381 : vector<16x32xf32> to vector<16x32xbf16>
    %cst_105 = arith.constant dense<0.000000e+00> : vector<16x32xf32>
    %385 = tpu.matmul %384, %383, %cst_105 {dimension_numbers = #tpu.dot_dimension_numbers<[1], [0], [0], [1], [0, 0, 1, 1], [], []>} : vector<16x32xbf16>, vector<32x32xbf16>, vector<16x32xf32> -> vector<16x32xf32>
    %386 = vector.extract_strided_slice %6 {offsets = [8, 0], sizes = [1, 32], strides = [1, 1]} : vector<12x32xf32> to vector<1x32xf32>
    %387 = vector.broadcast %386 : vector<1x32xf32> to vector<16x32xf32>
    %388 = arith.addf %385, %387 : vector<16x32xf32>
    %cst_106 = arith.constant 0.000000e+00 : f32
    %389 = vector.broadcast %cst_106 : f32 to vector<16x32xf32>
    %390 = arith.maximumf %388, %389 : vector<16x32xf32>
    %391 = vector.extract_strided_slice %8 {offsets = [2, 0, 0], sizes = [1, 32, 32], strides = [1, 1, 1]} : vector<3x32x32xbf16> to vector<1x32x32xbf16>
    %392 = vector.shape_cast %391 : vector<1x32x32xbf16> to vector<32x32xbf16>
    %393 = arith.truncf %390 : vector<16x32xf32> to vector<16x32xbf16>
    %cst_107 = arith.constant dense<0.000000e+00> : vector<16x32xf32>
    %394 = tpu.matmul %393, %392, %cst_107 {dimension_numbers = #tpu.dot_dimension_numbers<[1], [0], [0], [1], [0, 0, 1, 1], [], []>} : vector<16x32xbf16>, vector<32x32xbf16>, vector<16x32xf32> -> vector<16x32xf32>
    %395 = vector.extract_strided_slice %6 {offsets = [9, 0], sizes = [1, 32], strides = [1, 1]} : vector<12x32xf32> to vector<1x32xf32>
    %396 = vector.broadcast %395 : vector<1x32xf32> to vector<16x32xf32>
    %397 = arith.addf %394, %396 : vector<16x32xf32>
    %398 = arith.addf %397, %381 : vector<16x32xf32>
    %399 = vector.broadcast %4 : vector<16x1xf32> to vector<16x32xf32>
    %400 = arith.mulf %398, %399 : vector<16x32xf32>
    %401 = vector.extract_strided_slice %6 {offsets = [10, 0], sizes = [1, 32], strides = [1, 1]} : vector<12x32xf32> to vector<1x32xf32>
    %402 = vector.extract_strided_slice %6 {offsets = [11, 0], sizes = [1, 32], strides = [1, 1]} : vector<12x32xf32> to vector<1x32xf32>
    %cst_108 = arith.constant dense<0.000000e+00> : vector<16xf32>
    %403 = vector.multi_reduction <add>, %400, %cst_108 [1] : vector<16x32xf32> to vector<16xf32>
    %404 = vector.shape_cast %403 : vector<16xf32> to vector<16x1xf32>
    %cst_109 = arith.constant 3.200000e+01 : f32
    %405 = vector.broadcast %cst_109 : f32 to vector<16x1xf32>
    %406 = arith.divf %404, %405 : vector<16x1xf32>
    %407 = vector.broadcast %406 : vector<16x1xf32> to vector<16x32xf32>
    %408 = arith.subf %400, %407 : vector<16x32xf32>
    %409 = arith.mulf %408, %408 : vector<16x32xf32>
    %cst_110 = arith.constant dense<0.000000e+00> : vector<16xf32>
    %410 = vector.multi_reduction <add>, %409, %cst_110 [1] : vector<16x32xf32> to vector<16xf32>
    %411 = vector.shape_cast %410 : vector<16xf32> to vector<16x1xf32>
    %cst_111 = arith.constant 3.200000e+01 : f32
    %412 = vector.broadcast %cst_111 : f32 to vector<16x1xf32>
    %413 = arith.divf %411, %412 : vector<16x1xf32>
    %cst_112 = arith.constant 9.99999993E-9 : f32
    %414 = vector.broadcast %cst_112 : f32 to vector<16x1xf32>
    %415 = arith.addf %413, %414 : vector<16x1xf32>
    %416 = math.rsqrt %415 : vector<16x1xf32>
    %417 = vector.broadcast %416 : vector<16x1xf32> to vector<16x32xf32>
    %418 = arith.mulf %408, %417 : vector<16x32xf32>
    %419 = vector.broadcast %401 : vector<1x32xf32> to vector<16x32xf32>
    %420 = arith.mulf %418, %419 : vector<16x32xf32>
    %421 = vector.broadcast %402 : vector<1x32xf32> to vector<16x32xf32>
    %422 = arith.addf %420, %421 : vector<16x32xf32>
    %c0_113 = arith.constant 0 : index
    %c0_114 = arith.constant 0 : index
    %423 = vector.load %arg13[%c0_113, %c0_114] : memref<16x32xf32, #tpu.memory_space<vmem>>, vector<16x32xf32>
    tpu.vector_store %arg13[%c0_113, %c0_114], %422 {strides = array<i32>} : memref<16x32xf32, #tpu.memory_space<vmem>>, vector<16x32xf32>,
    %424 = vector.extract_strided_slice %6 {offsets = [0, 0], sizes = [1, 32], strides = [1, 1]} : vector<12x32xf32> to vector<1x32xf32>
    %425 = vector.extract_strided_slice %6 {offsets = [1, 0], sizes = [1, 32], strides = [1, 1]} : vector<12x32xf32> to vector<1x32xf32>
    %cst_115 = arith.constant dense<0.000000e+00> : vector<16xf32>
    %426 = vector.multi_reduction <add>, %1, %cst_115 [1] : vector<16x32xf32> to vector<16xf32>
    %427 = vector.shape_cast %426 : vector<16xf32> to vector<16x1xf32>
    %cst_116 = arith.constant 3.200000e+01 : f32
    %428 = vector.broadcast %cst_116 : f32 to vector<16x1xf32>
    %429 = arith.divf %427, %428 : vector<16x1xf32>
    %430 = vector.broadcast %429 : vector<16x1xf32> to vector<16x32xf32>
    %431 = arith.subf %1, %430 : vector<16x32xf32>
    %432 = arith.mulf %431, %431 : vector<16x32xf32>
    %cst_117 = arith.constant dense<0.000000e+00> : vector<16xf32>
    %433 = vector.multi_reduction <add>, %432, %cst_117 [1] : vector<16x32xf32> to vector<16xf32>
    %434 = vector.shape_cast %433 : vector<16xf32> to vector<16x1xf32>
    %cst_118 = arith.constant 3.200000e+01 : f32
    %435 = vector.broadcast %cst_118 : f32 to vector<16x1xf32>
    %436 = arith.divf %434, %435 : vector<16x1xf32>
    %cst_119 = arith.constant 9.99999993E-9 : f32
    %437 = vector.broadcast %cst_119 : f32 to vector<16x1xf32>
    %438 = arith.addf %436, %437 : vector<16x1xf32>
    %439 = math.rsqrt %438 : vector<16x1xf32>
    %440 = vector.broadcast %439 : vector<16x1xf32> to vector<16x32xf32>
    %441 = arith.mulf %431, %440 : vector<16x32xf32>
    %442 = vector.broadcast %424 : vector<1x32xf32> to vector<16x32xf32>
    %443 = arith.mulf %441, %442 : vector<16x32xf32>
    %444 = vector.broadcast %425 : vector<1x32xf32> to vector<16x32xf32>
    %445 = arith.addf %443, %444 : vector<16x32xf32>
    %446 = vector.extract_strided_slice %8 {offsets = [0, 0, 0], sizes = [1, 32, 32], strides = [1, 1, 1]} : vector<3x32x32xbf16> to vector<1x32x32xbf16>
    %447 = vector.shape_cast %446 : vector<1x32x32xbf16> to vector<32x32xbf16>
    %448 = vector.extract_strided_slice %6 {offsets = [2, 0], sizes = [1, 32], strides = [1, 1]} : vector<12x32xf32> to vector<1x32xf32>
    %449 = vector.extract_strided_slice %6 {offsets = [3, 0], sizes = [1, 32], strides = [1, 1]} : vector<12x32xf32> to vector<1x32xf32>
    %450 = vector.extract_strided_slice %6 {offsets = [4, 0], sizes = [1, 32], strides = [1, 1]} : vector<12x32xf32> to vector<1x32xf32>
    %451 = vector.extract_strided_slice %7 {offsets = [0, 0, 0, 0], sizes = [1, 1, 32, 16], strides = [1, 1, 1, 1]} : vector<2x3x32x16xbf16> to vector<1x1x32x16xbf16>
    %452 = vector.shape_cast %451 : vector<1x1x32x16xbf16> to vector<32x16xbf16>
    %453 = arith.truncf %445 : vector<16x32xf32> to vector<16x32xbf16>
    %cst_120 = arith.constant dense<0.000000e+00> : vector<16x16xf32>
    %454 = tpu.matmul %453, %452, %cst_120 {dimension_numbers = #tpu.dot_dimension_numbers<[1], [0], [0], [1], [0, 0, 1, 1], [], []>} : vector<16x32xbf16>, vector<32x16xbf16>, vector<16x16xf32> -> vector<16x16xf32>
    %455 = vector.extract_strided_slice %448 {offsets = [0, 0], sizes = [1, 16], strides = [1, 1]} : vector<1x32xf32> to vector<1x16xf32>
    %456 = vector.broadcast %455 : vector<1x16xf32> to vector<16x16xf32>
    %457 = arith.addf %454, %456 : vector<16x16xf32>
    %458 = vector.extract_strided_slice %7 {offsets = [0, 1, 0, 0], sizes = [1, 1, 32, 16], strides = [1, 1, 1, 1]} : vector<2x3x32x16xbf16> to vector<1x1x32x16xbf16>
    %459 = vector.shape_cast %458 : vector<1x1x32x16xbf16> to vector<32x16xbf16>
    %460 = arith.truncf %1 : vector<16x32xf32> to vector<16x32xbf16>
    %cst_121 = arith.constant dense<0.000000e+00> : vector<16x16xf32>
    %461 = tpu.matmul %460, %459, %cst_121 {dimension_numbers = #tpu.dot_dimension_numbers<[1], [0], [0], [1], [0, 0, 1, 1], [], []>} : vector<16x32xbf16>, vector<32x16xbf16>, vector<16x16xf32> -> vector<16x16xf32>
    %462 = vector.extract_strided_slice %449 {offsets = [0, 0], sizes = [1, 16], strides = [1, 1]} : vector<1x32xf32> to vector<1x16xf32>
    %463 = vector.broadcast %462 : vector<1x16xf32> to vector<16x16xf32>
    %464 = arith.addf %461, %463 : vector<16x16xf32>
    %465 = vector.extract_strided_slice %7 {offsets = [0, 2, 0, 0], sizes = [1, 1, 32, 16], strides = [1, 1, 1, 1]} : vector<2x3x32x16xbf16> to vector<1x1x32x16xbf16>
    %466 = vector.shape_cast %465 : vector<1x1x32x16xbf16> to vector<32x16xbf16>
    %467 = arith.truncf %1 : vector<16x32xf32> to vector<16x32xbf16>
    %cst_122 = arith.constant dense<0.000000e+00> : vector<16x16xf32>
    %468 = tpu.matmul %467, %466, %cst_122 {dimension_numbers = #tpu.dot_dimension_numbers<[1], [0], [0], [1], [0, 0, 1, 1], [], []>} : vector<16x32xbf16>, vector<32x16xbf16>, vector<16x16xf32> -> vector<16x16xf32>
    %469 = vector.extract_strided_slice %450 {offsets = [0, 0], sizes = [1, 16], strides = [1, 1]} : vector<1x32xf32> to vector<1x16xf32>
    %470 = vector.broadcast %469 : vector<1x16xf32> to vector<16x16xf32>
    %471 = arith.addf %468, %470 : vector<16x16xf32>
    %472 = arith.truncf %457 : vector<16x16xf32> to vector<16x16xbf16>
    %473 = arith.truncf %464 : vector<16x16xf32> to vector<16x16xbf16>
    %cst_123 = arith.constant dense<0.000000e+00> : vector<16x16xf32>
    %474 = tpu.matmul %472, %473, %cst_123 {dimension_numbers = #tpu.dot_dimension_numbers<[1], [1], [0], [0], [0, 0, 1, 0], [], []>} : vector<16x16xbf16>, vector<16x16xbf16>, vector<16x16xf32> -> vector<16x16xf32>
    %cst_124 = arith.constant 2.500000e-01 : f32
    %475 = vector.broadcast %cst_124 : f32 to vector<16x16xf32>
    %476 = arith.mulf %474, %475 : vector<16x16xf32>
    %477 = arith.addf %476, %23 : vector<16x16xf32>
    %478 = arith.addf %477, %131 : vector<16x16xf32>
    %cst_125 = arith.constant dense<0xFF800000> : vector<16xf32>
    %479 = vector.multi_reduction <maximumf>, %478, %cst_125 [1] : vector<16x16xf32> to vector<16xf32>
    %480 = vector.shape_cast %479 : vector<16xf32> to vector<16x1xf32>
    %481 = vector.broadcast %480 : vector<16x1xf32> to vector<16x16xf32>
    %482 = arith.subf %478, %481 : vector<16x16xf32>
    %483 = math.exp %482 : vector<16x16xf32>
    %cst_126 = arith.constant dense<0.000000e+00> : vector<16xf32>
    %484 = vector.multi_reduction <add>, %483, %cst_126 [1] : vector<16x16xf32> to vector<16xf32>
    %485 = vector.shape_cast %484 : vector<16xf32> to vector<16x1xf32>
    %486 = tpu.reciprocal %485 {approx = true} : vector<16x1xf32> -> vector<16x1xf32>
    %487 = vector.broadcast %486 : vector<16x1xf32> to vector<16x16xf32>
    %488 = arith.mulf %483, %487 : vector<16x16xf32>
    %489 = arith.truncf %488 : vector<16x16xf32> to vector<16x16xbf16>
    %490 = arith.truncf %471 : vector<16x16xf32> to vector<16x16xbf16>
    %cst_127 = arith.constant dense<0.000000e+00> : vector<16x16xf32>
    %491 = tpu.matmul %489, %490, %cst_127 {dimension_numbers = #tpu.dot_dimension_numbers<[1], [0], [0], [1], [0, 0, 1, 1], [], []>} : vector<16x16xbf16>, vector<16x16xbf16>, vector<16x16xf32> -> vector<16x16xf32>
    %492 = vector.extract_strided_slice %7 {offsets = [1, 0, 0, 0], sizes = [1, 1, 32, 16], strides = [1, 1, 1, 1]} : vector<2x3x32x16xbf16> to vector<1x1x32x16xbf16>
    %493 = vector.shape_cast %492 : vector<1x1x32x16xbf16> to vector<32x16xbf16>
    %494 = arith.truncf %445 : vector<16x32xf32> to vector<16x32xbf16>
    %cst_128 = arith.constant dense<0.000000e+00> : vector<16x16xf32>
    %495 = tpu.matmul %494, %493, %cst_128 {dimension_numbers = #tpu.dot_dimension_numbers<[1], [0], [0], [1], [0, 0, 1, 1], [], []>} : vector<16x32xbf16>, vector<32x16xbf16>, vector<16x16xf32> -> vector<16x16xf32>
    %496 = vector.extract_strided_slice %448 {offsets = [0, 16], sizes = [1, 16], strides = [1, 1]} : vector<1x32xf32> to vector<1x16xf32>
    %497 = vector.broadcast %496 : vector<1x16xf32> to vector<16x16xf32>
    %498 = arith.addf %495, %497 : vector<16x16xf32>
    %499 = vector.extract_strided_slice %7 {offsets = [1, 1, 0, 0], sizes = [1, 1, 32, 16], strides = [1, 1, 1, 1]} : vector<2x3x32x16xbf16> to vector<1x1x32x16xbf16>
    %500 = vector.shape_cast %499 : vector<1x1x32x16xbf16> to vector<32x16xbf16>
    %501 = arith.truncf %1 : vector<16x32xf32> to vector<16x32xbf16>
    %cst_129 = arith.constant dense<0.000000e+00> : vector<16x16xf32>
    %502 = tpu.matmul %501, %500, %cst_129 {dimension_numbers = #tpu.dot_dimension_numbers<[1], [0], [0], [1], [0, 0, 1, 1], [], []>} : vector<16x32xbf16>, vector<32x16xbf16>, vector<16x16xf32> -> vector<16x16xf32>
    %503 = vector.extract_strided_slice %449 {offsets = [0, 16], sizes = [1, 16], strides = [1, 1]} : vector<1x32xf32> to vector<1x16xf32>
    %504 = vector.broadcast %503 : vector<1x16xf32> to vector<16x16xf32>
    %505 = arith.addf %502, %504 : vector<16x16xf32>
    %506 = vector.extract_strided_slice %7 {offsets = [1, 2, 0, 0], sizes = [1, 1, 32, 16], strides = [1, 1, 1, 1]} : vector<2x3x32x16xbf16> to vector<1x1x32x16xbf16>
    %507 = vector.shape_cast %506 : vector<1x1x32x16xbf16> to vector<32x16xbf16>
    %508 = arith.truncf %1 : vector<16x32xf32> to vector<16x32xbf16>
    %cst_130 = arith.constant dense<0.000000e+00> : vector<16x16xf32>
    %509 = tpu.matmul %508, %507, %cst_130 {dimension_numbers = #tpu.dot_dimension_numbers<[1], [0], [0], [1], [0, 0, 1, 1], [], []>} : vector<16x32xbf16>, vector<32x16xbf16>, vector<16x16xf32> -> vector<16x16xf32>
    %510 = vector.extract_strided_slice %450 {offsets = [0, 16], sizes = [1, 16], strides = [1, 1]} : vector<1x32xf32> to vector<1x16xf32>
    %511 = vector.broadcast %510 : vector<1x16xf32> to vector<16x16xf32>
    %512 = arith.addf %509, %511 : vector<16x16xf32>
    %513 = arith.truncf %498 : vector<16x16xf32> to vector<16x16xbf16>
    %514 = arith.truncf %505 : vector<16x16xf32> to vector<16x16xbf16>
    %cst_131 = arith.constant dense<0.000000e+00> : vector<16x16xf32>
    %515 = tpu.matmul %513, %514, %cst_131 {dimension_numbers = #tpu.dot_dimension_numbers<[1], [1], [0], [0], [0, 0, 1, 0], [], []>} : vector<16x16xbf16>, vector<16x16xbf16>, vector<16x16xf32> -> vector<16x16xf32>
    %cst_132 = arith.constant 2.500000e-01 : f32
    %516 = vector.broadcast %cst_132 : f32 to vector<16x16xf32>
    %517 = arith.mulf %515, %516 : vector<16x16xf32>
    %518 = arith.addf %517, %23 : vector<16x16xf32>
    %519 = arith.addf %518, %171 : vector<16x16xf32>
    %cst_133 = arith.constant dense<0xFF800000> : vector<16xf32>
    %520 = vector.multi_reduction <maximumf>, %519, %cst_133 [1] : vector<16x16xf32> to vector<16xf32>
    %521 = vector.shape_cast %520 : vector<16xf32> to vector<16x1xf32>
    %522 = vector.broadcast %521 : vector<16x1xf32> to vector<16x16xf32>
    %523 = arith.subf %519, %522 : vector<16x16xf32>
    %524 = math.exp %523 : vector<16x16xf32>
    %cst_134 = arith.constant dense<0.000000e+00> : vector<16xf32>
    %525 = vector.multi_reduction <add>, %524, %cst_134 [1] : vector<16x16xf32> to vector<16xf32>
    %526 = vector.shape_cast %525 : vector<16xf32> to vector<16x1xf32>
    %527 = tpu.reciprocal %526 {approx = true} : vector<16x1xf32> -> vector<16x1xf32>
    %528 = vector.broadcast %527 : vector<16x1xf32> to vector<16x16xf32>
    %529 = arith.mulf %524, %528 : vector<16x16xf32>
    %530 = arith.truncf %529 : vector<16x16xf32> to vector<16x16xbf16>
    %531 = arith.truncf %512 : vector<16x16xf32> to vector<16x16xbf16>
    %cst_135 = arith.constant dense<0.000000e+00> : vector<16x16xf32>
    %532 = tpu.matmul %530, %531, %cst_135 {dimension_numbers = #tpu.dot_dimension_numbers<[1], [0], [0], [1], [0, 0, 1, 1], [], []>} : vector<16x16xbf16>, vector<16x16xbf16>, vector<16x16xf32> -> vector<16x16xf32>
    %533 = tpu.concatenate %491, %532 in 1 : vector<16x16xf32>, vector<16x16xf32> -> vector<16x32xf32>
    %534 = arith.truncf %533 : vector<16x32xf32> to vector<16x32xbf16>
    %cst_136 = arith.constant dense<0.000000e+00> : vector<16x32xf32>
    %535 = tpu.matmul %534, %447, %cst_136 {dimension_numbers = #tpu.dot_dimension_numbers<[1], [0], [0], [1], [0, 0, 1, 1], [], []>} : vector<16x32xbf16>, vector<32x32xbf16>, vector<16x32xf32> -> vector<16x32xf32>
    %536 = vector.extract_strided_slice %6 {offsets = [5, 0], sizes = [1, 32], strides = [1, 1]} : vector<12x32xf32> to vector<1x32xf32>
    %537 = vector.broadcast %536 : vector<1x32xf32> to vector<16x32xf32>
    %538 = arith.addf %535, %537 : vector<16x32xf32>
    %539 = arith.addf %538, %445 : vector<16x32xf32>
    %540 = vector.extract_strided_slice %6 {offsets = [6, 0], sizes = [1, 32], strides = [1, 1]} : vector<12x32xf32> to vector<1x32xf32>
    %541 = vector.extract_strided_slice %6 {offsets = [7, 0], sizes = [1, 32], strides = [1, 1]} : vector<12x32xf32> to vector<1x32xf32>
    %cst_137 = arith.constant dense<0.000000e+00> : vector<16xf32>
    %542 = vector.multi_reduction <add>, %539, %cst_137 [1] : vector<16x32xf32> to vector<16xf32>
    %543 = vector.shape_cast %542 : vector<16xf32> to vector<16x1xf32>
    %cst_138 = arith.constant 3.200000e+01 : f32
    %544 = vector.broadcast %cst_138 : f32 to vector<16x1xf32>
    %545 = arith.divf %543, %544 : vector<16x1xf32>
    %546 = vector.broadcast %545 : vector<16x1xf32> to vector<16x32xf32>
    %547 = arith.subf %539, %546 : vector<16x32xf32>
    %548 = arith.mulf %547, %547 : vector<16x32xf32>
    %cst_139 = arith.constant dense<0.000000e+00> : vector<16xf32>
    %549 = vector.multi_reduction <add>, %548, %cst_139 [1] : vector<16x32xf32> to vector<16xf32>
    %550 = vector.shape_cast %549 : vector<16xf32> to vector<16x1xf32>
    %cst_140 = arith.constant 3.200000e+01 : f32
    %551 = vector.broadcast %cst_140 : f32 to vector<16x1xf32>
    %552 = arith.divf %550, %551 : vector<16x1xf32>
    %cst_141 = arith.constant 9.99999993E-9 : f32
    %553 = vector.broadcast %cst_141 : f32 to vector<16x1xf32>
    %554 = arith.addf %552, %553 : vector<16x1xf32>
    %555 = math.rsqrt %554 : vector<16x1xf32>
    %556 = vector.broadcast %555 : vector<16x1xf32> to vector<16x32xf32>
    %557 = arith.mulf %547, %556 : vector<16x32xf32>
    %558 = vector.broadcast %540 : vector<1x32xf32> to vector<16x32xf32>
    %559 = arith.mulf %557, %558 : vector<16x32xf32>
    %560 = vector.broadcast %541 : vector<1x32xf32> to vector<16x32xf32>
    %561 = arith.addf %559, %560 : vector<16x32xf32>
    %562 = vector.extract_strided_slice %8 {offsets = [1, 0, 0], sizes = [1, 32, 32], strides = [1, 1, 1]} : vector<3x32x32xbf16> to vector<1x32x32xbf16>
    %563 = vector.shape_cast %562 : vector<1x32x32xbf16> to vector<32x32xbf16>
    %564 = arith.truncf %561 : vector<16x32xf32> to vector<16x32xbf16>
    %cst_142 = arith.constant dense<0.000000e+00> : vector<16x32xf32>
    %565 = tpu.matmul %564, %563, %cst_142 {dimension_numbers = #tpu.dot_dimension_numbers<[1], [0], [0], [1], [0, 0, 1, 1], [], []>} : vector<16x32xbf16>, vector<32x32xbf16>, vector<16x32xf32> -> vector<16x32xf32>
    %566 = vector.extract_strided_slice %6 {offsets = [8, 0], sizes = [1, 32], strides = [1, 1]} : vector<12x32xf32> to vector<1x32xf32>
    %567 = vector.broadcast %566 : vector<1x32xf32> to vector<16x32xf32>
    %568 = arith.addf %565, %567 : vector<16x32xf32>
    %cst_143 = arith.constant 0.000000e+00 : f32
    %569 = vector.broadcast %cst_143 : f32 to vector<16x32xf32>
    %570 = arith.maximumf %568, %569 : vector<16x32xf32>
    %571 = vector.extract_strided_slice %8 {offsets = [2, 0, 0], sizes = [1, 32, 32], strides = [1, 1, 1]} : vector<3x32x32xbf16> to vector<1x32x32xbf16>
    %572 = vector.shape_cast %571 : vector<1x32x32xbf16> to vector<32x32xbf16>
    %573 = arith.truncf %570 : vector<16x32xf32> to vector<16x32xbf16>
    %cst_144 = arith.constant dense<0.000000e+00> : vector<16x32xf32>
    %574 = tpu.matmul %573, %572, %cst_144 {dimension_numbers = #tpu.dot_dimension_numbers<[1], [0], [0], [1], [0, 0, 1, 1], [], []>} : vector<16x32xbf16>, vector<32x32xbf16>, vector<16x32xf32> -> vector<16x32xf32>
    %575 = vector.extract_strided_slice %6 {offsets = [9, 0], sizes = [1, 32], strides = [1, 1]} : vector<12x32xf32> to vector<1x32xf32>
    %576 = vector.broadcast %575 : vector<1x32xf32> to vector<16x32xf32>
    %577 = arith.addf %574, %576 : vector<16x32xf32>
    %578 = arith.addf %577, %561 : vector<16x32xf32>
    %579 = vector.broadcast %4 : vector<16x1xf32> to vector<16x32xf32>
    %580 = arith.mulf %578, %579 : vector<16x32xf32>
    %581 = vector.extract_strided_slice %6 {offsets = [10, 0], sizes = [1, 32], strides = [1, 1]} : vector<12x32xf32> to vector<1x32xf32>
    %582 = vector.extract_strided_slice %6 {offsets = [11, 0], sizes = [1, 32], strides = [1, 1]} : vector<12x32xf32> to vector<1x32xf32>
    %cst_145 = arith.constant dense<0.000000e+00> : vector<16xf32>
    %583 = vector.multi_reduction <add>, %580, %cst_145 [1] : vector<16x32xf32> to vector<16xf32>
    %584 = vector.shape_cast %583 : vector<16xf32> to vector<16x1xf32>
    %cst_146 = arith.constant 3.200000e+01 : f32
    %585 = vector.broadcast %cst_146 : f32 to vector<16x1xf32>
    %586 = arith.divf %584, %585 : vector<16x1xf32>
    %587 = vector.broadcast %586 : vector<16x1xf32> to vector<16x32xf32>
    %588 = arith.subf %580, %587 : vector<16x32xf32>
    %589 = arith.mulf %588, %588 : vector<16x32xf32>
    %cst_147 = arith.constant dense<0.000000e+00> : vector<16xf32>
    %590 = vector.multi_reduction <add>, %589, %cst_147 [1] : vector<16x32xf32> to vector<16xf32>
    %591 = vector.shape_cast %590 : vector<16xf32> to vector<16x1xf32>
    %cst_148 = arith.constant 3.200000e+01 : f32
    %592 = vector.broadcast %cst_148 : f32 to vector<16x1xf32>
    %593 = arith.divf %591, %592 : vector<16x1xf32>
    %cst_149 = arith.constant 9.99999993E-9 : f32
    %594 = vector.broadcast %cst_149 : f32 to vector<16x1xf32>
    %595 = arith.addf %593, %594 : vector<16x1xf32>
    %596 = math.rsqrt %595 : vector<16x1xf32>
    %597 = vector.broadcast %596 : vector<16x1xf32> to vector<16x32xf32>
    %598 = arith.mulf %588, %597 : vector<16x32xf32>
    %599 = vector.broadcast %581 : vector<1x32xf32> to vector<16x32xf32>
    %600 = arith.mulf %598, %599 : vector<16x32xf32>
    %601 = vector.broadcast %582 : vector<1x32xf32> to vector<16x32xf32>
    %602 = arith.addf %600, %601 : vector<16x32xf32>
    %c0_150 = arith.constant 0 : index
    %c0_151 = arith.constant 0 : index
    %603 = vector.load %arg15[%c0_150, %c0_151] : memref<16x32xf32, #tpu.memory_space<vmem>>, vector<16x32xf32>
    tpu.vector_store %arg15[%c0_150, %c0_151], %602 {strides = array<i32>} : memref<16x32xf32, #tpu.memory_space<vmem>>, vector<16x32xf32>,
    return
  }
  func.func @transform_0(%arg0: i32) -> (i32, i32) {
    %c0_i32 = arith.constant 0 : i32
    %c0_i32_0 = arith.constant 0 : i32
    %c0_i32_1 = arith.constant 0 : i32
    return %c0_i32, %c0_i32_0 : i32, i32
  }
  func.func @transform_1(%arg0: i32) -> (i32, i32) {
    %c0_i32 = arith.constant 0 : i32
    %c0_i32_0 = arith.constant 0 : i32
    %c0_i32_1 = arith.constant 0 : i32
    return %c0_i32, %c0_i32_0 : i32, i32
  }
  func.func @transform_2(%arg0: i32) -> (i32, i32) {
    %c0_i32 = arith.constant 0 : i32
    %c0_i32_0 = arith.constant 0 : i32
    %c0_i32_1 = arith.constant 0 : i32
    return %c0_i32, %c0_i32_0 : i32, i32
  }
  func.func @transform_3(%arg0: i32) -> (i32, i32) {
    %c0_i32 = arith.constant 0 : i32
    %c0_i32_0 = arith.constant 0 : i32
    %c0_i32_1 = arith.constant 0 : i32
    return %c0_i32, %c0_i32_0 : i32, i32
  }
  func.func @transform_4(%arg0: i32) -> (i32, i32) {
    %c0_i32 = arith.constant 0 : i32
    %c0_i32_0 = arith.constant 0 : i32
    %c0_i32_1 = arith.constant 0 : i32
    return %c0_i32, %c0_i32_0 : i32, i32
  }
  func.func @transform_5(%arg0: i32) -> (i32, i32) {
    %c0_i32 = arith.constant 0 : i32
    %c0_i32_0 = arith.constant 0 : i32
    %c0_i32_1 = arith.constant 0 : i32
    return %c0_i32, %c0_i32_0 : i32, i32
  }
  func.func @transform_6(%arg0: i32) -> (i32, i32) {
    %c0_i32 = arith.constant 0 : i32
    %c0_i32_0 = arith.constant 0 : i32
    %c0_i32_1 = arith.constant 0 : i32
    return %c0_i32, %c0_i32_0 : i32, i32
  }
  func.func @transform_7(%arg0: i32) -> (i32, i32, i32, i32) {
    %c0_i32 = arith.constant 0 : i32
    %c0_i32_0 = arith.constant 0 : i32
    %c0_i32_1 = arith.constant 0 : i32
    %c0_i32_2 = arith.constant 0 : i32
    %c0_i32_3 = arith.constant 0 : i32
    return %c0_i32, %c0_i32_0, %c0_i32_1, %c0_i32_2 : i32, i32, i32, i32
  }
  func.func @transform_8(%arg0: i32) -> (i32, i32, i32) {
    %c0_i32 = arith.constant 0 : i32
    %c0_i32_0 = arith.constant 0 : i32
    %c0_i32_1 = arith.constant 0 : i32
    %c0_i32_2 = arith.constant 0 : i32
    return %c0_i32, %c0_i32_0, %c0_i32_1 : i32, i32, i32
  }
  func.func @transform_9(%arg0: i32) -> (i32, i32) {
    %c0_i32 = arith.constant 0 : i32
    %c0_i32_0 = arith.constant 0 : i32
    %c0_i32_1 = arith.constant 0 : i32
    return %c0_i32, %c0_i32_0 : i32, i32
  }
  func.func @transform_10(%arg0: i32) -> (i32, i32, i32, i32) {
    %c0_i32 = arith.constant 0 : i32
    %c0_i32_0 = arith.constant 0 : i32
    %c0_i32_1 = arith.constant 0 : i32
    %c0_i32_2 = arith.constant 0 : i32
    %c0_i32_3 = arith.constant 0 : i32
    return %c0_i32, %c0_i32_0, %c0_i32_1, %c0_i32_2 : i32, i32, i32, i32
  }
  func.func @transform_11(%arg0: i32) -> (i32, i32, i32) {
    %c0_i32 = arith.constant 0 : i32
    %c0_i32_0 = arith.constant 0 : i32
    %c0_i32_1 = arith.constant 0 : i32
    %c0_i32_2 = arith.constant 0 : i32
    return %c0_i32, %c0_i32_0, %c0_i32_1 : i32, i32, i32
  }
  func.func @transform_12(%arg0: i32) -> (i32, i32) {
    %c0_i32 = arith.constant 0 : i32
    %c0_i32_0 = arith.constant 0 : i32
    %c0_i32_1 = arith.constant 0 : i32
    return %c0_i32, %c0_i32_0 : i32, i32
  }
  func.func @transform_13(%arg0: i32) -> (i32, i32) {
    %c0_i32 = arith.constant 0 : i32
    %c0_i32_0 = arith.constant 0 : i32
    %c0_i32_1 = arith.constant 0 : i32
    return %c0_i32, %c0_i32_0 : i32, i32
  }
  func.func @transform_14(%arg0: i32) -> (i32, i32) {
    %c0_i32 = arith.constant 0 : i32
    %c0_i32_0 = arith.constant 0 : i32
    %c0_i32_1 = arith.constant 0 : i32
    return %c0_i32, %c0_i32_0 : i32, i32
  }
}

module attributes {stable_mosaic.version = 11 : i64} {
  func.func @_head_kernel(%arg0: i32, %arg1: memref<16x32xf32, #tpu.memory_space<vmem>>, %arg2: memref<16x32xf32, #tpu.memory_space<vmem>>, %arg3: memref<16x32xf32, #tpu.memory_space<vmem>>, %arg4: memref<16x32xf32, #tpu.memory_space<vmem>>, %arg5: memref<2x16x32xf32, #tpu.memory_space<vmem>>, %arg6: memref<32x32xbf16, #tpu.memory_space<vmem>>, %arg7: memref<2x32x32xbf16, #tpu.memory_space<vmem>>, %arg8: memref<2x32x32xbf16, #tpu.memory_space<vmem>>, %arg9: memref<5x32xf32, #tpu.memory_space<vmem>>, %arg10: memref<16x4xf32, #tpu.memory_space<vmem>>) attributes {dimension_semantics = [#tpu.dimension_semantics<parallel>], iteration_bounds = array<i64: 1>, scalar_prefetch = 0 : i64, scratch_operands = 0 : i64, tpu.core_type = #tpu.core_type<tc>, window_params = [{transform_indices = @transform_0, window_bounds = array<i64: 16, 32>}, {transform_indices = @transform_1, window_bounds = array<i64: 16, 32>}, {transform_indices = @transform_2, window_bounds = array<i64: 16, 32>}, {transform_indices = @transform_3, window_bounds = array<i64: 16, 32>}, {transform_indices = @transform_4, window_bounds = array<i64: 2, 16, 32>}, {pipeline_mode = #tpu.pipeline_mode<synchronous>, transform_indices = @transform_5, window_bounds = array<i64: 32, 32>}, {pipeline_mode = #tpu.pipeline_mode<synchronous>, transform_indices = @transform_6, window_bounds = array<i64: 2, 32, 32>}, {pipeline_mode = #tpu.pipeline_mode<synchronous>, transform_indices = @transform_7, window_bounds = array<i64: 2, 32, 32>}, {pipeline_mode = #tpu.pipeline_mode<synchronous>, transform_indices = @transform_8, window_bounds = array<i64: 5, 32>}, {transform_indices = @transform_9, window_bounds = array<i64: 16, 4>}]} {
    %c0 = arith.constant 0 : index
    %c0_0 = arith.constant 0 : index
    %0 = vector.load %arg9[%c0, %c0_0] : memref<5x32xf32, #tpu.memory_space<vmem>>, vector<5x32xf32>
    %c0_1 = arith.constant 0 : index
    %c0_2 = arith.constant 0 : index
    %1 = vector.load %arg6[%c0_1, %c0_2] : memref<32x32xbf16, #tpu.memory_space<vmem>>, vector<32x32xbf16>
    %c0_3 = arith.constant 0 : index
    %c0_4 = arith.constant 0 : index
    %c0_5 = arith.constant 0 : index
    %2 = vector.load %arg7[%c0_3, %c0_4, %c0_5] : memref<2x32x32xbf16, #tpu.memory_space<vmem>>, vector<2x32x32xbf16>
    %c0_6 = arith.constant 0 : index
    %c0_7 = arith.constant 0 : index
    %c0_8 = arith.constant 0 : index
    %3 = vector.load %arg8[%c0_6, %c0_7, %c0_8] : memref<2x32x32xbf16, #tpu.memory_space<vmem>>, vector<2x32x32xbf16>
    %c0_9 = arith.constant 0 : index
    %c0_10 = arith.constant 0 : index
    %4 = vector.load %arg3[%c0_9, %c0_10] : memref<16x32xf32, #tpu.memory_space<vmem>>, vector<16x32xf32>
    %5 = arith.truncf %4 : vector<16x32xf32> to vector<16x32xbf16>
    %cst = arith.constant dense<0.000000e+00> : vector<16x32xf32>
    %6 = tpu.matmul %5, %1, %cst {dimension_numbers = #tpu.dot_dimension_numbers<[1], [0], [0], [1], [0, 0, 1, 1], [], []>} : vector<16x32xbf16>, vector<32x32xbf16>, vector<16x32xf32> -> vector<16x32xf32>
    %7 = vector.extract_strided_slice %0 {offsets = [0, 0], sizes = [1, 32], strides = [1, 1]} : vector<5x32xf32> to vector<1x32xf32>
    %8 = vector.broadcast %7 : vector<1x32xf32> to vector<16x32xf32>
    %9 = arith.addf %6, %8 : vector<16x32xf32>
    %c0_11 = arith.constant 0 : index
    %c0_12 = arith.constant 0 : index
    %10 = vector.load %arg4[%c0_11, %c0_12] : memref<16x32xf32, #tpu.memory_space<vmem>>, vector<16x32xf32>
    %11 = arith.truncf %10 : vector<16x32xf32> to vector<16x32xbf16>
    %cst_13 = arith.constant dense<0.000000e+00> : vector<16x32xf32>
    %12 = tpu.matmul %11, %1, %cst_13 {dimension_numbers = #tpu.dot_dimension_numbers<[1], [0], [0], [1], [0, 0, 1, 1], [], []>} : vector<16x32xbf16>, vector<32x32xbf16>, vector<16x32xf32> -> vector<16x32xf32>
    %13 = vector.extract_strided_slice %0 {offsets = [0, 0], sizes = [1, 32], strides = [1, 1]} : vector<5x32xf32> to vector<1x32xf32>
    %14 = vector.broadcast %13 : vector<1x32xf32> to vector<16x32xf32>
    %15 = arith.addf %12, %14 : vector<16x32xf32>
    %c0_14 = arith.constant 0 : index
    %c0_15 = arith.constant 0 : index
    %16 = vector.load %arg1[%c0_14, %c0_15] : memref<16x32xf32, #tpu.memory_space<vmem>>, vector<16x32xf32>
    %17 = vector.extract_strided_slice %2 {offsets = [0, 0, 0], sizes = [1, 32, 32], strides = [1, 1, 1]} : vector<2x32x32xbf16> to vector<1x32x32xbf16>
    %18 = vector.shape_cast %17 : vector<1x32x32xbf16> to vector<32x32xbf16>
    %19 = arith.truncf %16 : vector<16x32xf32> to vector<16x32xbf16>
    %cst_16 = arith.constant dense<0.000000e+00> : vector<16x32xf32>
    %20 = tpu.matmul %19, %18, %cst_16 {dimension_numbers = #tpu.dot_dimension_numbers<[1], [0], [0], [1], [0, 0, 1, 1], [], []>} : vector<16x32xbf16>, vector<32x32xbf16>, vector<16x32xf32> -> vector<16x32xf32>
    %c0_17 = arith.constant 0 : index
    %c0_18 = arith.constant 0 : index
    %21 = vector.load %arg2[%c0_17, %c0_18] : memref<16x32xf32, #tpu.memory_space<vmem>>, vector<16x32xf32>
    %22 = vector.extract_strided_slice %2 {offsets = [1, 0, 0], sizes = [1, 32, 32], strides = [1, 1, 1]} : vector<2x32x32xbf16> to vector<1x32x32xbf16>
    %23 = vector.shape_cast %22 : vector<1x32x32xbf16> to vector<32x32xbf16>
    %24 = arith.truncf %21 : vector<16x32xf32> to vector<16x32xbf16>
    %cst_19 = arith.constant dense<0.000000e+00> : vector<16x32xf32>
    %25 = tpu.matmul %24, %23, %cst_19 {dimension_numbers = #tpu.dot_dimension_numbers<[1], [0], [0], [1], [0, 0, 1, 1], [], []>} : vector<16x32xbf16>, vector<32x32xbf16>, vector<16x32xf32> -> vector<16x32xf32>
    %26 = arith.addf %20, %25 : vector<16x32xf32>
    %27 = vector.extract_strided_slice %0 {offsets = [1, 0], sizes = [1, 32], strides = [1, 1]} : vector<5x32xf32> to vector<1x32xf32>
    %28 = vector.broadcast %27 : vector<1x32xf32> to vector<16x32xf32>
    %29 = arith.addf %26, %28 : vector<16x32xf32>
    %30 = vector.extract_strided_slice %3 {offsets = [0, 0, 0], sizes = [1, 32, 32], strides = [1, 1, 1]} : vector<2x32x32xbf16> to vector<1x32x32xbf16>
    %31 = vector.shape_cast %30 : vector<1x32x32xbf16> to vector<32x32xbf16>
    %32 = arith.truncf %29 : vector<16x32xf32> to vector<16x32xbf16>
    %cst_20 = arith.constant dense<0.000000e+00> : vector<16x32xf32>
    %33 = tpu.matmul %32, %31, %cst_20 {dimension_numbers = #tpu.dot_dimension_numbers<[1], [0], [0], [1], [0, 0, 1, 1], [], []>} : vector<16x32xbf16>, vector<32x32xbf16>, vector<16x32xf32> -> vector<16x32xf32>
    %34 = vector.extract_strided_slice %3 {offsets = [1, 0, 0], sizes = [1, 32, 32], strides = [1, 1, 1]} : vector<2x32x32xbf16> to vector<1x32x32xbf16>
    %35 = vector.shape_cast %34 : vector<1x32x32xbf16> to vector<32x32xbf16>
    %36 = arith.truncf %9 : vector<16x32xf32> to vector<16x32xbf16>
    %cst_21 = arith.constant dense<0.000000e+00> : vector<16x32xf32>
    %37 = tpu.matmul %36, %35, %cst_21 {dimension_numbers = #tpu.dot_dimension_numbers<[1], [0], [0], [1], [0, 0, 1, 1], [], []>} : vector<16x32xbf16>, vector<32x32xbf16>, vector<16x32xf32> -> vector<16x32xf32>
    %38 = arith.addf %33, %37 : vector<16x32xf32>
    %39 = vector.extract_strided_slice %0 {offsets = [2, 0], sizes = [1, 32], strides = [1, 1]} : vector<5x32xf32> to vector<1x32xf32>
    %40 = vector.broadcast %39 : vector<1x32xf32> to vector<16x32xf32>
    %41 = arith.addf %38, %40 : vector<16x32xf32>
    %42 = vector.extract_strided_slice %0 {offsets = [3, 0], sizes = [1, 32], strides = [1, 1]} : vector<5x32xf32> to vector<1x32xf32>
    %43 = vector.extract_strided_slice %0 {offsets = [4, 0], sizes = [1, 32], strides = [1, 1]} : vector<5x32xf32> to vector<1x32xf32>
    %cst_22 = arith.constant dense<0.000000e+00> : vector<16xf32>
    %44 = vector.multi_reduction <add>, %41, %cst_22 [1] : vector<16x32xf32> to vector<16xf32>
    %45 = vector.shape_cast %44 : vector<16xf32> to vector<16x1xf32>
    %cst_23 = arith.constant 3.200000e+01 : f32
    %46 = vector.broadcast %cst_23 : f32 to vector<16x1xf32>
    %47 = arith.divf %45, %46 : vector<16x1xf32>
    %48 = vector.broadcast %47 : vector<16x1xf32> to vector<16x32xf32>
    %49 = arith.subf %41, %48 : vector<16x32xf32>
    %50 = arith.mulf %49, %49 : vector<16x32xf32>
    %cst_24 = arith.constant dense<0.000000e+00> : vector<16xf32>
    %51 = vector.multi_reduction <add>, %50, %cst_24 [1] : vector<16x32xf32> to vector<16xf32>
    %52 = vector.shape_cast %51 : vector<16xf32> to vector<16x1xf32>
    %cst_25 = arith.constant 3.200000e+01 : f32
    %53 = vector.broadcast %cst_25 : f32 to vector<16x1xf32>
    %54 = arith.divf %52, %53 : vector<16x1xf32>
    %cst_26 = arith.constant 9.99999993E-9 : f32
    %55 = vector.broadcast %cst_26 : f32 to vector<16x1xf32>
    %56 = arith.addf %54, %55 : vector<16x1xf32>
    %57 = math.rsqrt %56 : vector<16x1xf32>
    %58 = vector.broadcast %57 : vector<16x1xf32> to vector<16x32xf32>
    %59 = arith.mulf %49, %58 : vector<16x32xf32>
    %60 = vector.broadcast %42 : vector<1x32xf32> to vector<16x32xf32>
    %61 = arith.mulf %59, %60 : vector<16x32xf32>
    %62 = vector.broadcast %43 : vector<1x32xf32> to vector<16x32xf32>
    %63 = arith.addf %61, %62 : vector<16x32xf32>
    %c0_27 = arith.constant 0 : index
    %c0_28 = arith.constant 0 : index
    %c0_29 = arith.constant 0 : index
    %64 = vector.load %arg5[%c0_27, %c0_28, %c0_29] : memref<2x16x32xf32, #tpu.memory_space<vmem>>, vector<2x16x32xf32>
    %65 = vector.extract_strided_slice %64 {offsets = [0, 0, 0], sizes = [1, 16, 32], strides = [1, 1, 1]} : vector<2x16x32xf32> to vector<1x16x32xf32>
    %66 = vector.shape_cast %65 : vector<1x16x32xf32> to vector<16x32xf32>
    %67 = arith.mulf %63, %66 : vector<16x32xf32>
    %cst_30 = arith.constant dense<0.000000e+00> : vector<16xf32>
    %68 = vector.multi_reduction <add>, %67, %cst_30 [1] : vector<16x32xf32> to vector<16xf32>
    %69 = vector.shape_cast %68 : vector<16xf32> to vector<16x1xf32>
    %70 = vector.extract_strided_slice %64 {offsets = [1, 0, 0], sizes = [1, 16, 32], strides = [1, 1, 1]} : vector<2x16x32xf32> to vector<1x16x32xf32>
    %71 = vector.shape_cast %70 : vector<1x16x32xf32> to vector<16x32xf32>
    %72 = arith.mulf %63, %71 : vector<16x32xf32>
    %cst_31 = arith.constant dense<0.000000e+00> : vector<16xf32>
    %73 = vector.multi_reduction <add>, %72, %cst_31 [1] : vector<16x32xf32> to vector<16xf32>
    %74 = vector.shape_cast %73 : vector<16xf32> to vector<16x1xf32>
    %75 = arith.mulf %29, %9 : vector<16x32xf32>
    %cst_32 = arith.constant dense<0.000000e+00> : vector<16xf32>
    %76 = vector.multi_reduction <add>, %75, %cst_32 [1] : vector<16x32xf32> to vector<16xf32>
    %77 = vector.shape_cast %76 : vector<16xf32> to vector<16x1xf32>
    %78 = arith.mulf %29, %15 : vector<16x32xf32>
    %cst_33 = arith.constant dense<0.000000e+00> : vector<16xf32>
    %79 = vector.multi_reduction <add>, %78, %cst_33 [1] : vector<16x32xf32> to vector<16xf32>
    %80 = vector.shape_cast %79 : vector<16xf32> to vector<16x1xf32>
    %81 = tpu.concatenate %69, %74, %77, %80 in 1 : vector<16x1xf32>, vector<16x1xf32>, vector<16x1xf32>, vector<16x1xf32> -> vector<16x4xf32>
    %c0_34 = arith.constant 0 : index
    %c0_35 = arith.constant 0 : index
    %82 = vector.load %arg10[%c0_34, %c0_35] : memref<16x4xf32, #tpu.memory_space<vmem>>, vector<16x4xf32>
    tpu.vector_store %arg10[%c0_34, %c0_35], %81 {strides = array<i32>} : memref<16x4xf32, #tpu.memory_space<vmem>>, vector<16x4xf32>,
    return
  }
  func.func @transform_0(%arg0: i32) -> (i32, i32) {
    %c0_i32 = arith.constant 0 : i32
    %c0_i32_0 = arith.constant 0 : i32
    return %arg0, %c0_i32 : i32, i32
  }
  func.func @transform_1(%arg0: i32) -> (i32, i32) {
    %c0_i32 = arith.constant 0 : i32
    %c0_i32_0 = arith.constant 0 : i32
    return %arg0, %c0_i32 : i32, i32
  }
  func.func @transform_2(%arg0: i32) -> (i32, i32) {
    %c0_i32 = arith.constant 0 : i32
    %c0_i32_0 = arith.constant 0 : i32
    return %arg0, %c0_i32 : i32, i32
  }
  func.func @transform_3(%arg0: i32) -> (i32, i32) {
    %c0_i32 = arith.constant 0 : i32
    %c0_i32_0 = arith.constant 0 : i32
    return %arg0, %c0_i32 : i32, i32
  }
  func.func @transform_4(%arg0: i32) -> (i32, i32, i32) {
    %c0_i32 = arith.constant 0 : i32
    %c0_i32_0 = arith.constant 0 : i32
    %c0_i32_1 = arith.constant 0 : i32
    return %c0_i32, %arg0, %c0_i32_0 : i32, i32, i32
  }
  func.func @transform_5(%arg0: i32) -> (i32, i32) {
    %c0_i32 = arith.constant 0 : i32
    %c0_i32_0 = arith.constant 0 : i32
    %c0_i32_1 = arith.constant 0 : i32
    return %c0_i32, %c0_i32_0 : i32, i32
  }
  func.func @transform_6(%arg0: i32) -> (i32, i32, i32) {
    %c0_i32 = arith.constant 0 : i32
    %c0_i32_0 = arith.constant 0 : i32
    %c0_i32_1 = arith.constant 0 : i32
    %c0_i32_2 = arith.constant 0 : i32
    return %c0_i32, %c0_i32_0, %c0_i32_1 : i32, i32, i32
  }
  func.func @transform_7(%arg0: i32) -> (i32, i32, i32) {
    %c0_i32 = arith.constant 0 : i32
    %c0_i32_0 = arith.constant 0 : i32
    %c0_i32_1 = arith.constant 0 : i32
    %c0_i32_2 = arith.constant 0 : i32
    return %c0_i32, %c0_i32_0, %c0_i32_1 : i32, i32, i32
  }
  func.func @transform_8(%arg0: i32) -> (i32, i32) {
    %c0_i32 = arith.constant 0 : i32
    %c0_i32_0 = arith.constant 0 : i32
    %c0_i32_1 = arith.constant 0 : i32
    return %c0_i32, %c0_i32_0 : i32, i32
  }
  func.func @transform_9(%arg0: i32) -> (i32, i32) {
    %c0_i32 = arith.constant 0 : i32
    %c0_i32_0 = arith.constant 0 : i32
    return %arg0, %c0_i32 : i32, i32
  }
}

</mosaic_0001>

<bundles_post_ra>
// kernel: model_forward.4
= control target key start
LH: loop header
LB: loop body
LE: loop exit
PB: predicated region body
PF: predicated region fallthrough
CT: control target
= control target key end

     0   :  { %vm79_vm0 = vcmask 261120   ;;  %vm61_vm1 = vcmask 130048   ;;  %v460_v9 = vmov 32.0   ;;  %v461_v16 = vmov 0   ;;  %s464_s28 = smov 64   ;;  %s670_s7 = inlined_call_operand.vmem [shape: bf16[2,16,32], index: 7, kind: input, shape index: {}]   ;;  %s671_s2 = inlined_call_operand.vmem [shape: bf16[16,16], index: 2, kind: input, shape index: {}]   ;;  %s672_s3 = inlined_call_operand.vmem [shape: bf16[16,16], index: 3, kind: input, shape index: {}]   ;;  %s673_s1 = inlined_call_operand.vmem [shape: bf16[16,32], index: 1, kind: input, shape index: {}]   ;;  %s674_s8 = inlined_call_operand.vmem [shape: f32[10,32], index: 8, kind: input, shape index: {}]   ;;  %s675_s5 = inlined_call_operand.vmem [shape: f32[16,1], index: 5, kind: input, shape index: {}]   ;;  %s676_s0 = inlined_call_operand.vmem [shape: bf16[16,32], index: 0, kind: input, shape index: {}]   ;;  %s677_s6 = inlined_call_operand.vmem [shape: f32[16,1], index: 6, kind: input, shape index: {}]   ;;  %s678_s4 = inlined_call_operand.vmem [shape: bf16[16,32], index: 4, kind: input, shape index: {}]   ;;  %s679_s9 = inlined_call_operand.vmem [shape: f32[16,128], index: 9, kind: output, shape index: {}]  }
   0x1   :  { %v418_v0 = vld [vmem:[%s670_s7] sm:$0xff]  ;;  %v419_v1 = vld [vmem:[%s670_s7 + $0x8] sm:$0xff]  ;;  %442 = vrcp.f32 %v460_v9  ;;  %439 = vset.pattern.permute.xlu2 %v461_v16  ;;  %441 = vset.pattern.permute.xlu1 %v461_v16 }
   0x2   :  { %v420_v2 = vld [vmem:[%s671_s2] sm:$0xff]  ;;  %72 = vmatpush.bf16.msra.mxu0 %v418_v0  ;;  %175 = vmatpush.bf16.msra.mxu1 %v419_v1 }
   0x3   :  { %v421_v3 = vld [vmem:[%s672_s3] sm:$0xff]  ;;  %440 = vset.pattern.permute.xlu0 %v461_v16 }
   0x4   :  { %v431_v4 = vld [vmem:[%s673_s1] sm:$0xff]  }
   0x5   :  { %v432_v5 = vunpack.c.l.bf16 %v431_v4  ;;  %408 = vmatmul.msk.bf16.vlgmr.msra.gmra.mxu0 %vm61_vm1, %v420_v2  ;;  %417 = vmatmul.msk.bf16.vlgmr.msra.gmra.mxu1 %vm61_vm1, %v421_v3  ;;  %v433_v7 = vunpack.c.h.bf16 %v431_v4  ;;  %v535_v11 = vld [vmem:[%s674_s8] sm:$0xff] }
   0x6   :  { %v43_v13 = vld [vmem:[%s675_s5] sm:$0xff]  ;;  %v49_v14 = vperm.slane %v535_v11, 0  ;;  %v153_v15 = vperm.slane %v535_v11, 3 }
   0x7   :  { %v308_v6 = vsel %vm79_vm0, %v432_v5, 0.0  ;;  %v311_v8 = vsel %vm79_vm0, %v433_v7, 0.0  ;;  %v443_v10 = vpop.eup %442  ;;  %v545_v24 = vld [vmem:[%s676_s0] sm:$0xff]  }
   0x8   :  { %309 = vadd.xlane.f32.xlu2 %v308_v6  ;;  %v87_v12 = vmul.f32 32.0, %v443_v10  ;;  %v429_v27 = vunpack.c.h.bf16 %v545_v24  ;;  %vm91_vm2 = vweird.f32 %v443_v10  ;;  %v428_v38 = vunpack.c.l.bf16 %v545_v24  ;;  %v44_v6 = vld [vmem:[%s675_s5 + $0x8] sm:$0xff] }
   0xa   :  { %v88_v17 = vsub.f32 1.0, %v87_v12  ;;  %v253_v31 = vsel %vm79_vm0, %v429_v27, 0.0  ;;  %v250_v42 = vsel %vm79_vm0, %v428_v38, 0.0 }
   0xc   :  { %v89_v23 = vmul.f32 %v443_v10, %v88_v17 }
   0xe   :  { %v90_v28 = vadd.f32 %v443_v10, %v89_v23 }
  0x10   :  { %312 = vadd.xlane.f32.xlu2 %v311_v8  ;;  %v551_v32 = vsel %vm91_vm2, %v443_v10, %v90_v28 }
  0x28   :  { %141 = vperm.xlu2 %439, %v43_v13  }
  0x7b   :  { %v310_v18 = vpop.xlane.xlu2 %309 }
  0x7c   :  { %v314_v36 = vmul.f32 %v310_v18, %v551_v32 }
  0x7e   :  { %v557_v40 = vsub.f32 %v432_v5, %v314_v36  ;;  %v45_v5 = vld [vmem:[%s677_s6] sm:$0xff] }
  0x80   :  { %v318_v45 = vmul.f32 %v557_v40, %v557_v40 }
  0x82   :  { %v74_v19 = vpop.f32.mrf.mxu0  ;;  %v177_v20 = vpop.f32.mrf.mxu1  ;;  %v320_v47 = vsel %vm79_vm0, %v318_v45, 0.0 }
  0x83   :  { %v75_v21 = vadd.f32 %v74_v19, %v49_v14  ;;  %v178_v22 = vadd.f32 %v177_v20, %v153_v15  ;;  %v313_v33 = vpop.xlane.xlu2 %312 }
  0x84   :  { %v315_v37 = vmul.f32 %v313_v33, %v551_v32 }
  0x85   :  { %v182_v25 = vsel %vm79_vm0, %v178_v22, 0.0  ;;  %v80_v26 = vsel %vm79_vm0, %v75_v21, 0.0 }
  0x86   :  { %183 = vadd.xlane.f32.xlu1 %v182_v25  ;;  %81 = vadd.xlane.f32.xlu0 %v80_v26  ;;  %v559_v41 = vsub.f32 %v433_v7, %v315_v37  ;;  %v46_v7 = vld [vmem:[%s677_s6 + $0x8] sm:$0xff] }
  0x88   :  { %v319_v44 = vmul.f32 %v559_v41, %v559_v41 }
  0x8a   :  { %v76_v29 = vpop.f32.mrf.mxu0  ;;  %v179_v35 = vpop.f32.mrf.mxu1  ;;  %v323_v46 = vsel %vm79_vm0, %v319_v44, 0.0 }
  0x8b   :  { %v77_v30 = vadd.f32 %v76_v29, %v49_v14  ;;  %v180_v39 = vadd.f32 %v179_v35, %v153_v15 }
  0x8d   :  { %v83_v34 = vsel %vm79_vm0, %v77_v30, 0.0  ;;  %v185_v43 = vsel %vm79_vm0, %v180_v39, 0.0 }
  0x8e   :  { %84 = vadd.xlane.f32.xlu0 %v83_v34  ;;  %254 = vadd.xlane.f32.xlu1 %v253_v31 }
  0x96   :  { %186 = vadd.xlane.f32.xlu1 %v185_v43  ;;  %251 = vadd.xlane.f32.xlu0 %v250_v42 }
  0x9e   :  { %324 = vadd.xlane.f32.xlu1 %v323_v46  ;;  %321 = vadd.xlane.f32.xlu0 %v320_v47 }
  0xf9   :  { %v184_v48 = vpop.xlane.xlu1 %183  ;;  %v82_v49 = vpop.xlane.xlu0 %81 }
  0xfa   :  { %v188_v50 = vmul.f32 %v184_v48, %v551_v32  ;;  %v93_v51 = vmul.f32 %v551_v32, %v82_v49  ;;  %v34_v48 = vld [vmem:[%s674_s8 + $0x8] sm:$0x3]  ;;  %s463_s8 = smov 32  }
  0xfc   :  { %v571_v52 = vsub.f32 %v178_v22, %v188_v50  ;;  %v573_v53 = vsub.f32 %v75_v21, %v93_v51  ;;  %v352_v51 = vperm.slane %v34_v48, 0 }
  0xfe   :  { %v97_v54 = vmul.f32 %v573_v53, %v573_v53  ;;  %v192_v55 = vmul.f32 %v571_v52, %v571_v52 }
 0x100   :  { %v99_v56 = vsel %vm79_vm0, %v97_v54, 0.0  ;;  %v194_v57 = vsel %vm79_vm0, %v192_v55, 0.0 }
 0x101   :  { %v85_v58 = vpop.xlane.xlu0 %84  ;;  %100 = vadd.xlane.f32.xlu2 %v99_v56  ;;  %195 = vadd.xlane.f32.xlu1 %v194_v57  ;;  %v255_v59 = vpop.xlane.xlu1 %254 }
 0x102   :  { %v94_v60 = vmul.f32 %v551_v32, %v85_v58  ;;  %v257_v8 = vmul.f32 %v255_v59, %v551_v32 }
 0x104   :  { %v582_v61 = vsub.f32 %v77_v30, %v94_v60  ;;  %v603_v9 = vsub.f32 %v429_v27, %v257_v8  ;;  %v616_v30 = vpop.permute.xlu2 %141 }
 0x106   :  { %v98_v62 = vmul.f32 %v582_v61, %v582_v61  ;;  %v261_v10 = vmul.f32 %v603_v9, %v603_v9 }
 0x108   :  { %v102_v63 = vsel %vm79_vm0, %v98_v62, 0.0  ;;  %v265_v14 = vsel %vm79_vm0, %v261_v10, 0.0 }
 0x109   :  { %v187_v0 = vpop.xlane.xlu1 %186  ;;  %103 = vadd.xlane.f32.xlu0 %v102_v63  ;;  %v252_v12 = vpop.xlane.xlu0 %251  ;;  %v423_v63 = vld [vmem:[%s678_s4] sm:$0xff]   ;;  %s462_s4 = smov 96  }
 0x10a   :  { %v189_v1 = vmul.f32 %v187_v0, %v551_v32  ;;  %v256_v13 = vmul.f32 %v252_v12, %v551_v32  ;;  %v355_v0 = vperm.slane %v34_v48, 1  ;;  %v632_v8 = vunpack.c.l.bf16 %v423_v63 }
 0x10c   :  { %v588_v2 = vsub.f32 %v180_v39, %v189_v1  ;;  %v609_v15 = vsub.f32 %v428_v38, %v256_v13 }
 0x10e   :  { %v193_v3 = vmul.f32 %v588_v2, %v588_v2  ;;  %v260_v16 = vmul.f32 %v609_v15, %v609_v15 }
 0x110   :  { %v197_v4 = vsel %vm79_vm0, %v193_v3, 0.0  ;;  %v262_v17 = vsel %vm79_vm0, %v260_v16, 0.0 }
 0x111   :  { %198 = vadd.xlane.f32.xlu2 %v197_v4  ;;  %v325_v18 = vpop.xlane.xlu1 %324  ;;  %v322_v19 = vpop.xlane.xlu0 %321 }
 0x112   :  { %v327_v20 = vmul.f32 %v325_v18, %v551_v32  ;;  %v326_v21 = vmul.f32 %v322_v19, %v551_v32 }
 0x114   :  { %v329_v22 = vadd.f32 1e-08, %v327_v20  ;;  %v328_v23 = vadd.f32 1e-08, %v326_v21  ;;  %v131_v21 = vperm.slane %v535_v11, 1 }
 0x116   :  { %444 = vrsqrt.f32 %v329_v22  ;;  %vm346_vm3 = vweird.f32 %v329_v22  ;;  %vm336_vm5 = vweird.f32 %v328_v23 }
 0x117   :  { %446 = vrsqrt.f32 %v328_v23 }
 0x11a   :  { %236 = vperm.xlu1 %441, %v45_v5  }
 0x11c   :  { %v445_v24 = vpop.eup %444 }
 0x11d   :  { %146 = vperm.xlu0 %440, %v44_v6   ;;  %v447_v25 = vpop.eup %446  ;;  %v341_v26 = vmul.f32 %v445_v24, %v329_v22  ;;  %vm347_vm4 = vweird.f32 %v445_v24 }
 0x11e   :  { %v331_v27 = vmul.f32 %v447_v25, %v328_v23  ;;  %vm337_vm6 = vweird.f32 %v447_v25  ;;  %vm348_vm7 = vmor %vm346_vm3, %vm347_vm4 }
 0x11f   :  { %v342_v28 = vmul.f32 %v445_v24, %v341_v26  ;;  %vm338_vm8 = vmor %vm336_vm5, %vm337_vm6 }
 0x120   :  { %v332_v29 = vmul.f32 %v447_v25, %v331_v27 }
 0x121   :  { %v343_v31 = vmul.f32 0.5, %v342_v28  ;;  %v226_v28 = vperm.slane %v535_v11, 4 }
 0x122   :  { %v333_v33 = vmul.f32 0.5, %v332_v29  ;;  %v134_v29 = vperm.slane %v535_v11, 2 }
 0x123   :  { %v344_v34 = vsub.f32 1.5, %v343_v31 }
 0x124   :  { %v334_v35 = vsub.f32 1.5, %v333_v33 }
 0x125   :  { %v345_v42 = vmul.f32 %v445_v24, %v344_v34 }
 0x126   :  { %v335_v43 = vmul.f32 %v447_v25, %v334_v35 }
 0x127   :  { %v349_v46 = vsel %vm348_vm7, %v445_v24, %v345_v42 }
 0x128   :  { %v339_v47 = vsel %vm338_vm8, %v447_v25, %v335_v43  ;;  %v351_v54 = vmul.f32 %v349_v46, %v559_v41  ;;  %v229_v43 = vperm.slane %v535_v11, 5 }
 0x129   :  { %241 = vperm.xlu2 %439, %v46_v7   ;;  %v350_v55 = vmul.f32 %v339_v47, %v557_v40  ;;  %v630_v7 = vunpack.c.h.bf16 %v423_v63 }
 0x12a   :  { %v354_v1 = vmul.f32 %v352_v51, %v351_v54 }
 0x12b   :  { %v353_v3 = vmul.f32 %v352_v51, %v350_v55 }
 0x12c   :  { %v357_v12 = vadd.f32 %v355_v0, %v354_v1 }
 0x12d   :  { %v356_v13 = vadd.f32 %v355_v0, %v353_v3 }
 0x12e   :  { %v359_v24 = vadd.f32 %v630_v7, %v357_v12 }
 0x12f   :  { %v358_v25 = vadd.f32 %v632_v8, %v356_v13 }
 0x144   :  { %266 = vadd.xlane.f32.xlu1 %v265_v14 }
 0x152   :  { %263 = vadd.xlane.f32.xlu2 %v262_v17 }
 0x174   :  { %v101_v36 = vpop.xlane.xlu2 %100  ;;  %v196_v37 = vpop.xlane.xlu1 %195 }
 0x175   :  { %v105_v38 = vmul.f32 %v101_v36, %v551_v32  ;;  %v200_v39 = vmul.f32 %v196_v37, %v551_v32 }
 0x177   :  { %v107_v44 = vadd.f32 1e-08, %v105_v38  ;;  %v202_v45 = vadd.f32 1e-08, %v200_v39 }
 0x179   :  { %448 = vrsqrt.f32 %v107_v44  ;;  %vm115_vm11 = vweird.f32 %v107_v44  ;;  %vm210_vm13 = vweird.f32 %v202_v45 }
 0x17a   :  { %450 = vrsqrt.f32 %v202_v45 }
 0x17c   :  { %v104_v49 = vpop.xlane.xlu0 %103 }
 0x17d   :  { %v106_v50 = vmul.f32 %v104_v49, %v551_v32 }
 0x17f   :  { %v449_v56 = vpop.eup %448  ;;  %v108_v57 = vadd.f32 1e-08, %v106_v50 }
 0x180   :  { %v451_v58 = vpop.eup %450  ;;  %v110_v59 = vmul.f32 %v449_v56, %v107_v44  ;;  %vm116_vm9 = vweird.f32 %v449_v56 }
 0x181   :  { %v205_v60 = vmul.f32 %v451_v58, %v202_v45  ;;  %452 = vrsqrt.f32 %v108_v57  ;;  %vm211_vm10 = vweird.f32 %v451_v58  ;;  %vm117_vm12 = vmor %vm115_vm11, %vm116_vm9  ;;  %vm125_vm1 = vweird.f32 %v108_v57 }
 0x182   :  { %v111_v62 = vmul.f32 %v449_v56, %v110_v59  ;;  %vm212_vm14 = vmor %vm210_vm13, %vm211_vm10  ;;  %vm391_vm13 = vcmask 785408  }
 0x183   :  { %v206_v4 = vmul.f32 %v451_v58, %v205_v60 }
 0x184   :  { %v112_v5 = vmul.f32 0.5, %v111_v62  ;;  %v199_v6 = vpop.xlane.xlu2 %198 }
 0x185   :  { %v207_v41 = vmul.f32 0.5, %v206_v4  ;;  %v201_v40 = vmul.f32 %v199_v6, %v551_v32 }
 0x186   :  { %v113_v10 = vsub.f32 1.5, %v112_v5 }
 0x187   :  { %v453_v14 = vpop.eup %452  ;;  %v208_v16 = vsub.f32 1.5, %v207_v41  ;;  %v203_v17 = vadd.f32 1e-08, %v201_v40 }
 0x188   :  { %v114_v18 = vmul.f32 %v449_v56, %v113_v10  ;;  %v120_v19 = vmul.f32 %v453_v14, %v108_v57  ;;  %vm126_vm15 = vweird.f32 %v453_v14 }
 0x189   :  { %v209_v20 = vmul.f32 %v451_v58, %v208_v16  ;;  %454 = vrsqrt.f32 %v203_v17  ;;  %vm127_vm2 = vmor %vm125_vm1, %vm126_vm15  ;;  %vm220_vm4 = vweird.f32 %v203_v17 }
 0x18a   :  { %v118_v22 = vsel %vm117_vm12, %v449_v56, %v114_v18  ;;  %v121_v23 = vmul.f32 %v453_v14, %v120_v19  ;;  %vm388_vm12 = vcmask 523264  }
 0x18b   :  { %v129_v26 = vmul.f32 %v118_v22, %v573_v53  ;;  %v213_v27 = vsel %vm212_vm14, %v451_v58, %v209_v20 }
 0x18c   :  { %v122_v31 = vmul.f32 0.5, %v121_v23  ;;  %v242_v33 = vpop.permute.xlu2 %241  ;;  %v224_v34 = vmul.f32 %v213_v27, %v571_v52  ;;  %v237_v35 = vpop.permute.xlu1 %236  ;;  %v294_v27 = vperm.slane %v535_v11, 6 }
 0x18d   :  { %v361_v36 = vmul.f32 %v359_v24, %v242_v33  ;;  %v360_v37 = vmul.f32 %v358_v25, %v237_v35  ;;  %v132_v38 = vmul.f32 %v131_v21, %v129_v26 }
 0x18e   :  { %v123_v39 = vsub.f32 1.5, %v122_v31  ;;  %v227_v44 = vmul.f32 %v226_v28, %v224_v34 }
 0x18f   :  { %v455_v42 = vpop.eup %454  ;;  %382 = vrot.lane.b32.xlu1 %v361_v36, %s462_s4  ;;  %380 = vrot.lane.b32.xlu2 %v360_v37, %s462_s4  ;;  %v135_v53 = vadd.f32 %v134_v29, %v132_v38  ;;  %v147_v1 = vpop.permute.xlu0 %146 }
 0x190   :  { %v124_v45 = vmul.f32 %v453_v14, %v123_v39  ;;  %v215_v46 = vmul.f32 %v455_v42, %v203_v17  ;;  %v230_v49 = vadd.f32 %v229_v43, %v227_v44  ;;  %vm221_vm3 = vweird.f32 %v455_v42 }
 0x191   :  { %v137_v52 = vadd.f32 %v632_v8, %v135_v53  ;;  %vm222_vm5 = vmor %vm220_vm4, %vm221_vm3 }
 0x192   :  { %v128_v47 = vsel %vm127_vm2, %v453_v14, %v124_v45  ;;  %v216_v48 = vmul.f32 %v455_v42, %v215_v46  ;;  %v232_v56 = vadd.f32 %v632_v8, %v230_v49 }
 0x193   :  { %v149_v50 = vmul.f32 %v616_v30, %v137_v52  ;;  %v130_v51 = vmul.f32 %v128_v47, %v582_v61 }
 0x194   :  { %v217_v54 = vmul.f32 0.5, %v216_v48  ;;  %v244_v62 = vmul.f32 %v237_v35, %v232_v56 }
 0x195   :  { %364 = vrot.lane.b32.xlu0 %v149_v50, %s463_s8  ;;  %v133_v58 = vmul.f32 %v131_v21, %v130_v51 }
 0x196   :  { %v218_v55 = vsub.f32 1.5, %v217_v54 }
 0x197   :  { %v136_v63 = vadd.f32 %v134_v29, %v133_v58  ;;  %v297_v29 = vperm.slane %v535_v11, 7 }
 0x198   :  { %v219_v57 = vmul.f32 %v455_v42, %v218_v55 }
 0x199   :  { %v138_v61 = vadd.f32 %v630_v7, %v136_v63 }
 0x19a   :  { %v223_v59 = vsel %vm222_vm5, %v455_v42, %v219_v57 }
 0x19b   :  { %v225_v60 = vmul.f32 %v223_v59, %v588_v2  ;;  %v150_v4 = vmul.f32 %v147_v1, %v138_v61 }
 0x19d   :  { %372 = vrot.lane.b32.xlu0 %v244_v62, %s464_s28  ;;  %v228_v0 = vmul.f32 %v226_v28, %v225_v60 }
 0x19f   :  { %v231_v3 = vadd.f32 %v229_v43, %v228_v0 }
 0x1a1   :  { %v233_v5 = vadd.f32 %v630_v7, %v231_v3 }
 0x1a3   :  { %v245_v6 = vmul.f32 %v242_v33, %v233_v5 }
 0x1a5   :  { %366 = vrot.lane.b32.xlu0 %v150_v4, %s463_s8 }
 0x1ad   :  { %374 = vrot.lane.b32.xlu0 %v245_v6, %s464_s28 }
 0x1b7   :  { %v267_v2 = vpop.xlane.xlu1 %266 }
 0x1b8   :  { %v269_v13 = vmul.f32 %v267_v2, %v551_v32 }
 0x1ba   :  { %v271_v16 = vadd.f32 1e-08, %v269_v13 }
 0x1bc   :  { %vm288_vm10 = vweird.f32 %v271_v16 }
 0x1c5   :  { %v264_v41 = vpop.xlane.xlu2 %263 }
 0x1c6   :  { %v268_v40 = vmul.f32 %v264_v41, %v551_v32 }
 0x1c8   :  { %v270_v10 = vadd.f32 1e-08, %v268_v40 }
 0x1ca   :  { %456 = vrsqrt.f32 %v270_v10  ;;  %vm278_vm6 = vweird.f32 %v270_v10 }
 0x1cb   :  { %458 = vrsqrt.f32 %v271_v16 }
 0x1d0   :  { %v457_v12 = vpop.eup %456 }
 0x1d1   :  { %v273_v14 = vmul.f32 %v457_v12, %v270_v10  ;;  %v459_v20 = vpop.eup %458  ;;  %vm279_vm7 = vweird.f32 %v457_v12 }
 0x1d2   :  { %v283_v21 = vmul.f32 %v459_v20, %v271_v16  ;;  %vm280_vm8 = vmor %vm278_vm6, %vm279_vm7  ;;  %vm289_vm9 = vweird.f32 %v459_v20 }
 0x1d3   :  { %v274_v17 = vmul.f32 %v457_v12, %v273_v14  ;;  %vm290_vm11 = vmor %vm288_vm10, %vm289_vm9 }
 0x1d4   :  { %v284_v23 = vmul.f32 %v459_v20, %v283_v21 }
 0x1d5   :  { %v275_v18 = vmul.f32 0.5, %v274_v17 }
 0x1d6   :  { %v285_v26 = vmul.f32 0.5, %v284_v23 }
 0x1d7   :  { %v276_v19 = vsub.f32 1.5, %v275_v18 }
 0x1d8   :  { %v286_v28 = vsub.f32 1.5, %v285_v26 }
 0x1d9   :  { %v277_v22 = vmul.f32 %v457_v12, %v276_v19 }
 0x1da   :  { %v287_v33 = vmul.f32 %v459_v20, %v286_v28 }
 0x1db   :  { %v281_v24 = vsel %vm280_vm8, %v457_v12, %v277_v22 }
 0x1dc   :  { %v292_v25 = vmul.f32 %v281_v24, %v609_v15  ;;  %v291_v36 = vsel %vm290_vm11, %v459_v20, %v287_v33 }
 0x1dd   :  { %v293_v37 = vmul.f32 %v291_v36, %v603_v9 }
 0x1de   :  { %v295_v32 = vmul.f32 %v294_v27, %v292_v25 }
 0x1df   :  { %v296_v43 = vmul.f32 %v294_v27, %v293_v37 }
 0x1e0   :  { %v298_v31 = vadd.f32 %v297_v29, %v295_v32 }
 0x1e2   :  { %v300_v35 = vadd.f32 %v632_v8, %v298_v31  ;;  %v299_v8 = vadd.f32 %v297_v29, %v296_v43 }
 0x1e4   :  { %v302_v15 = vmul.f32 %v300_v35, %v616_v30  ;;  %v301_v9 = vadd.f32 %v630_v7, %v299_v8 }
 0x1e6   :  { %v303_v30 = vmul.f32 %v301_v9, %v147_v1 }
 0x1e9   :  { %v381_v42 = vpop.permute.xlu2 %380 }
 0x201   :  { %v383_v52 = vpop.permute.xlu1 %382 }
 0x207   :  { %v365_v34 = vpop.permute.xlu0 %364 }
 0x208   :  { %v386_v38 = vsel %vm79_vm0, %v302_v15, %v365_v34 }
 0x20f   :  { %v373_v39 = vpop.permute.xlu0 %372 }
 0x210   :  { %v389_v11 = vsel %vm388_vm12, %v386_v38, %v373_v39 }
 0x211   :  { %v392_v44 = vsel %vm391_vm13, %v389_v11, %v381_v42 }
 0x212   :  { %394 = vst [vmem:[%s679_s9] sm:$0xff] %v392_v44 }
 0x217   :  { %v367_v53 = vpop.permute.xlu0 %366 }
 0x218   :  { %v387_v45 = vsel %vm79_vm0, %v303_v30, %v367_v53 }
 0x21f   :  { %v375_v46 = vpop.permute.xlu0 %374 }
 0x220   :  { %v390_v47 = vsel %vm388_vm12, %v387_v45, %v375_v46 }
 0x221   :  { %v393_v48 = vsel %vm391_vm13, %v390_v47, %v383_v52 }
 0x222   :  { %395 = vst [vmem:[%s679_s9 + $0x8] sm:$0xff] %v393_v48 }

// kernel: model_forward.6
= control target key start
LH: loop header
LB: loop body
LE: loop exit
PB: predicated region body
PF: predicated region fallthrough
CT: control target
= control target key end

     0   :  { %vm53_vm0 = vcmask 130048   ;;  %vm79_vm1 = vcmask 261120   ;;  %v352_v17 = vmov 32.0   ;;  %s477_s2 = inlined_call_operand.vmem [shape: bf16[2,16,32], index: 2, kind: input, shape index: {}]   ;;  %s478_s1 = inlined_call_operand.vmem [shape: bf16[32,16], index: 1, kind: input, shape index: {}]   ;;  %s479_s4 = inlined_call_operand.vmem [shape: f32[4,32], index: 4, kind: input, shape index: {}]   ;;  %s480_s3 = inlined_call_operand.vmem [shape: bf16[2,32,32], index: 3, kind: input, shape index: {}]   ;;  %s481_s0 = inlined_call_operand.vmem [shape: bf16[32,32], index: 0, kind: input, shape index: {}]   ;;  %s482_s5 = inlined_call_operand.vmem [shape: f32[32,32], index: 5, kind: output, shape index: {}]  }
   0x1   :  { %v336_v0 = vld [vmem:[%s477_s2] sm:$0xff]  ;;  %v335_v2 = vld [vmem:[%s478_s1 + $0x8] sm:$0xff]  ;;  %342 = vrcp.f32 %v352_v17  ;;  %v333_v47 = vld [vmem:[%s480_s3 + $0x18] sm:$0xff] }
   0x2   :  { %v334_v1 = vld [vmem:[%s478_s1] sm:$0xff]  ;;  %67 = vmatpush.bf16.msra.mxu0 %v336_v0  ;;  %v331_v44 = vld [vmem:[%s480_s3 + $0x8] sm:$0xff]  ;;  %215 = vmatpush.bf16.msra.mxu1 %v333_v47  ;;  %v332_v50 = vld [vmem:[%s480_s3 + $0x10] sm:$0xff] }
   0x3   :  { %v395_v3 = vld [vmem:[%s479_s4] sm:$0xf]  ;;  %262 = vmatpush.bf16.msra.mxu2 %v331_v44  ;;  %339 = vmatpush.bf16.msra.mxu3 %v333_v47  ;;  %v338_v57 = vld [vmem:[%s481_s0 + $0x8] sm:$0xff] }
   0x4   :  { %v36_v4 = vperm.slane %v395_v3, 0  ;;  %v330_v45 = vld [vmem:[%s480_s3] sm:$0xff] }
   0x5   :  { %300 = vmatmul.msk.bf16.vlgmr.msra.gmra.mxu0 %vm53_vm0, %v334_v1  ;;  %v337_v46 = vld [vmem:[%s481_s0] sm:$0xff] }
   0x6   :  { %216 = vmatpush.bf16.msra.mxu1 %v332_v50 }
   0x7   :  { %v343_v18 = vpop.eup %342  ;;  %263 = vmatpush.bf16.msra.mxu2 %v330_v45  ;;  %340 = vmatpush.bf16.msra.mxu3 %v332_v50 }
   0x8   :  { %v93_v19 = vmul.f32 32.0, %v343_v18  ;;  %vm97_vm2 = vweird.f32 %v343_v18 }
   0xa   :  { %v94_v20 = vsub.f32 1.0, %v93_v19  ;;  %328 = vmatmul.msk.bf16.vlgmr.msra.gmra.mxu2 %vm79_vm1, %v337_v46  ;;  %v275_v46 = vperm.slane %v395_v3, 3 }
   0xc   :  { %v95_v21 = vmul.f32 %v343_v18, %v94_v20  ;;  %v180_v20 = vperm.slane %v395_v3, 2 }
   0xe   :  { %v96_v22 = vadd.f32 %v343_v18, %v95_v21 }
  0x10   :  { %v402_v23 = vsel %vm97_vm2, %v343_v18, %v96_v22 }
  0x15   :  { %301 = vmatmul.msk.bf16.gmra.mxu0 %vm53_vm0, %v335_v2 }
  0x1a   :  { %329 = vmatmul.msk.bf16.gmra.mxu2 %vm79_vm1, %v338_v57 }
  0x82   :  { %v69_v5 = vpop.f32.mrf.mxu0 }
  0x83   :  { %v70_v6 = vadd.f32 %v69_v5, %v36_v4 }
  0x85   :  { %v80_v7 = vsel %vm79_vm1, %v70_v6, 0.0 }
  0x86   :  { %81 = vadd.xlane.f32.xlu1 %v80_v7 }
  0x8a   :  { %v71_v8 = vpop.f32.mrf.mxu0 }
  0x8b   :  { %v72_v9 = vadd.f32 %v71_v8, %v36_v4 }
  0x8d   :  { %v83_v10 = vsel %vm79_vm1, %v72_v9, 0.0  ;;  %v265_v45 = vpop.f32.mrf.mxu2 }
  0x8e   :  { %84 = vadd.xlane.f32.xlu1 %v83_v10 }
  0x92   :  { %v74_v11 = vpop.f32.mrf.mxu0 }
  0x93   :  { %v75_v12 = vadd.f32 %v74_v11, %v36_v4 }
  0x95   :  { %v86_v13 = vsel %vm79_vm1, %v75_v12, 0.0 }
  0x96   :  { %87 = vadd.xlane.f32.xlu0 %v86_v13  ;;  %v175_v13 = vperm.slane %v395_v3, 1 }
  0x9a   :  { %v76_v14 = vpop.f32.mrf.mxu0 }
  0x9b   :  { %v77_v15 = vadd.f32 %v76_v14, %v36_v4 }
  0x9d   :  { %v89_v16 = vsel %vm79_vm1, %v77_v15, 0.0 }
  0x9e   :  { %90 = vadd.xlane.f32.xlu0 %v89_v16 }
  0xf9   :  { %v82_v24 = vpop.xlane.xlu1 %81 }
  0xfa   :  { %v99_v25 = vmul.f32 %v402_v23, %v82_v24 }
  0xfc   :  { %v405_v26 = vsub.f32 %v70_v6, %v99_v25 }
  0xfe   :  { %v107_v27 = vmul.f32 %v405_v26, %v405_v26 }
 0x100   :  { %v111_v28 = vsel %vm79_vm1, %v107_v27, 0.0 }
 0x101   :  { %112 = vadd.xlane.f32.xlu0 %v111_v28  ;;  %v85_v29 = vpop.xlane.xlu1 %84 }
 0x102   :  { %v100_v30 = vmul.f32 %v402_v23, %v85_v29 }
 0x104   :  { %v411_v31 = vsub.f32 %v72_v9, %v100_v30 }
 0x106   :  { %v108_v32 = vmul.f32 %v411_v31, %v411_v31 }
 0x108   :  { %v114_v33 = vsel %vm79_vm1, %v108_v32, 0.0 }
 0x109   :  { %v88_v34 = vpop.xlane.xlu0 %87  ;;  %115 = vadd.xlane.f32.xlu1 %v114_v33 }
 0x10a   :  { %v101_v35 = vmul.f32 %v402_v23, %v88_v34 }
 0x10c   :  { %v417_v36 = vsub.f32 %v75_v12, %v101_v35 }
 0x10e   :  { %v109_v37 = vmul.f32 %v417_v36, %v417_v36 }
 0x110   :  { %v117_v38 = vsel %vm79_vm1, %v109_v37, 0.0 }
 0x111   :  { %118 = vadd.xlane.f32.xlu2 %v117_v38  ;;  %v91_v39 = vpop.xlane.xlu0 %90 }
 0x112   :  { %v102_v40 = vmul.f32 %v402_v23, %v91_v39 }
 0x114   :  { %v423_v41 = vsub.f32 %v77_v15, %v102_v40 }
 0x116   :  { %v110_v42 = vmul.f32 %v423_v41, %v423_v41 }
 0x118   :  { %v120_v43 = vsel %vm79_vm1, %v110_v42, 0.0 }
 0x119   :  { %121 = vadd.xlane.f32.xlu2 %v120_v43 }
 0x174   :  { %v113_v48 = vpop.xlane.xlu0 %112 }
 0x175   :  { %v123_v49 = vmul.f32 %v113_v48, %v402_v23 }
 0x177   :  { %v127_v51 = vadd.f32 1e-08, %v123_v49 }
 0x179   :  { %344 = vrsqrt.f32 %v127_v51  ;;  %vm137_vm4 = vweird.f32 %v127_v51 }
 0x17c   :  { %v116_v52 = vpop.xlane.xlu1 %115 }
 0x17d   :  { %v124_v53 = vmul.f32 %v116_v52, %v402_v23 }
 0x17f   :  { %v345_v54 = vpop.eup %344  ;;  %v128_v55 = vadd.f32 1e-08, %v124_v53 }
 0x180   :  { %v132_v56 = vmul.f32 %v345_v54, %v127_v51  ;;  %vm138_vm3 = vweird.f32 %v345_v54 }
 0x181   :  { %346 = vrsqrt.f32 %v128_v55  ;;  %vm139_vm5 = vmor %vm137_vm4, %vm138_vm3  ;;  %vm147_vm7 = vweird.f32 %v128_v55 }
 0x182   :  { %v133_v58 = vmul.f32 %v345_v54, %v132_v56 }
 0x184   :  { %v134_v59 = vmul.f32 0.5, %v133_v58  ;;  %v119_v60 = vpop.xlane.xlu2 %118 }
 0x185   :  { %v125_v61 = vmul.f32 %v119_v60, %v402_v23 }
 0x186   :  { %v135_v62 = vsub.f32 1.5, %v134_v59 }
 0x187   :  { %v347_v63 = vpop.eup %346  ;;  %v129_v0 = vadd.f32 1e-08, %v125_v61 }
 0x188   :  { %v136_v1 = vmul.f32 %v345_v54, %v135_v62  ;;  %v142_v2 = vmul.f32 %v347_v63, %v128_v55  ;;  %vm148_vm6 = vweird.f32 %v347_v63 }
 0x189   :  { %348 = vrsqrt.f32 %v129_v0  ;;  %vm149_vm8 = vmor %vm147_vm7, %vm148_vm6  ;;  %vm157_vm10 = vweird.f32 %v129_v0 }
 0x18a   :  { %v143_v4 = vmul.f32 %v347_v63, %v142_v2  ;;  %v140_v5 = vsel %vm139_vm5, %v345_v54, %v136_v1 }
 0x18b   :  { %v171_v11 = vmul.f32 %v140_v5, %v405_v26 }
 0x18c   :  { %v144_v6 = vmul.f32 0.5, %v143_v4  ;;  %v122_v7 = vpop.xlane.xlu2 %121 }
 0x18d   :  { %v126_v8 = vmul.f32 %v122_v7, %v402_v23  ;;  %v176_v19 = vmul.f32 %v175_v13, %v171_v11 }
 0x18e   :  { %v145_v9 = vsub.f32 1.5, %v144_v6 }
 0x18f   :  { %v349_v10 = vpop.eup %348  ;;  %v130_v12 = vadd.f32 1e-08, %v126_v8  ;;  %v181_v25 = vadd.f32 %v180_v20, %v176_v19 }
 0x190   :  { %v146_v14 = vmul.f32 %v347_v63, %v145_v9  ;;  %v152_v15 = vmul.f32 %v349_v10, %v129_v0  ;;  %vm158_vm9 = vweird.f32 %v349_v10 }
 0x191   :  { %350 = vrsqrt.f32 %v130_v12  ;;  %vm159_vm11 = vmor %vm157_vm10, %vm158_vm9  ;;  %vm167_vm13 = vweird.f32 %v130_v12 }
 0x192   :  { %v150_v16 = vsel %vm149_vm8, %v347_v63, %v146_v14  ;;  %v153_v17 = vmul.f32 %v349_v10, %v152_v15 }
 0x193   :  { %v172_v18 = vmul.f32 %v150_v16, %v411_v31 }
 0x194   :  { %v154_v21 = vmul.f32 0.5, %v153_v17 }
 0x195   :  { %v177_v22 = vmul.f32 %v175_v13, %v172_v18 }
 0x196   :  { %v155_v23 = vsub.f32 1.5, %v154_v21 }
 0x197   :  { %v351_v24 = vpop.eup %350  ;;  %v182_v26 = vadd.f32 %v180_v20, %v177_v22 }
 0x198   :  { %v156_v27 = vmul.f32 %v349_v10, %v155_v23  ;;  %v162_v28 = vmul.f32 %v351_v24, %v130_v12  ;;  %vm168_vm12 = vweird.f32 %v351_v24 }
 0x199   :  { %v189_v29 = vpack.c.bf16 %v182_v26, %v181_v25  ;;  %vm169_vm14 = vmor %vm167_vm13, %vm168_vm12 }
 0x19a   :  { %v163_v30 = vmul.f32 %v351_v24, %v162_v28  ;;  %v160_v32 = vsel %vm159_vm11, %v349_v10, %v156_v27 }
 0x19b   :  { %310 = vmatmul.msk.bf16.vlgmr.msra.gmra.mxu1 %vm79_vm1, %v189_v29  ;;  %v173_v34 = vmul.f32 %v160_v32, %v417_v36  ;;  %v267_v36 = vpop.f32.mrf.mxu2 }
 0x19c   :  { %v164_v31 = vmul.f32 0.5, %v163_v30 }
 0x19d   :  { %v178_v39 = vmul.f32 %v175_v13, %v173_v34 }
 0x19e   :  { %v165_v33 = vsub.f32 1.5, %v164_v31 }
 0x19f   :  { %v183_v42 = vadd.f32 %v180_v20, %v178_v39 }
 0x1a0   :  { %v166_v35 = vmul.f32 %v351_v24, %v165_v33 }
 0x1a2   :  { %v170_v37 = vsel %vm169_vm14, %v351_v24, %v166_v35 }
 0x1a3   :  { %v174_v38 = vmul.f32 %v170_v37, %v423_v41  ;;  %v270_v52 = vpop.f32.mrf.mxu2 }
 0x1a5   :  { %v179_v40 = vmul.f32 %v175_v13, %v174_v38 }
 0x1a7   :  { %v184_v43 = vadd.f32 %v180_v20, %v179_v40 }
 0x1a9   :  { %v190_v44 = vpack.c.bf16 %v184_v43, %v183_v42 }
 0x1ab   :  { %311 = vmatmul.msk.bf16.vlgmr.msra.gmra.mxu3 %vm79_vm1, %v190_v44  ;;  %v272_v55 = vpop.f32.mrf.mxu2 }
 0x218   :  { %v218_v47 = vpop.f32.mrf.mxu1 }
 0x219   :  { %v266_v48 = vadd.f32 %v265_v45, %v218_v47 }
 0x21b   :  { %v276_v49 = vadd.f32 %v275_v46, %v266_v48 }
 0x21d   :  { %280 = vst.msk [vmem:[%s482_s5] sm:$0xff] %vm79_vm1, %v276_v49 }
 0x220   :  { %v220_v41 = vpop.f32.mrf.mxu1 }
 0x221   :  { %v268_v50 = vadd.f32 %v267_v36, %v220_v41 }
 0x223   :  { %v277_v51 = vadd.f32 %v275_v46, %v268_v50 }
 0x225   :  { %281 = vst.msk [vmem:[%s482_s5 + $0x8] sm:$0xff] %vm79_vm1, %v277_v51 }
 0x22e   :  { %v223_v53 = vpop.f32.mrf.mxu3 }
 0x22f   :  { %v271_v3 = vadd.f32 %v270_v52, %v223_v53 }
 0x231   :  { %v278_v54 = vadd.f32 %v275_v46, %v271_v3 }
 0x233   :  { %282 = vst.msk [vmem:[%s482_s5 + $0x10] sm:$0xff] %vm79_vm1, %v278_v54 }
 0x236   :  { %v225_v56 = vpop.f32.mrf.mxu3 }
 0x237   :  { %v273_v57 = vadd.f32 %v272_v55, %v225_v56 }
 0x239   :  { %v279_v58 = vadd.f32 %v275_v46, %v273_v57 }
 0x23b   :  { %283 = vst.msk [vmem:[%s482_s5 + $0x18] sm:$0xff] %vm79_vm1, %v279_v58 }

// kernel: squeeze.25
= control target key start
LH: loop header
LB: loop body
LE: loop exit
PB: predicated region body
PF: predicated region fallthrough
CT: control target
= control target key end

     0   :  { %s80_s0 = inlined_call_operand.vmem [shape: f32[16], index: 0, kind: input, shape index: {}]   ;;  %s81_s1 = inlined_call_operand.hbm [shape: f32[2,8], index: 1, kind: output, shape index: {}]  }
   0x1   :  { %v5_v0 = vld [vmem:[%s80_s0] sm:$0x1] }
   0x2   :  { %2 = vsyncpa [#allocation1], 0  ;;  %6 = vst [vmem:[#allocation3] sm:$0x1] %v5_v0  ;;  %vm8_vm0 = vcmask 64512   ;;  %s62_s0 = smov 120  }
   0x3   :  { %s63_s8 = smov [#allocation0]   ;;  %s27_s1 = sshll.u32 %s81_s1, 4  ;;  %s28_s1 = int_to_ptr.hbm [resolvable:$true] %s27_s1 }
   0x4   :  { %s25_s9 = sshll.u32 %s63_s8, 4  ;;  %s26_s9 = int_to_ptr.vmem [resolvable:$true] %s25_s9 }
   0x9   :  { %v10_v1 = vld [vmem:[#allocation3] sm:$0x1]  }
   0xa   :  { %v7_v2 = vld [vmem:[#allocation3] sm:$0x1]   ;;  %11 = vrot.lane.b32.xlu0 %v10_v1, %s62_s0 }
   0xb   :  { %9 = vst.msk [vmem:[#allocation2] sm:$0x1] %vm8_vm0, %v7_v2  }
  0x7c   :  { %v12_v3 = vpop.permute.xlu0 %11  }
  0x7d   :  { %15 = vst.msk [vmem:[#allocation2 + $0x1] sm:$0x1] %vm8_vm0, %v12_v3  }
  0x84   :  { %v18_v4 = vld [vmem:[#allocation2] sm:$0x3] }
  0x85   :  { %21 = vst [vmem:[#allocation0] sm:$0x3] %v18_v4 }
  0x86   :  { %30 = dma.vmem_to_hbm [thread:$0]  %s26_s9, 32, %s28_s1, [#allocation1]  }
  0x87   :  { %60 = dma.done.wait [#allocation1], 32  }
  0x88   :  { %61 = vsyncadd [#allocation1], 4294967264 }
  0x89   :  { %33 = vsyncpa [#allocation1], 1 }

// kernel: model_forward.7
= control target key start
LH: loop header
LB: loop body
LE: loop exit
PB: predicated region body
PF: predicated region fallthrough
CT: control target
= control target key end

     0   :  { %vm70_vm0 = vcmask 261120   ;;  %v410_v59 = vmov 32.0   ;;  %vm331_vm8 = vcmask 7168   ;;  %vm334_vm9 = vcmask 15360   ;;  %s570_s5 = inlined_call_operand.vmem [shape: bf16[32,32], index: 5, kind: input, shape index: {}]   ;;  %s571_s6 = inlined_call_operand.vmem [shape: bf16[2,32,32], index: 6, kind: input, shape index: {}]   ;;  %s572_s2 = inlined_call_operand.vmem [shape: f32[16,32], index: 2, kind: input, shape index: {}]   ;;  %s573_s1 = inlined_call_operand.vmem [shape: f32[16,32], index: 1, kind: input, shape index: {}]   ;;  %s574_s0 = inlined_call_operand.vmem [shape: f32[16,32], index: 0, kind: input, shape index: {}]   ;;  %s575_s3 = inlined_call_operand.vmem [shape: f32[16,32], index: 3, kind: input, shape index: {}]   ;;  %s576_s7 = inlined_call_operand.vmem [shape: bf16[2,32,32], index: 7, kind: input, shape index: {}]   ;;  %s577_s8 = inlined_call_operand.vmem [shape: f32[5,32], index: 8, kind: input, shape index: {}]   ;;  %s578_s4 = inlined_call_operand.vmem [shape: f32[2,16,32], index: 4, kind: input, shape index: {}]   ;;  %s579_s9 = inlined_call_operand.vmem [shape: f32[16,4], index: 9, kind: output, shape index: {}]  }
   0x1   :  { %v394_v0 = vld [vmem:[%s570_s5 + $0x8] sm:$0xff]  ;;  %v398_v1 = vld [vmem:[%s571_s6 + $0x18] sm:$0xff]  ;;  %v393_v3 = vld [vmem:[%s570_s5] sm:$0xff]  ;;  %404 = vrcp.f32 %v410_v59  ;;  %vm337_vm10 = vcmask 23552   ;;  %vm340_vm11 = vcmask 31744  }
   0x2   :  { %v396_v2 = vld [vmem:[%s571_s6 + $0x8] sm:$0xff]  ;;  %v397_v4 = vld [vmem:[%s571_s6 + $0x10] sm:$0xff]  ;;  %v395_v5 = vld [vmem:[%s571_s6] sm:$0xff]  ;;  %80 = vmatpush.bf16.msra.mxu0 %v394_v0  ;;  %135 = vmatpush.bf16.msra.mxu2 %v398_v1 }
   0x3   :  { %v54_v6 = vld [vmem:[%s572_s2] sm:$0xff]  ;;  %v55_v7 = vld [vmem:[%s572_s2 + $0x8] sm:$0xff]  ;;  %164 = vmatpush.bf16.msra.mxu3 %v396_v2  ;;  %100 = vmatpush.bf16.msra.mxu1 %v394_v0  ;;  %v402_v18 = vld [vmem:[%s576_s7 + $0x18] sm:$0xff] }
   0x4   :  { %v111_v8 = vld [vmem:[%s573_s1] sm:$0xff]  ;;  %v112_v9 = vld [vmem:[%s573_s1 + $0x8] sm:$0xff]  ;;  %v56_v14 = vpack.c.bf16 %v55_v7, %v54_v6  ;;  %v401_v20 = vld [vmem:[%s576_s7 + $0x10] sm:$0xff] }
   0x5   :  { %v108_v10 = vld [vmem:[%s574_s0] sm:$0xff]  ;;  %v109_v11 = vld [vmem:[%s574_s0 + $0x8] sm:$0xff]  ;;  %v113_v15 = vpack.c.bf16 %v112_v9, %v111_v8 }
   0x6   :  { %v88_v12 = vld [vmem:[%s575_s3] sm:$0xff]  ;;  %v89_v13 = vld [vmem:[%s575_s3 + $0x8] sm:$0xff]  ;;  %81 = vmatpush.bf16.msra.mxu0 %v393_v3  ;;  %136 = vmatpush.bf16.msra.mxu2 %v397_v4  ;;  %v110_v16 = vpack.c.bf16 %v109_v11, %v108_v10 }
   0x7   :  { %v90_v17 = vpack.c.bf16 %v89_v13, %v88_v12  ;;  %165 = vmatpush.bf16.msra.mxu3 %v395_v5  ;;  %101 = vmatpush.bf16.msra.mxu1 %v393_v3  ;;  %v400_v19 = vld [vmem:[%s576_s7 + $0x8] sm:$0xff]  ;;  %v399_v21 = vld [vmem:[%s576_s7] sm:$0xff]  ;;  %v405_v60 = vpop.eup %404 }
   0x8   :  { %v522_v22 = vld [vmem:[%s577_s8] sm:$0x1f]  ;;  %v245_v61 = vmul.f32 32.0, %v405_v60  ;;  %vm249_vm1 = vweird.f32 %v405_v60 }
   0x9   :  { %355 = vmatmul.msk.bf16.vlgmr.msra.gmra.mxu0 %vm70_vm0, %v56_v14  ;;  %365 = vmatmul.msk.bf16.vlgmr.msra.gmra.mxu2 %vm70_vm0, %v113_v15  ;;  %v57_v23 = vperm.slane %v522_v22, 0  ;;  %v172_v28 = vperm.slane %v522_v22, 1  ;;  %v235_v49 = vperm.slane %v522_v22, 2 }
   0xa   :  { %374 = vmatmul.msk.bf16.vlgmr.msra.gmra.mxu3 %vm70_vm0, %v110_v16  ;;  %356 = vmatmul.msk.bf16.vlgmr.msra.gmra.mxu1 %vm70_vm0, %v90_v17  ;;  %v246_v62 = vsub.f32 1.0, %v245_v61 }
   0xb   :  { %198 = vmatpush.bf16.msrb.mxu0 %v402_v18  ;;  %227 = vmatpush.bf16.msrb.mxu1 %v400_v19 }
   0xc   :  { %v247_v63 = vmul.f32 %v405_v60, %v246_v62 }
   0xe   :  { %v248_v0 = vadd.f32 %v405_v60, %v247_v63 }
   0xf   :  { %199 = vmatpush.bf16.msrb.mxu0 %v401_v20  ;;  %228 = vmatpush.bf16.msrb.mxu1 %v399_v21 }
  0x10   :  { %v250_v1 = vsel %vm249_vm1, %v405_v60, %v248_v0 }
  0x86   :  { %v83_v24 = vpop.f32.mrf.mxu0 }
  0x87   :  { %v103_v25 = vpop.f32.mrf.mxu1  ;;  %v84_v29 = vadd.f32 %v83_v24, %v57_v23 }
  0x88   :  { %v104_v26 = vadd.f32 %v103_v25, %v57_v23 }
  0x8c   :  { %v138_v27 = vpop.f32.mrf.mxu2 }
  0x8d   :  { %v167_v30 = vpop.f32.mrf.mxu3 }
  0x8e   :  { %v168_v31 = vadd.f32 %v167_v30, %v138_v27  ;;  %v85_v32 = vpop.f32.mrf.mxu0  ;;  %v289_v27 = vperm.slane %v522_v22, 3 }
  0x8f   :  { %v86_v33 = vadd.f32 %v85_v32, %v57_v23  ;;  %v105_v38 = vpop.f32.mrf.mxu1 }
  0x90   :  { %v173_v34 = vadd.f32 %v172_v28, %v168_v31  ;;  %v106_v43 = vadd.f32 %v105_v38, %v57_v23  ;;  %v292_v31 = vperm.slane %v522_v22, 4 }
  0x91   :  { %v176_v35 = vpack.c.bf16 %v86_v33, %v84_v29 }
  0x92   :  { %v315_v36 = vmul.f32 %v173_v34, %v84_v29  ;;  %v526_v37 = vmul.f32 %v173_v34, %v104_v26 }
  0x93   :  { %383 = vmatmul.msk.bf16.vlgmr.msrb.gmra.mxu0 %vm70_vm0, %v176_v35  ;;  %v297_v35 = vld [vmem:[%s578_s4 + $0x10] sm:$0xff] }
  0x94   :  { %v140_v39 = vpop.f32.mrf.mxu2  ;;  %v317_v40 = vsel %vm70_vm0, %v315_v36, 0.0  ;;  %v295_v36 = vld [vmem:[%s578_s4] sm:$0xff] }
  0x95   :  { %v169_v41 = vpop.f32.mrf.mxu3  ;;  %318 = vadd.xlane.f32.xlu2 %v317_v40 }
  0x96   :  { %v170_v42 = vadd.f32 %v169_v41, %v140_v39 }
  0x98   :  { %v174_v44 = vadd.f32 %v172_v28, %v170_v42 }
  0x9a   :  { %v175_v45 = vpack.c.bf16 %v174_v44, %v173_v34  ;;  %v530_v46 = vmul.f32 %v174_v44, %v86_v33  ;;  %v532_v47 = vmul.f32 %v174_v44, %v106_v43 }
  0x9c   :  { %392 = vmatmul.msk.bf16.vlgmr.msrb.gmra.mxu1 %vm70_vm0, %v175_v45 }
 0x110   :  { %v201_v48 = vpop.f32.mrf.mxu0 }
 0x118   :  { %v203_v54 = vpop.f32.mrf.mxu0 }
 0x119   :  { %v230_v50 = vpop.f32.mrf.mxu1 }
 0x11a   :  { %v231_v51 = vadd.f32 %v230_v50, %v201_v48  ;;  %v298_v48 = vld [vmem:[%s578_s4 + $0x18] sm:$0xff] }
 0x11c   :  { %v236_v52 = vadd.f32 %v235_v49, %v231_v51 }
 0x11e   :  { %v238_v53 = vsel %vm70_vm0, %v236_v52, 0.0 }
 0x11f   :  { %239 = vadd.xlane.f32.xlu0 %v238_v53  ;;  %v320_v53 = vsel %vm70_vm0, %v530_v46, 0.0 }
 0x121   :  { %v232_v55 = vpop.f32.mrf.mxu1 }
 0x122   :  { %v233_v56 = vadd.f32 %v232_v55, %v203_v54 }
 0x124   :  { %v237_v57 = vadd.f32 %v235_v49, %v233_v56  ;;  %v296_v49 = vld [vmem:[%s578_s4 + $0x8] sm:$0xff]  ;;  %v325_v56 = vsel %vm70_vm0, %v526_v37, 0.0 }
 0x126   :  { %v241_v58 = vsel %vm70_vm0, %v237_v57, 0.0 }
 0x127   :  { %242 = vadd.xlane.f32.xlu0 %v241_v58  ;;  %v319_v58 = vpop.xlane.xlu2 %318 }
 0x192   :  { %v240_v2 = vpop.xlane.xlu0 %239 }
 0x193   :  { %v251_v3 = vmul.f32 %v250_v1, %v240_v2 }
 0x195   :  { %v253_v4 = vsub.f32 %v236_v52, %v251_v3 }
 0x197   :  { %v255_v5 = vmul.f32 %v253_v4, %v253_v4 }
 0x199   :  { %v257_v6 = vsel %vm70_vm0, %v255_v5, 0.0 }
 0x19a   :  { %258 = vadd.xlane.f32.xlu1 %v257_v6  ;;  %v243_v7 = vpop.xlane.xlu0 %242 }
 0x19b   :  { %v252_v8 = vmul.f32 %v250_v1, %v243_v7 }
 0x19d   :  { %v254_v9 = vsub.f32 %v237_v57, %v252_v8  ;;  %v328_v57 = vsel %vm70_vm0, %v532_v47, 0.0 }
 0x19f   :  { %v256_v10 = vmul.f32 %v254_v9, %v254_v9 }
 0x1a1   :  { %v260_v11 = vsel %vm70_vm0, %v256_v10, 0.0 }
 0x1a2   :  { %261 = vadd.xlane.f32.xlu1 %v260_v11 }
 0x20d   :  { %v259_v12 = vpop.xlane.xlu1 %258 }
 0x20e   :  { %v263_v13 = vmul.f32 %v259_v12, %v250_v1 }
 0x210   :  { %v265_v14 = vadd.f32 1e-08, %v263_v13 }
 0x212   :  { %406 = vrsqrt.f32 %v265_v14  ;;  %vm273_vm3 = vweird.f32 %v265_v14 }
 0x215   :  { %v262_v15 = vpop.xlane.xlu1 %261 }
 0x216   :  { %v264_v16 = vmul.f32 %v262_v15, %v250_v1 }
 0x218   :  { %v407_v17 = vpop.eup %406  ;;  %v266_v18 = vadd.f32 1e-08, %v264_v16 }
 0x219   :  { %v268_v19 = vmul.f32 %v407_v17, %v265_v14  ;;  %vm274_vm2 = vweird.f32 %v407_v17 }
 0x21a   :  { %408 = vrsqrt.f32 %v266_v18  ;;  %vm275_vm4 = vmor %vm273_vm3, %vm274_vm2  ;;  %vm283_vm6 = vweird.f32 %v266_v18 }
 0x21b   :  { %v269_v20 = vmul.f32 %v407_v17, %v268_v19 }
 0x21d   :  { %v270_v21 = vmul.f32 0.5, %v269_v20 }
 0x21f   :  { %v271_v23 = vsub.f32 1.5, %v270_v21 }
 0x220   :  { %v409_v24 = vpop.eup %408 }
 0x221   :  { %v272_v25 = vmul.f32 %v407_v17, %v271_v23  ;;  %v278_v26 = vmul.f32 %v409_v24, %v266_v18  ;;  %vm284_vm5 = vweird.f32 %v409_v24 }
 0x222   :  { %vm285_vm7 = vmor %vm283_vm6, %vm284_vm5 }
 0x223   :  { %v276_v28 = vsel %vm275_vm4, %v407_v17, %v272_v25  ;;  %v279_v29 = vmul.f32 %v409_v24, %v278_v26 }
 0x224   :  { %v287_v30 = vmul.f32 %v276_v28, %v253_v4 }
 0x225   :  { %v280_v32 = vmul.f32 0.5, %v279_v29 }
 0x226   :  { %v290_v33 = vmul.f32 %v289_v27, %v287_v30 }
 0x227   :  { %v281_v34 = vsub.f32 1.5, %v280_v32 }
 0x228   :  { %v293_v38 = vadd.f32 %v292_v31, %v290_v33 }
 0x229   :  { %v282_v39 = vmul.f32 %v409_v24, %v281_v34 }
 0x22a   :  { %v307_v40 = vmul.f32 %v297_v35, %v293_v38  ;;  %v299_v41 = vmul.f32 %v295_v36, %v293_v38 }
 0x22b   :  { %v286_v42 = vsel %vm285_vm7, %v409_v24, %v282_v39 }
 0x22c   :  { %v309_v22 = vsel %vm70_vm0, %v307_v40, 0.0  ;;  %v301_v43 = vsel %vm70_vm0, %v299_v41, 0.0  ;;  %v288_v44 = vmul.f32 %v286_v42, %v254_v9 }
 0x22d   :  { %310 = vadd.xlane.f32.xlu0 %v309_v22  ;;  %302 = vadd.xlane.f32.xlu2 %v301_v43 }
 0x22e   :  { %v291_v45 = vmul.f32 %v289_v27, %v288_v44 }
 0x230   :  { %v294_v50 = vadd.f32 %v292_v31, %v291_v45 }
 0x232   :  { %v308_v51 = vmul.f32 %v298_v48, %v294_v50  ;;  %v300_v52 = vmul.f32 %v296_v49, %v294_v50 }
 0x234   :  { %v312_v54 = vsel %vm70_vm0, %v308_v51, 0.0  ;;  %v304_v55 = vsel %vm70_vm0, %v300_v52, 0.0 }
 0x235   :  { %321 = vadd.xlane.f32.xlu0 %v320_v53  ;;  %313 = vadd.xlane.f32.xlu1 %v312_v54 }
 0x236   :  { %305 = vadd.xlane.f32.xlu2 %v304_v55 }
 0x23d   :  { %326 = vadd.xlane.f32.xlu1 %v325_v56 }
 0x23e   :  { %329 = vadd.xlane.f32.xlu2 %v328_v57 }
 0x2a0   :  { %v303_v59 = vpop.xlane.xlu2 %302  ;;  %v311_v60 = vpop.xlane.xlu0 %310 }
 0x2a1   :  { %v332_v62 = vsel %vm331_vm8, %v303_v59, %v311_v60 }
 0x2a2   :  { %v335_v2 = vsel %vm334_vm9, %v332_v62, %v319_v58 }
 0x2a8   :  { %v314_v61 = vpop.xlane.xlu1 %313  ;;  %v322_v0 = vpop.xlane.xlu0 %321 }
 0x2a9   :  { %v306_v46 = vpop.xlane.xlu2 %305 }
 0x2aa   :  { %v333_v63 = vsel %vm331_vm8, %v306_v46, %v314_v61 }
 0x2ab   :  { %v336_v37 = vsel %vm334_vm9, %v333_v63, %v322_v0 }
 0x2b0   :  { %v327_v1 = vpop.xlane.xlu1 %326 }
 0x2b1   :  { %v338_v3 = vsel %vm337_vm10, %v335_v2, %v327_v1  ;;  %v330_v4 = vpop.xlane.xlu2 %329 }
 0x2b2   :  { %341 = vst.msk [vmem:[%s579_s9] sm:$0xff] %vm340_vm11, %v338_v3  ;;  %v339_v47 = vsel %vm337_vm10, %v336_v37, %v330_v4 }
 0x2b3   :  { %342 = vst.msk [vmem:[%s579_s9 + $0x8] sm:$0xff] %vm340_vm11, %v339_v47 }

// kernel: model_forward.5
= control target key start
LH: loop header
LB: loop body
LE: loop exit
PB: predicated region body
PF: predicated region fallthrough
CT: control target
= control target key end

     0   :  { %vm149_vm0 = vcmask 261120   ;;  %v2185_v8 = vmov 32.0   ;;  %s2187_s16 = smov 112   ;;  %s3044_s2 = inlined_call_operand.vmem [shape: f32[16,32], index: 2, kind: input, shape index: {}]   ;;  %s3045_s1 = inlined_call_operand.vmem [shape: f32[16,32], index: 1, kind: input, shape index: {}]   ;;  %s3046_s3 = inlined_call_operand.vmem [shape: f32[16,32], index: 3, kind: input, shape index: {}]   ;;  %s3047_s10 = inlined_call_operand.vmem [shape: bf16[2,3,32,16], index: 10, kind: input, shape index: {}]   ;;  %s3048_s9 = inlined_call_operand.vmem [shape: f32[16,32], index: 9, kind: input, shape index: {}]   ;;  %s3049_s11 = inlined_call_operand.vmem [shape: bf16[3,32,32], index: 11, kind: input, shape index: {}]   ;;  %s3050_s0 = inlined_call_operand.vmem [shape: f32[16,32], index: 0, kind: input, shape index: {}]   ;;  %s3051_s7 = inlined_call_operand.vmem [shape: bf16[2,3,32,16], index: 7, kind: input, shape index: {}]   ;;  %s3052_s6 = inlined_call_operand.vmem [shape: f32[12,32], index: 6, kind: input, shape index: {}]   ;;  %s3053_s8 = inlined_call_operand.vmem [shape: bf16[3,32,32], index: 8, kind: input, shape index: {}]   ;;  %s3054_s5 = inlined_call_operand.vmem [shape: f32[16,1], index: 5, kind: input, shape index: {}]   ;;  %s3055_s4 = inlined_call_operand.vmem [shape: f32[16,1], index: 4, kind: input, shape index: {}]   ;;  %s3056_s13 = inlined_call_operand.vmem [shape: f32[16,32], index: 13, kind: output, shape index: {1}]   ;;  %s3057_s12 = inlined_call_operand.vmem [shape: f32[16,32], index: 12, kind: output, shape index: {0}]   ;;  %s3058_s14 = inlined_call_operand.vmem [shape: f32[16,32], index: 14, kind: output, shape index: {2}]  }
   0x1   :  { %v49_v0 = vld [vmem:[%s3044_s2] sm:$0xff]  ;;  %v50_v4 = vld [vmem:[%s3044_s2 + $0x8] sm:$0xff]  ;;  %2092 = vrcp.f32 %v2185_v8  ;;  %v2054_v40 = vld [vmem:[%s3047_s10 + $0x18] sm:$0xff]  ;;  %s2188_s2 = smov 16  }
   0x2   :  { %v47_v1 = vld [vmem:[%s3045_s1] sm:$0xff]  ;;  %v207_v2 = vsel %vm149_vm0, %v49_v0, 0.0  ;;  %v48_v5 = vld [vmem:[%s3045_s1 + $0x8] sm:$0xff]  ;;  %v210_v6 = vsel %vm149_vm0, %v50_v4, 0.0  ;;  %361 = vmatpush.bf16.msra.mxu1 %v2054_v40  ;;  %v2053_v48 = vld [vmem:[%s3047_s10 + $0x10] sm:$0xff] }
   0x3   :  { %v150_v3 = vsel %vm149_vm0, %v47_v1, 0.0  ;;  %208 = vadd.xlane.f32.xlu0 %v207_v2  ;;  %v153_v7 = vsel %vm149_vm0, %v48_v5, 0.0  ;;  %v52_v31 = vld [vmem:[%s3046_s3 + $0x8] sm:$0xff]  ;;  %v51_v37 = vld [vmem:[%s3046_s3] sm:$0xff]  ;;  %v2058_v51 = vld [vmem:[%s3047_s10 + $0x38] sm:$0xff] }
   0x4   :  { %151 = vadd.xlane.f32.xlu1 %v150_v3  ;;  %v260_v34 = vsel %vm149_vm0, %v52_v31, 0.0  ;;  %v257_v38 = vsel %vm149_vm0, %v51_v37, 0.0  ;;  %v2052_v39 = vld [vmem:[%s3047_s10 + $0x8] sm:$0xff]  ;;  %v2051_v47 = vld [vmem:[%s3047_s10] sm:$0xff]  ;;  %v2057_v56 = vld [vmem:[%s3047_s10 + $0x30] sm:$0xff] }
   0x5   :  { %330 = vmatpush.bf16.msra.mxu0 %v2052_v39 }
   0x6   :  { %362 = vmatpush.bf16.msra.mxu1 %v2053_v48 }
   0x7   :  { %v2093_v9 = vpop.eup %2092 }
   0x8   :  { %v157_v10 = vmul.f32 32.0, %v2093_v9  ;;  %vm161_vm1 = vweird.f32 %v2093_v9 }
   0x9   :  { %331 = vmatpush.bf16.msra.mxu0 %v2051_v47 }
   0xa   :  { %v158_v11 = vsub.f32 1.0, %v157_v10  ;;  %490 = vmatpush.bf16.msrb.mxu1 %v2058_v51 }
   0xb   :  { %211 = vadd.xlane.f32.xlu0 %v210_v6 }
   0xc   :  { %154 = vadd.xlane.f32.xlu1 %v153_v7  ;;  %v159_v12 = vmul.f32 %v2093_v9, %v158_v11 }
   0xe   :  { %v160_v13 = vadd.f32 %v2093_v9, %v159_v12  ;;  %491 = vmatpush.bf16.msrb.mxu1 %v2057_v56 }
  0x10   :  { %v2281_v14 = vsel %vm161_vm1, %v2093_v9, %v160_v13 }
  0x76   :  { %v209_v15 = vpop.xlane.xlu0 %208 }
  0x77   :  { %v152_v16 = vpop.xlane.xlu1 %151  ;;  %v213_v17 = vmul.f32 %v209_v15, %v2281_v14 }
  0x78   :  { %v163_v18 = vmul.f32 %v2281_v14, %v152_v16 }
  0x79   :  { %v2285_v19 = vsub.f32 %v49_v0, %v213_v17 }
  0x7a   :  { %v2287_v20 = vsub.f32 %v47_v1, %v163_v18 }
  0x7b   :  { %v217_v21 = vmul.f32 %v2285_v19, %v2285_v19 }
  0x7c   :  { %v167_v22 = vmul.f32 %v2287_v20, %v2287_v20 }
  0x7d   :  { %v219_v23 = vsel %vm149_vm0, %v217_v21, 0.0 }
  0x7e   :  { %v169_v24 = vsel %vm149_vm0, %v167_v22, 0.0  ;;  %220 = vadd.xlane.f32.xlu2 %v219_v23  ;;  %v212_v25 = vpop.xlane.xlu0 %211 }
  0x7f   :  { %170 = vadd.xlane.f32.xlu0 %v169_v24  ;;  %v155_v26 = vpop.xlane.xlu1 %154  ;;  %v214_v27 = vmul.f32 %v212_v25, %v2281_v14  ;;  %v2352_v24 = vld [vmem:[%s3048_s9] sm:$0xff] }
  0x80   :  { %v164_v28 = vmul.f32 %v2281_v14, %v155_v26 }
  0x81   :  { %v2297_v29 = vsub.f32 %v50_v4, %v214_v27 }
  0x82   :  { %v2299_v30 = vsub.f32 %v48_v5, %v164_v28 }
  0x83   :  { %v218_v32 = vmul.f32 %v2297_v29, %v2297_v29 }
  0x84   :  { %v168_v33 = vmul.f32 %v2299_v30, %v2299_v30 }
  0x85   :  { %v222_v35 = vsel %vm149_vm0, %v218_v32, 0.0  ;;  %v251_v32 = vperm.slane %v2352_v24, 2 }
  0x86   :  { %v172_v36 = vsel %vm149_vm0, %v168_v33, 0.0  ;;  %223 = vadd.xlane.f32.xlu2 %v222_v35 }
  0x87   :  { %173 = vadd.xlane.f32.xlu1 %v172_v36  ;;  %261 = vadd.xlane.f32.xlu0 %v260_v34 }
  0x8e   :  { %258 = vadd.xlane.f32.xlu2 %v257_v38 }
  0xf1   :  { %v221_v41 = vpop.xlane.xlu2 %220 }
  0xf2   :  { %v171_v42 = vpop.xlane.xlu0 %170  ;;  %v225_v43 = vmul.f32 %v221_v41, %v2281_v14 }
  0xf3   :  { %v175_v44 = vmul.f32 %v171_v42, %v2281_v14 }
  0xf4   :  { %v227_v45 = vadd.f32 1e-08, %v225_v43 }
  0xf5   :  { %v177_v46 = vadd.f32 1e-08, %v175_v44  ;;  %v204_v44 = vperm.slane %v2352_v24, 1 }
  0xf6   :  { %2094 = vrsqrt.f32 %v227_v45  ;;  %vm235_vm5 = vweird.f32 %v227_v45 }
  0xf7   :  { %2096 = vrsqrt.f32 %v177_v46  ;;  %vm185_vm3 = vweird.f32 %v177_v46 }
  0xf9   :  { %v224_v49 = vpop.xlane.xlu2 %223 }
  0xfa   :  { %v174_v50 = vpop.xlane.xlu1 %173  ;;  %v226_v52 = vmul.f32 %v224_v49, %v2281_v14  ;;  %v262_v54 = vpop.xlane.xlu0 %261 }
  0xfb   :  { %v176_v53 = vmul.f32 %v174_v50, %v2281_v14  ;;  %v264_v55 = vmul.f32 %v262_v54, %v2281_v14  ;;  %v2055_v54 = vld [vmem:[%s3047_s10 + $0x20] sm:$0xff] }
  0xfc   :  { %v2095_v57 = vpop.eup %2094  ;;  %v228_v58 = vadd.f32 1e-08, %v226_v52 }
  0xfd   :  { %v178_v59 = vadd.f32 1e-08, %v176_v53  ;;  %v2097_v60 = vpop.eup %2096  ;;  %v230_v61 = vmul.f32 %v2095_v57, %v227_v45  ;;  %v2338_v62 = vsub.f32 %v52_v31, %v264_v55  ;;  %vm236_vm2 = vweird.f32 %v2095_v57 }
  0xfe   :  { %v180_v63 = vmul.f32 %v2097_v60, %v177_v46  ;;  %2098 = vrsqrt.f32 %v228_v58  ;;  %vm186_vm4 = vweird.f32 %v2097_v60  ;;  %vm237_vm6 = vmor %vm235_vm5, %vm236_vm2  ;;  %vm245_vm11 = vweird.f32 %v228_v58 }
  0xff   :  { %v231_v0 = vmul.f32 %v2095_v57, %v230_v61  ;;  %2100 = vrsqrt.f32 %v178_v59  ;;  %v268_v1 = vmul.f32 %v2338_v62, %v2338_v62  ;;  %vm187_vm7 = vmor %vm185_vm3, %vm186_vm4  ;;  %vm195_vm9 = vweird.f32 %v178_v59 }
 0x100   :  { %v181_v2 = vmul.f32 %v2097_v60, %v180_v63  ;;  %v2060_v63 = vld [vmem:[%s3047_s10 + $0x48] sm:$0xff]  ;;  %vm402_vm5 = vcmask 130048  }
 0x101   :  { %v232_v3 = vmul.f32 0.5, %v231_v0  ;;  %v259_v4 = vpop.xlane.xlu2 %258  ;;  %v272_v5 = vsel %vm149_vm0, %v268_v1, 0.0  ;;  %v2059_v1 = vld [vmem:[%s3047_s10 + $0x40] sm:$0xff] }
 0x102   :  { %v182_v6 = vmul.f32 0.5, %v181_v2  ;;  %v263_v7 = vmul.f32 %v259_v4, %v2281_v14  ;;  %273 = vadd.xlane.f32.xlu2 %v272_v5 }
 0x103   :  { %v233_v8 = vsub.f32 1.5, %v232_v3 }
 0x104   :  { %v2099_v9 = vpop.eup %2098  ;;  %v183_v10 = vsub.f32 1.5, %v182_v6  ;;  %v2344_v11 = vsub.f32 %v51_v37, %v263_v7  ;;  %v201_v37 = vperm.slane %v2352_v24, 0 }
 0x105   :  { %v2101_v12 = vpop.eup %2100  ;;  %v234_v13 = vmul.f32 %v2095_v57, %v233_v8  ;;  %v240_v15 = vmul.f32 %v2099_v9, %v228_v58  ;;  %vm246_vm8 = vweird.f32 %v2099_v9 }
 0x106   :  { %v184_v16 = vmul.f32 %v2097_v60, %v183_v10  ;;  %v190_v17 = vmul.f32 %v2101_v12, %v178_v59  ;;  %v267_v18 = vmul.f32 %v2344_v11, %v2344_v11  ;;  %vm196_vm10 = vweird.f32 %v2101_v12  ;;  %vm247_vm12 = vmor %vm245_vm11, %vm246_vm8 }
 0x107   :  { %v241_v21 = vmul.f32 %v2099_v9, %v240_v15  ;;  %v238_v25 = vsel %vm237_vm6, %v2095_v57, %v234_v13  ;;  %vm197_vm13 = vmor %vm195_vm9, %vm196_vm10  ;;  %v301_v10 = vperm.slane %v2352_v24, 4 }
 0x108   :  { %v191_v22 = vmul.f32 %v2101_v12, %v190_v17  ;;  %v269_v23 = vsel %vm149_vm0, %v267_v18, 0.0  ;;  %v188_v27 = vsel %vm187_vm7, %v2097_v60, %v184_v16  ;;  %v249_v33 = vmul.f32 %v238_v25, %v2285_v19 }
 0x109   :  { %v242_v26 = vmul.f32 0.5, %v241_v21  ;;  %270 = vadd.xlane.f32.xlu1 %v269_v23  ;;  %v2357_v35 = vmul.f32 %v188_v27, %v2287_v20  ;;  %v254_v19 = vperm.slane %v2352_v24, 3  ;;  %v304_v16 = vperm.slane %v2352_v24, 5 }
 0x10a   :  { %v192_v28 = vmul.f32 0.5, %v191_v22  ;;  %v252_v42 = vmul.f32 %v251_v32, %v249_v33 }
 0x10b   :  { %v243_v31 = vsub.f32 1.5, %v242_v26  ;;  %v202_v20 = vmul.f32 %v201_v37, %v2357_v35 }
 0x10c   :  { %v193_v34 = vsub.f32 1.5, %v192_v28  ;;  %v2368_v47 = vadd.f32 %v254_v19, %v252_v42  ;;  %v339_v28 = vperm.slane %v2352_v24, 7 }
 0x10d   :  { %v244_v36 = vmul.f32 %v2099_v9, %v243_v31  ;;  %v205_v49 = vadd.f32 %v204_v44, %v202_v20 }
 0x10e   :  { %v194_v38 = vmul.f32 %v2101_v12, %v193_v34  ;;  %v2062_v34 = vld [vmem:[%s3047_s10 + $0x58] sm:$0xff] }
 0x10f   :  { %v248_v39 = vsel %vm247_vm12, %v2099_v9, %v244_v36  ;;  %v2404_v36 = vperm.slane %v2352_v24, 6  ;;  %v133_v24 = vlaneseq }
 0x110   :  { %v250_v40 = vmul.f32 %v248_v39, %v2297_v29  ;;  %v198_v41 = vsel %vm197_vm13, %v2101_v12, %v194_v38  ;;  %v2061_v39 = vld [vmem:[%s3047_s10 + $0x50] sm:$0xff] }
 0x111   :  { %v2363_v43 = vmul.f32 %v198_v41, %v2299_v30  ;;  %v2056_v30 = vld [vmem:[%s3047_s10 + $0x28] sm:$0xff]  ;;  %v134_v42 = vshrl.u32 %v133_v24, 7 }
 0x112   :  { %v253_v45 = vmul.f32 %v251_v32, %v250_v40  ;;  %392 = vmatpush.bf16.msra.mxu2 %v2056_v30 }
 0x113   :  { %v203_v46 = vmul.f32 %v201_v37, %v2363_v43  ;;  %v138_v20 = vshra.s32 %v134_v42, 3 }
 0x114   :  { %v2370_v48 = vadd.f32 %v254_v19, %v253_v45  ;;  %v137_v19 = vand.u32 127, %v133_v24  ;;  %v135_v45 = vadd.s32 8, %v134_v42 }
 0x115   :  { %v206_v29 = vadd.f32 %v204_v44, %v203_v46 }
 0x116   :  { %v2374_v50 = vpack.c.bf16 %v2370_v48, %v2368_v47  ;;  %393 = vmatpush.bf16.msra.mxu2 %v2055_v54  ;;  %v140_v44 = vshra.s32 %v137_v19, 3  ;;  %vm143_vm7 = vcmp.le.s32.totalorder %v137_v19, %v134_v42  ;;  %v139_v46 = vshra.s32 %v135_v45, 3  ;;  %v2423_v54 = vld [vmem:[%s3048_s9 + $0x8] sm:$0xff] }
 0x117   :  { %v307_v51 = vpack.c.bf16 %v206_v29, %v205_v49  ;;  %vm144_vm10 = vcmp.le.s32.totalorder %v137_v19, %v135_v45 }
 0x118   :  { %1867 = vmatmul.msk.bf16.vlgmr.msra.gmra.mxu1 %vm149_vm0, %v2374_v50  ;;  %vm141_vm6 = vcmp.eq.s32.totalorder %v138_v20, %v140_v44  ;;  %vm142_vm9 = vcmp.eq.s32.totalorder %v139_v46, %v140_v44 }
 0x119   :  { %1858 = vmatmul.msk.bf16.vlgmr.msra.gmra.mxu0 %vm149_vm0, %v307_v51  ;;  %vm145_vm8 = vmand %vm141_vm6, %vm143_vm7 }
 0x11a   :  { %520 = vmatpush.bf16.msrb.mxu2 %v2060_v63  ;;  %vm146_vm11 = vmand %vm142_vm9, %vm144_vm10 }
 0x11e   :  { %521 = vmatpush.bf16.msrb.mxu2 %v2059_v1 }
 0x128   :  { %1887 = vmatmul.msk.bf16.vlgmr.msrb.gmra.mxu1 %vm149_vm0, %v307_v51  ;;  %v2186_v51 = vmov -1e+09  }
 0x129   :  { %v2416_v30 = vsel %vm145_vm8, 0.0, %v2186_v51 }
 0x175   :  { %v274_v52 = vpop.xlane.xlu2 %273 }
 0x176   :  { %v276_v53 = vmul.f32 %v274_v52, %v2281_v14 }
 0x178   :  { %v278_v55 = vadd.f32 1e-08, %v276_v53 }
 0x17a   :  { %2102 = vrsqrt.f32 %v278_v55  ;;  %vm295_vm14 = vweird.f32 %v278_v55 }
 0x17c   :  { %v271_v56 = vpop.xlane.xlu1 %270 }
 0x17d   :  { %v275_v57 = vmul.f32 %v271_v56, %v2281_v14  ;;  %v2425_v56 = vsel %vm146_vm11, 0.0, %v2186_v51 }
 0x17f   :  { %v277_v58 = vadd.f32 1e-08, %v275_v57  ;;  %v370_v57 = vperm.slane %v2423_v54, 0 }
 0x180   :  { %v2103_v59 = vpop.eup %2102 }
 0x181   :  { %v290_v60 = vmul.f32 %v2103_v59, %v278_v55  ;;  %2104 = vrsqrt.f32 %v277_v58  ;;  %vm296_vm15 = vweird.f32 %v2103_v59  ;;  %vm285_vm2 = vweird.f32 %v277_v58 }
 0x182   :  { %vm297_vm1 = vmor %vm295_vm14, %vm296_vm15 }
 0x183   :  { %v291_v61 = vmul.f32 %v2103_v59, %v290_v60 }
 0x185   :  { %v292_v0 = vmul.f32 0.5, %v291_v61 }
 0x187   :  { %v2105_v2 = vpop.eup %2104  ;;  %v293_v3 = vsub.f32 1.5, %v292_v0 }
 0x188   :  { %v280_v4 = vmul.f32 %v2105_v2, %v277_v58  ;;  %vm286_vm3 = vweird.f32 %v2105_v2 }
 0x189   :  { %v294_v5 = vmul.f32 %v2103_v59, %v293_v3  ;;  %vm287_vm4 = vmor %vm285_vm2, %vm286_vm3 }
 0x18a   :  { %v281_v6 = vmul.f32 %v2105_v2, %v280_v4 }
 0x18b   :  { %v298_v7 = vsel %vm297_vm1, %v2103_v59, %v294_v5 }
 0x18c   :  { %v282_v8 = vmul.f32 0.5, %v281_v6  ;;  %v300_v9 = vmul.f32 %v298_v7, %v2338_v62 }
 0x18e   :  { %v283_v12 = vsub.f32 1.5, %v282_v8  ;;  %v303_v15 = vmul.f32 %v301_v10, %v300_v9 }
 0x190   :  { %v284_v13 = vmul.f32 %v2105_v2, %v283_v12  ;;  %v306_v23 = vadd.f32 %v304_v16, %v303_v15 }
 0x192   :  { %v288_v17 = vsel %vm287_vm4, %v2105_v2, %v284_v13 }
 0x193   :  { %v299_v18 = vmul.f32 %v288_v17, %v2344_v11 }
 0x195   :  { %v364_v21 = vpop.f32.mrf.mxu1  ;;  %v302_v22 = vmul.f32 %v301_v10, %v299_v18 }
 0x196   :  { %v333_v25 = vpop.f32.mrf.mxu0  ;;  %v365_v31 = vadd.f32 %v364_v21, %v339_v28 }
 0x197   :  { %v305_v26 = vadd.f32 %v304_v16, %v302_v22  ;;  %v334_v40 = vadd.f32 %v333_v25, %v2404_v36 }
 0x199   :  { %v369_v27 = vpack.c.bf16 %v306_v23, %v305_v26 }
 0x19b   :  { %1876 = vmatmul.msk.bf16.vlgmr.msra.gmra.mxu2 %vm149_vm0, %v369_v27 }
 0x19d   :  { %v366_v62 = vpop.f32.mrf.mxu1 }
 0x19e   :  { %v367_v32 = vadd.f32 %v366_v62, %v339_v28  ;;  %v335_v11 = vpop.f32.mrf.mxu0 }
 0x19f   :  { %v336_v38 = vadd.f32 %v335_v11, %v2404_v36 }
 0x1a0   :  { %v401_v33 = vpack.c.bf16 %v367_v32, %v365_v31 }
 0x1a1   :  { %v400_v41 = vpack.c.bf16 %v336_v38, %v334_v40 }
 0x1a2   :  { %v407_v37 = vsel %vm402_vm5, %v401_v33, 0 }
 0x1a3   :  { %416 = vmatpush.bf16.xpose.msra.mxu3 %v407_v37 }
 0x1a5   :  { %v493_v38 = vpop.f32.mrf.mxu1 }
 0x1aa   :  { %1877 = vmatmul.msk.bf16.vlgmr.msra.gmra.mxu3 %vm402_vm5, %v400_v41 }
 0x1ab   :  { %550 = vmatpush.bf16.msrb.mxu3 %v2062_v34  ;;  %1896 = vmatmul.msk.bf16.vlgmr.msrb.gmra.mxu2 %vm149_vm0, %v2374_v50 }
 0x1ad   :  { %v495_v40 = vpop.f32.mrf.mxu1 }
 0x1af   :  { %551 = vmatpush.bf16.msrb.mxu3 %v2061_v39 }
 0x1ba   :  { %1905 = vmatmul.msk.bf16.vlgmr.msrb.gmra.mxu3 %vm149_vm0, %v369_v27 }
 0x21e   :  { %v395_v49 = vpop.f32.mrf.mxu2 }
 0x21f   :  { %v396_v60 = vadd.f32 %v395_v49, %v370_v57 }
 0x226   :  { %v397_v59 = vpop.f32.mrf.mxu2 }
 0x227   :  { %v398_v61 = vadd.f32 %v397_v59, %v370_v57 }
 0x229   :  { %v450_v1 = vpack.c.bf16 %v398_v61, %v396_v60 }
 0x22b   :  { %461 = vmatpush.bf16.msrb.mxu0 %v450_v1 }
 0x22d   :  { %v418_v29 = vpop.f32.mrf.mxu3 }
 0x22e   :  { %v423_v52 = vmul.f32 0.25, %v418_v29  ;;  %v523_v13 = vpop.f32.mrf.mxu2 }
 0x230   :  { %v425_v50 = vadd.f32 %v423_v52, %v2416_v30 }
 0x232   :  { %v427_v53 = vsel %vm402_vm5, %v425_v50, -inf }
 0x233   :  { %428 = vmax.xlane.f32.xlu0 %v427_v53 }
 0x235   :  { %v420_v55 = vpop.f32.mrf.mxu3 }
 0x236   :  { %v424_v58 = vmul.f32 0.25, %v420_v55  ;;  %v525_v16 = vpop.f32.mrf.mxu2 }
 0x238   :  { %v426_v63 = vadd.f32 %v424_v58, %v2425_v56 }
 0x23a   :  { %v430_v0 = vsel %vm402_vm5, %v426_v63, -inf }
 0x23b   :  { %431 = vmax.xlane.f32.xlu1 %v430_v0 }
 0x23d   :  { %v553_v15 = vpop.f32.mrf.mxu3 }
 0x245   :  { %v555_v25 = vpop.f32.mrf.mxu3 }
 0x254   :  { %511 = vrot.lane.b32.xlu1 %v339_v28, %s2187_s16 }
 0x25c   :  { %541 = vrot.lane.b32.xlu1 %v370_v57, %s2187_s16 }
 0x2a6   :  { %v429_v2 = vpop.xlane.xlu0 %428 }
 0x2a7   :  { %v433_v3 = vsub.f32 %v425_v50, %v429_v2 }
 0x2a9   :  { %v435_v4 = vmul.f32 1.442695, %v433_v3 }
 0x2ab   :  { %2106 = vpow2.f32 %v435_v4 }
 0x2ae   :  { %v432_v5 = vpop.xlane.xlu1 %431 }
 0x2af   :  { %v434_v6 = vsub.f32 %v426_v63, %v432_v5 }
 0x2b1   :  { %v2107_v7 = vpop.eup %2106  ;;  %v437_v8 = vmul.f32 1.442695, %v434_v6 }
 0x2b2   :  { %v439_v9 = vsel %vm402_vm5, %v2107_v7, 0.0 }
 0x2b3   :  { %2108 = vpow2.f32 %v437_v8  ;;  %440 = vadd.xlane.f32.xlu2 %v439_v9  ;;  %v2064_v9 = vld [vmem:[%s3049_s11 + $0x8] sm:$0xff] }
 0x2b4   :  { %658 = vmatpush.bf16.msra.mxu2 %v2064_v9 }
 0x2b9   :  { %v2109_v10 = vpop.eup %2108 }
 0x2ba   :  { %v442_v12 = vsel %vm402_vm5, %v2109_v10, 0.0 }
 0x2bb   :  { %443 = vadd.xlane.f32.xlu0 %v442_v12 }
 0x2c6   :  { %v512_v17 = vpop.permute.xlu1 %511 }
 0x2c7   :  { %v524_v18 = vadd.f32 %v523_v13, %v512_v17  ;;  %v526_v21 = vadd.f32 %v525_v16, %v512_v17 }
 0x2c9   :  { %v559_v22 = vpack.c.bf16 %v526_v21, %v524_v18 }
 0x2cb   :  { %v564_v23 = vsel %vm402_vm5, %v559_v22, 0  ;;  %481 = vrot.lane.b32.xlu2 %v2404_v36, %s2187_s16 }
 0x2cc   :  { %573 = vmatpush.bf16.xpose.msra.mxu0 %v564_v23 }
 0x2ce   :  { %v542_v26 = vpop.permute.xlu1 %541 }
 0x2cf   :  { %v554_v27 = vadd.f32 %v553_v15, %v542_v26  ;;  %v556_v28 = vadd.f32 %v555_v25, %v542_v26  ;;  %v45_v25 = vld [vmem:[%s3050_s0] sm:$0xff] }
 0x2d0   :  { %v848_v26 = vsel %vm149_vm0, %v45_v25, 0.0 }
 0x2d1   :  { %v607_v62 = vpack.c.bf16 %v556_v28, %v554_v27  ;;  %v46_v27 = vld [vmem:[%s3050_s0 + $0x8] sm:$0xff] }
 0x2d2   :  { %v851_v28 = vsel %vm149_vm0, %v46_v27, 0.0 }
 0x2d3   :  { %618 = vmatpush.bf16.msra.mxu1 %v607_v62  ;;  %v636_v62 = vperm.slane %v2423_v54, 1 }
 0x326   :  { %v441_v31 = vpop.xlane.xlu2 %440 }
 0x327   :  { %2110 = vrcp.f32 %v441_v31 }
 0x32d   :  { %v2111_v33 = vpop.eup %2110 }
 0x32e   :  { %v444_v32 = vpop.xlane.xlu0 %443  ;;  %v2437_v11 = vmul.f32 %v2111_v33, %v2107_v7  ;;  %v482_v39 = vpop.permute.xlu2 %481 }
 0x32f   :  { %2112 = vrcp.f32 %v444_v32  ;;  %v494_v41 = vadd.f32 %v493_v38, %v482_v39  ;;  %v496_v24 = vadd.f32 %v495_v40, %v482_v39 }
 0x331   :  { %v558_v42 = vpack.c.bf16 %v496_v24, %v494_v41 }
 0x335   :  { %v2113_v34 = vpop.eup %2112 }
 0x336   :  { %v2439_v37 = vmul.f32 %v2113_v34, %v2109_v10  ;;  %v2063_v10 = vld [vmem:[%s3049_s11] sm:$0xff] }
 0x337   :  { %659 = vmatpush.bf16.msra.mxu2 %v2063_v10 }
 0x338   :  { %v449_v36 = vpack.c.bf16 %v2439_v37, %v2437_v11 }
 0x33a   :  { %1878 = vmatmul.msk.bf16.vlgmr.msrb.gmra.mxu0 %vm402_vm5, %v449_v36 }
 0x34a   :  { %1906 = vmatmul.msk.bf16.vlgmr.msra.gmra.mxu0 %vm402_vm5, %v558_v42 }
 0x3b7   :  { %v463_v19 = vpop.f32.mrf.mxu0 }
 0x3bf   :  { %v465_v20 = vpop.f32.mrf.mxu0 }
 0x3c7   :  { %v575_v44 = vpop.f32.mrf.mxu0 }
 0x3c8   :  { %v580_v45 = vmul.f32 0.25, %v575_v44 }
 0x3ca   :  { %v582_v46 = vadd.f32 %v580_v45, %v2416_v30 }
 0x3cc   :  { %v584_v49 = vsel %vm402_vm5, %v582_v46, -inf }
 0x3cd   :  { %585 = vmax.xlane.f32.xlu0 %v584_v49 }
 0x3cf   :  { %v577_v29 = vpop.f32.mrf.mxu0 }
 0x3d0   :  { %v581_v51 = vmul.f32 0.25, %v577_v29 }
 0x3d2   :  { %v583_v52 = vadd.f32 %v581_v51, %v2425_v56 }
 0x3d4   :  { %v587_v50 = vsel %vm402_vm5, %v583_v52, -inf }
 0x3d5   :  { %588 = vmax.xlane.f32.xlu0 %v587_v50 }
 0x440   :  { %v586_v53 = vpop.xlane.xlu0 %585 }
 0x441   :  { %v590_v55 = vsub.f32 %v582_v46, %v586_v53 }
 0x443   :  { %v592_v57 = vmul.f32 1.442695, %v590_v55 }
 0x445   :  { %2114 = vpow2.f32 %v592_v57 }
 0x448   :  { %v589_v58 = vpop.xlane.xlu0 %588 }
 0x449   :  { %v591_v59 = vsub.f32 %v583_v52, %v589_v58 }
 0x44b   :  { %v2115_v60 = vpop.eup %2114  ;;  %v594_v61 = vmul.f32 1.442695, %v591_v59 }
 0x44c   :  { %v596_v63 = vsel %vm402_vm5, %v2115_v60, 0.0 }
 0x44d   :  { %2116 = vpow2.f32 %v594_v61  ;;  %597 = vadd.xlane.f32.xlu0 %v596_v63  ;;  %v2514_v61 = vld [vmem:[%s3051_s7 + $0x10] sm:$0xff]  ;;  %v2516_v63 = vpack.c.bf16 %v46_v27, %v45_v25 }
 0x453   :  { %v2117_v0 = vpop.eup %2116 }
 0x454   :  { %v599_v1 = vsel %vm402_vm5, %v2117_v0, 0.0 }
 0x455   :  { %600 = vadd.xlane.f32.xlu2 %v599_v1 }
 0x45d   :  { %849 = vadd.xlane.f32.xlu2 %v848_v26 }
 0x465   :  { %852 = vadd.xlane.f32.xlu2 %v851_v28 }
 0x4c0   :  { %v598_v2 = vpop.xlane.xlu0 %597 }
 0x4c1   :  { %2118 = vrcp.f32 %v598_v2 }
 0x4c7   :  { %v2119_v4 = vpop.eup %2118 }
 0x4c8   :  { %v601_v3 = vpop.xlane.xlu2 %600  ;;  %v2451_v6 = vmul.f32 %v2119_v4, %v2115_v60  ;;  %v2508_v60 = vld [vmem:[%s3051_s7 + $0x18] sm:$0xff]  ;;  %v2065_v4 = vld [vmem:[%s3049_s11 + $0x10] sm:$0xff] }
 0x4c9   :  { %2120 = vrcp.f32 %v601_v3  ;;  %952 = vmatpush.bf16.msrb.mxu2 %v2508_v60 }
 0x4cd   :  { %953 = vmatpush.bf16.msrb.mxu2 %v2514_v61 }
 0x4cf   :  { %v2121_v5 = vpop.eup %2120 }
 0x4d0   :  { %v2453_v7 = vmul.f32 %v2121_v5, %v2117_v0  ;;  %v850_v41 = vpop.xlane.xlu2 %849  ;;  %v2066_v0 = vld [vmem:[%s3049_s11 + $0x18] sm:$0xff]  ;;  %v2531_v5 = vld [vmem:[%s3051_s7 + $0x8] sm:$0xff] }
 0x4d1   :  { %741 = vmatpush.bf16.msra.mxu3 %v2066_v0  ;;  %921 = vmatpush.bf16.msrb.mxu1 %v2531_v5 }
 0x4d2   :  { %v606_v8 = vpack.c.bf16 %v2453_v7, %v2451_v6 }
 0x4d4   :  { %1907 = vmatmul.msk.bf16.vlgmr.msra.gmra.mxu1 %vm402_vm5, %v606_v8  ;;  %v2536_v8 = vld [vmem:[%s3051_s7 + $0x38] sm:$0xff] }
 0x4d5   :  { %742 = vmatpush.bf16.msra.mxu3 %v2065_v4 }
 0x4d8   :  { %v853_v45 = vpop.xlane.xlu2 %852 }
 0x4d9   :  { %v855_v51 = vmul.f32 %v853_v45, %v2281_v14 }
 0x4db   :  { %v2499_v55 = vsub.f32 %v46_v27, %v855_v51 }
 0x4dd   :  { %v859_v58 = vmul.f32 %v2499_v55, %v2499_v55 }
 0x4df   :  { %v863_v59 = vsel %vm149_vm0, %v859_v58, 0.0 }
 0x551   :  { %v620_v12 = vpop.f32.mrf.mxu1 }
 0x559   :  { %v622_v13 = vpop.f32.mrf.mxu1 }
 0x55a   :  { %v2074_v15 = vpack.i.bf16 %v622_v13, %v620_v12 }
 0x55c   :  { %2075 = vrot.lane.b32.xlu0 %v2074_v15, %s2188_s2 }
 0x5ce   :  { %v2076_v16 = vpop.permute.xlu0 %2075 }
 0x5cf   :  { %v2078_v17 = vunpack.i.h.bf16 %v2076_v16  ;;  %v2077_v18 = vunpack.i.l.bf16 %v2076_v16 }
 0x5d1   :  { %v634_v21 = vsel %vm402_vm5, %v465_v20, %v2078_v17  ;;  %v633_v22 = vsel %vm402_vm5, %v463_v19, %v2077_v18  ;;  %v854_v19 = vmul.f32 %v850_v41, %v2281_v14  ;;  %v2545_v18 = vld [vmem:[%s3051_s7] sm:$0xff] }
 0x5d2   :  { %v635_v23 = vpack.c.bf16 %v634_v21, %v633_v22  ;;  %v2550_v21 = vld [vmem:[%s3051_s7 + $0x30] sm:$0xff]  ;;  %922 = vmatpush.bf16.msrb.mxu1 %v2545_v18 }
 0x5d3   :  { %v2487_v44 = vsub.f32 %v45_v25, %v854_v19 }
 0x5d4   :  { %1916 = vmatmul.msk.bf16.vlgmr.msra.gmra.mxu2 %vm149_vm0, %v635_v23 }
 0x5d5   :  { %v858_v29 = vmul.f32 %v2487_v44, %v2487_v44  ;;  %1076 = vmatpush.bf16.msra.mxu2 %v2536_v8 }
 0x5d7   :  { %v860_v53 = vsel %vm149_vm0, %v858_v29, 0.0 }
 0x5d9   :  { %1077 = vmatpush.bf16.msra.mxu2 %v2550_v21 }
 0x5e4   :  { %1952 = vmatmul.msk.bf16.vlgmr.msrb.gmra.mxu2 %vm149_vm0, %v2516_v63 }
 0x657   :  { %v661_v31 = vpop.f32.mrf.mxu2 }
 0x658   :  { %v662_v32 = vadd.f32 %v661_v31, %v636_v62 }
 0x65a   :  { %v666_v33 = vadd.f32 %v662_v32, %v2368_v47 }
 0x65c   :  { %v668_v34 = vsel %vm149_vm0, %v666_v33, 0.0 }
 0x65d   :  { %669 = vadd.xlane.f32.xlu1 %v668_v34 }
 0x65f   :  { %v663_v36 = vpop.f32.mrf.mxu2 }
 0x660   :  { %v664_v38 = vadd.f32 %v663_v36, %v636_v62 }
 0x662   :  { %v667_v39 = vadd.f32 %v664_v38, %v2370_v48 }
 0x664   :  { %v671_v40 = vsel %vm149_vm0, %v667_v39, 0.0 }
 0x665   :  { %672 = vadd.xlane.f32.xlu0 %v671_v40 }
 0x6d0   :  { %v670_v24 = vpop.xlane.xlu1 %669 }
 0x6d1   :  { %v674_v42 = vmul.f32 %v670_v24, %v2281_v14 }
 0x6d3   :  { %v2483_v20 = vsub.f32 %v666_v33, %v674_v42 }
 0x6d5   :  { %v678_v47 = vmul.f32 %v2483_v20, %v2483_v20 }
 0x6d7   :  { %v680_v46 = vsel %vm149_vm0, %v678_v47, 0.0  ;;  %v712_v47 = vperm.slane %v2423_v54, 2 }
 0x6d8   :  { %v673_v48 = vpop.xlane.xlu0 %672  ;;  %681 = vadd.xlane.f32.xlu1 %v680_v46 }
 0x6d9   :  { %v675_v49 = vmul.f32 %v673_v48, %v2281_v14 }
 0x6db   :  { %v2494_v52 = vsub.f32 %v667_v39, %v675_v49 }
 0x6dd   :  { %v679_v50 = vmul.f32 %v2494_v52, %v2494_v52 }
 0x6df   :  { %v683_v57 = vsel %vm149_vm0, %v679_v50, 0.0 }
 0x6e0   :  { %684 = vadd.xlane.f32.xlu2 %v683_v57  ;;  %861 = vadd.xlane.f32.xlu1 %v860_v53  ;;  %v715_v53 = vperm.slane %v2423_v54, 3 }
 0x6e8   :  { %864 = vadd.xlane.f32.xlu2 %v863_v59 }
 0x74b   :  { %v682_v1 = vpop.xlane.xlu1 %681 }
 0x74c   :  { %v686_v2 = vmul.f32 %v682_v1, %v2281_v14  ;;  %v2568_v1 = vld [vmem:[%s3052_s6] sm:$0xff] }
 0x74e   :  { %v688_v3 = vadd.f32 1e-08, %v686_v2 }
 0x750   :  { %2122 = vrsqrt.f32 %v688_v3  ;;  %vm696_vm13 = vweird.f32 %v688_v3 }
 0x753   :  { %v862_v9 = vpop.xlane.xlu1 %861  ;;  %v685_v10 = vpop.xlane.xlu2 %684 }
 0x754   :  { %v866_v12 = vmul.f32 %v862_v9, %v2281_v14  ;;  %v687_v13 = vmul.f32 %v685_v10, %v2281_v14 }
 0x756   :  { %v2123_v15 = vpop.eup %2122  ;;  %v868_v16 = vadd.f32 1e-08, %v866_v12  ;;  %v689_v17 = vadd.f32 1e-08, %v687_v13  ;;  %v2576_v13 = vperm.slane %v2568_v1, 0 }
 0x757   :  { %v691_v22 = vmul.f32 %v2123_v15, %v688_v3  ;;  %vm697_vm12 = vweird.f32 %v2123_v15 }
 0x758   :  { %2124 = vrsqrt.f32 %v868_v16  ;;  %vm698_vm14 = vmor %vm696_vm13, %vm697_vm12  ;;  %vm876_vm15 = vweird.f32 %v868_v16  ;;  %vm706_vm4 = vweird.f32 %v689_v17 }
 0x759   :  { %v692_v23 = vmul.f32 %v2123_v15, %v691_v22  ;;  %2126 = vrsqrt.f32 %v689_v17 }
 0x75b   :  { %v693_v25 = vmul.f32 0.5, %v692_v23  ;;  %v865_v26 = vpop.xlane.xlu2 %864 }
 0x75c   :  { %v867_v27 = vmul.f32 %v865_v26, %v2281_v14 }
 0x75d   :  { %v694_v28 = vsub.f32 1.5, %v693_v25 }
 0x75e   :  { %v2125_v62 = vpop.eup %2124  ;;  %v869_v31 = vadd.f32 1e-08, %v867_v27  ;;  %v955_v27 = vpop.f32.mrf.mxu2 }
 0x75f   :  { %v2127_v32 = vpop.eup %2126  ;;  %v695_v33 = vmul.f32 %v2123_v15, %v694_v28  ;;  %v871_v34 = vmul.f32 %v2125_v62, %v868_v16  ;;  %vm877_vm1 = vweird.f32 %v2125_v62  ;;  %v2601_v28 = vperm.slane %v2568_v1, 3 }
 0x760   :  { %v701_v36 = vmul.f32 %v2127_v32, %v689_v17  ;;  %2128 = vrsqrt.f32 %v869_v31  ;;  %vm707_vm2 = vweird.f32 %v2127_v32  ;;  %vm2557_vm3 = vmor %vm876_vm15, %vm877_vm1  ;;  %vm886_vm7 = vweird.f32 %v869_v31 }
 0x761   :  { %v872_v38 = vmul.f32 %v2125_v62, %v871_v34  ;;  %v699_v40 = vsel %vm698_vm14, %v2123_v15, %v695_v33  ;;  %vm708_vm6 = vmor %vm706_vm4, %vm707_vm2  ;;  %v2067_v33 = vld [vmem:[%s3049_s11 + $0x20] sm:$0xff] }
 0x762   :  { %v702_v39 = vmul.f32 %v2127_v32, %v701_v36  ;;  %v710_v45 = vmul.f32 %v699_v40, %v2483_v20 }
 0x763   :  { %v873_v41 = vmul.f32 0.5, %v872_v38 }
 0x764   :  { %v703_v24 = vmul.f32 0.5, %v702_v39  ;;  %v713_v57 = vmul.f32 %v712_v47, %v710_v45  ;;  %v719_v39 = vperm.slane %v2423_v54, 4 }
 0x765   :  { %v874_v42 = vsub.f32 1.5, %v873_v41 }
 0x766   :  { %v2129_v19 = vpop.eup %2128  ;;  %v704_v46 = vsub.f32 1.5, %v703_v24  ;;  %v2571_v9 = vadd.f32 %v715_v53, %v713_v57 }
 0x767   :  { %v875_v48 = vmul.f32 %v2125_v62, %v874_v42  ;;  %v881_v49 = vmul.f32 %v2129_v19, %v869_v31  ;;  %vm887_vm8 = vweird.f32 %v2129_v19  ;;  %v957_v31 = vpop.f32.mrf.mxu2 }
 0x768   :  { %v705_v51 = vmul.f32 %v2127_v32, %v704_v46  ;;  %vm888_vm9 = vmor %vm886_vm7, %vm887_vm8 }
 0x769   :  { %v882_v50 = vmul.f32 %v2129_v19, %v881_v49  ;;  %v879_v20 = vsel %vm2557_vm3, %v2125_v62, %v875_v48  ;;  %v956_v62 = vadd.f32 %v955_v27, %v2601_v28  ;;  %v2612_v48 = vperm.slane %v2568_v1, 2 }
 0x76a   :  { %v709_v58 = vsel %vm708_vm6, %v2127_v32, %v705_v51  ;;  %v890_v4 = vmul.f32 %v879_v20, %v2487_v44  ;;  %v2584_v44 = vperm.slane %v2568_v1, 1  ;;  %v958_v32 = vadd.f32 %v957_v31, %v2601_v28 }
 0x76b   :  { %v711_v59 = vmul.f32 %v709_v58, %v2494_v52  ;;  %v883_v0 = vmul.f32 0.5, %v882_v50  ;;  %v752_v50 = vperm.slane %v2423_v54, 5  ;;  %v2627_v58 = vld [vmem:[%s3051_s7 + $0x20] sm:$0xff] }
 0x76c   :  { %v893_v16 = vmul.f32 %v2576_v13, %v890_v4  ;;  %v988_v34 = vpack.c.bf16 %v958_v32, %v956_v62  ;;  %v2659_v32 = vperm.slane %v2568_v1, 4 }
 0x76d   :  { %v714_v2 = vmul.f32 %v712_v47, %v711_v59  ;;  %v884_v3 = vsub.f32 1.5, %v883_v0  ;;  %v2636_v59 = vld [vmem:[%s3051_s7 + $0x48] sm:$0xff]  ;;  %v2643_v0 = vld [vmem:[%s3051_s7 + $0x40] sm:$0xff] }
 0x76e   :  { %v2588_v23 = vadd.f32 %v2584_v44, %v893_v16  ;;  %v993_v36 = vsel %vm402_vm5, %v988_v34, 0 }
 0x76f   :  { %v2573_v10 = vadd.f32 %v715_v53, %v714_v2  ;;  %v885_v12 = vmul.f32 %v2129_v19, %v884_v3  ;;  %v2621_v53 = vld [vmem:[%s3051_s7 + $0x28] sm:$0xff] }
 0x770   :  { %979 = vmatpush.bf16.msrb.mxu3 %v2621_v53 }
 0x771   :  { %v889_v52 = vsel %vm888_vm9, %v2129_v19, %v885_v12  ;;  %v718_v15 = vpack.c.bf16 %v2573_v10, %v2571_v9 }
 0x772   :  { %v891_v17 = vmul.f32 %v889_v52, %v2499_v55  ;;  %v2068_v55 = vld [vmem:[%s3049_s11 + $0x28] sm:$0xff] }
 0x773   :  { %1925 = vmatmul.msk.bf16.vlgmr.msra.gmra.mxu3 %vm149_vm0, %v718_v15  ;;  %774 = vmatpush.bf16.msrb.mxu0 %v2068_v55 }
 0x774   :  { %v894_v22 = vmul.f32 %v2576_v13, %v891_v17  ;;  %980 = vmatpush.bf16.msrb.mxu3 %v2627_v58 }
 0x776   :  { %v2591_v25 = vadd.f32 %v2584_v44, %v894_v22 }
 0x777   :  { %775 = vmatpush.bf16.msrb.mxu0 %v2067_v33 }
 0x778   :  { %v898_v26 = vpack.c.bf16 %v2591_v25, %v2588_v23  ;;  %1106 = vmatpush.bf16.msra.mxu3 %v2636_v59 }
 0x77a   :  { %1943 = vmatmul.msk.bf16.vlgmr.msrb.gmra.mxu1 %vm149_vm0, %v898_v26  ;;  %1972 = vmatmul.msk.bf16.vlgmr.msra.gmra.mxu2 %vm149_vm0, %v898_v26 }
 0x77b   :  { %1002 = vmatpush.bf16.xpose.msra.mxu0 %v993_v36 }
 0x77c   :  { %1107 = vmatpush.bf16.msra.mxu3 %v2643_v0 }
 0x783   :  { %1961 = vmatmul.msk.bf16.vlgmr.msrb.gmra.mxu3 %vm149_vm0, %v2516_v63 }
 0x793   :  { %1981 = vmatmul.msk.bf16.vlgmr.msra.gmra.mxu3 %vm149_vm0, %v2516_v63 }
 0x7f6   :  { %v744_v38 = vpop.f32.mrf.mxu3 }
 0x7f7   :  { %v745_v40 = vadd.f32 %v744_v38, %v719_v39  ;;  %v924_v47 = vpop.f32.mrf.mxu1 }
 0x7f8   :  { %v925_v29 = vadd.f32 %v924_v47, %v2612_v48 }
 0x7f9   :  { %v749_v42 = vmax.f32 %v745_v40, 0.0 }
 0x7fe   :  { %v746_v41 = vpop.f32.mrf.mxu3 }
 0x7ff   :  { %v747_v24 = vadd.f32 %v746_v41, %v719_v39  ;;  %v926_v46 = vpop.f32.mrf.mxu1 }
 0x800   :  { %v927_v49 = vadd.f32 %v926_v46, %v2612_v48 }
 0x801   :  { %v750_v19 = vmax.f32 %v747_v24, 0.0 }
 0x802   :  { %v987_v51 = vpack.c.bf16 %v927_v49, %v925_v29 }
 0x803   :  { %v751_v45 = vpack.c.bf16 %v750_v19, %v749_v42 }
 0x805   :  { %1934 = vmatmul.msk.bf16.vlgmr.msrb.gmra.mxu0 %vm149_vm0, %v751_v45 }
 0x806   :  { %v982_v62 = vpop.f32.mrf.mxu3 }
 0x807   :  { %v983_v39 = vadd.f32 %v982_v62, %v2659_v32 }
 0x80e   :  { %v984_v40 = vpop.f32.mrf.mxu3 }
 0x80f   :  { %v985_v41 = vadd.f32 %v984_v40, %v2659_v32 }
 0x811   :  { %v1036_v24 = vpack.c.bf16 %v985_v41, %v983_v39 }
 0x813   :  { %1047 = vmatpush.bf16.msra.mxu1 %v1036_v24 }
 0x815   :  { %1962 = vmatmul.msk.bf16.vlgmr.msra.gmra.mxu0 %vm402_vm5, %v987_v51 }
 0x816   :  { %v1109_v47 = vpop.f32.mrf.mxu3 }
 0x81e   :  { %v1111_v45 = vpop.f32.mrf.mxu3 }
 0x882   :  { %v777_v57 = vpop.f32.mrf.mxu0 }
 0x883   :  { %v2631_v20 = vadd.f32 %v777_v57, %v752_v50 }
 0x88a   :  { %v2647_v2 = vpop.f32.mrf.mxu0 }
 0x892   :  { %v1004_v3 = vpop.f32.mrf.mxu0 }
 0x893   :  { %v1009_v4 = vmul.f32 0.25, %v1004_v3 }
 0x895   :  { %v1011_v12 = vadd.f32 %v1009_v4, %v2416_v30 }
 0x897   :  { %v1013_v52 = vsel %vm402_vm5, %v1011_v12, -inf }
 0x898   :  { %1014 = vmax.xlane.f32.xlu1 %v1013_v52 }
 0x89a   :  { %v1006_v15 = vpop.f32.mrf.mxu0 }
 0x89b   :  { %v1010_v16 = vmul.f32 0.25, %v1006_v15 }
 0x89d   :  { %v1012_v17 = vadd.f32 %v1010_v16, %v2425_v56 }
 0x89f   :  { %v1016_v22 = vsel %vm402_vm5, %v1012_v17, -inf }
 0x8a0   :  { %1017 = vmax.xlane.f32.xlu0 %v1016_v22  ;;  %v1079_v22 = vpop.f32.mrf.mxu2 }
 0x8b4   :  { %1097 = vrot.lane.b32.xlu0 %v2601_v28, %s2187_s16 }
 0x90b   :  { %v1015_v26 = vpop.xlane.xlu1 %1014 }
 0x90c   :  { %v1019_v55 = vsub.f32 %v1011_v12, %v1015_v26 }
 0x90e   :  { %v1021_v27 = vmul.f32 1.442695, %v1019_v55  ;;  %v1081_v55 = vpop.f32.mrf.mxu2 }
 0x910   :  { %2130 = vpow2.f32 %v1021_v27 }
 0x913   :  { %v1018_v31 = vpop.xlane.xlu0 %1017 }
 0x914   :  { %v1020_v33 = vsub.f32 %v1012_v17, %v1018_v31 }
 0x916   :  { %v2131_v34 = vpop.eup %2130  ;;  %v1023_v36 = vmul.f32 1.442695, %v1020_v33  ;;  %v2683_v33 = vld [vmem:[%s3051_s7 + $0x58] sm:$0xff] }
 0x917   :  { %v1025_v38 = vsel %vm402_vm5, %v2131_v34, 0.0  ;;  %1136 = vmatpush.bf16.msrb.mxu0 %v2683_v33 }
 0x918   :  { %2132 = vpow2.f32 %v1023_v36  ;;  %1026 = vadd.xlane.f32.xlu2 %v1025_v38  ;;  %v2691_v36 = vld [vmem:[%s3051_s7 + $0x50] sm:$0xff] }
 0x91b   :  { %1137 = vmatpush.bf16.msrb.mxu0 %v2691_v36 }
 0x91e   :  { %v2133_v42 = vpop.eup %2132  ;;  %1990 = vmatmul.msk.bf16.vlgmr.msrb.gmra.mxu0 %vm149_vm0, %v2516_v63 }
 0x91f   :  { %v1028_v19 = vsel %vm402_vm5, %v2133_v42, 0.0 }
 0x920   :  { %1029 = vadd.xlane.f32.xlu1 %v1028_v19 }
 0x926   :  { %v2669_v46 = vpop.permute.xlu0 %1097 }
 0x927   :  { %v1110_v49 = vadd.f32 %v1109_v47, %v2669_v46  ;;  %v1112_v29 = vadd.f32 %v1111_v45, %v2669_v46 }
 0x929   :  { %v1145_v51 = vpack.c.bf16 %v1112_v29, %v1110_v49 }
 0x92b   :  { %v1150_v57 = vsel %vm402_vm5, %v1145_v51, 0 }
 0x92c   :  { %1159 = vmatpush.bf16.xpose.msrb.mxu1 %v1150_v57 }
 0x930   :  { %1067 = vrot.lane.b32.xlu2 %v2612_v48, %s2187_s16 }
 0x938   :  { %1127 = vrot.lane.b32.xlu2 %v2659_v32, %s2187_s16 }
 0x98b   :  { %v1027_v3 = vpop.xlane.xlu2 %1026 }
 0x98c   :  { %2134 = vrcp.f32 %v1027_v3 }
 0x992   :  { %v2135_v12 = vpop.eup %2134 }
 0x993   :  { %v1030_v4 = vpop.xlane.xlu1 %1029  ;;  %v1033_v15 = vmul.f32 %v2135_v12, %v2131_v34  ;;  %v2675_v26 = vpop.permute.xlu2 %1067 }
 0x994   :  { %2136 = vrcp.f32 %v1030_v4  ;;  %v1080_v27 = vadd.f32 %v1079_v22, %v2675_v26  ;;  %v1082_v62 = vadd.f32 %v1081_v55, %v2675_v26 }
 0x996   :  { %v1144_v31 = vpack.c.bf16 %v1082_v62, %v1080_v27 }
 0x99a   :  { %v2137_v52 = vpop.eup %2136 }
 0x99b   :  { %v1034_v16 = vmul.f32 %v2137_v52, %v2133_v42  ;;  %v1139_v49 = vpop.f32.mrf.mxu0  ;;  %v2702_v29 = vpop.permute.xlu2 %1127 }
 0x99c   :  { %v1140_v57 = vadd.f32 %v1139_v49, %v2702_v29 }
 0x99d   :  { %v1035_v17 = vpack.c.bf16 %v1034_v16, %v1033_v15 }
 0x99f   :  { %1963 = vmatmul.msk.bf16.vlgmr.msra.gmra.mxu1 %vm402_vm5, %v1035_v17 }
 0x9a3   :  { %v1141_v4 = vpop.f32.mrf.mxu0 }
 0x9a4   :  { %v1142_v12 = vadd.f32 %v1141_v4, %v2702_v29 }
 0x9a6   :  { %v1193_v52 = vpack.c.bf16 %v1142_v12, %v1140_v57 }
 0x9a8   :  { %1204 = vmatpush.bf16.msrb.mxu2 %v1193_v52 }
 0x9ac   :  { %1448 = vmatpush.bf16.msra.mxu2 %v2531_v5 }
 0x9af   :  { %1991 = vmatmul.msk.bf16.vlgmr.msrb.gmra.mxu1 %vm402_vm5, %v1144_v31 }
 0x9b0   :  { %1449 = vmatpush.bf16.msra.mxu2 %v2545_v18  ;;  %v1434_v18 = vmul.f32 %v2576_v13, %v2357_v35  ;;  %v2733_v35 = vld [vmem:[%s3053_s8] sm:$0xff] }
 0xa1c   :  { %v2685_v34 = vpop.f32.mrf.mxu1 }
 0xa24   :  { %v2696_v38 = vpop.f32.mrf.mxu1 }
 0xa2c   :  { %v1161_v39 = vpop.f32.mrf.mxu1 }
 0xa2d   :  { %v1166_v40 = vmul.f32 0.25, %v1161_v39 }
 0xa2f   :  { %v1168_v41 = vadd.f32 %v1166_v40, %v2416_v30 }
 0xa31   :  { %v1170_v24 = vsel %vm402_vm5, %v1168_v41, -inf }
 0xa32   :  { %1171 = vmax.xlane.f32.xlu1 %v1170_v24 }
 0xa34   :  { %v1163_v42 = vpop.f32.mrf.mxu1 }
 0xa35   :  { %v1167_v19 = vmul.f32 0.25, %v1163_v42 }
 0xa37   :  { %v1169_v47 = vadd.f32 %v1167_v19, %v2425_v56  ;;  %v1435_v19 = vmul.f32 %v2576_v13, %v2363_v43 }
 0xa39   :  { %v1173_v45 = vsel %vm402_vm5, %v1169_v47, -inf }
 0xa3a   :  { %1174 = vmax.xlane.f32.xlu1 %v1173_v45  ;;  %v2719_v45 = vadd.f32 %v1434_v18, %v2584_v44 }
 0xaa5   :  { %v1172_v63 = vpop.xlane.xlu1 %1171 }
 0xaa6   :  { %v1176_v51 = vsub.f32 %v1168_v41, %v1172_v63  ;;  %v2727_v63 = vld [vmem:[%s3053_s8 + $0x8] sm:$0xff] }
 0xaa7   :  { %1244 = vmatpush.bf16.msrb.mxu3 %v2727_v63 }
 0xaa8   :  { %v1178_v3 = vmul.f32 1.442695, %v1176_v51 }
 0xaaa   :  { %2138 = vpow2.f32 %v1178_v3 }
 0xaab   :  { %1245 = vmatpush.bf16.msrb.mxu3 %v2733_v35 }
 0xaad   :  { %v1175_v15 = vpop.xlane.xlu1 %1174 }
 0xaae   :  { %v1177_v16 = vsub.f32 %v1169_v47, %v1175_v15  ;;  %v2716_v47 = vadd.f32 %v1435_v19, %v2584_v44 }
 0xaaf   :  { %1466 = vmatpush.bf16.msra.mxu3 %v2508_v60  ;;  %v2182_v60 = vld [vmem:[%s3045_s1] sm:$0xff] }
 0xab0   :  { %v2139_v17 = vpop.eup %2138  ;;  %v1180_v22 = vmul.f32 1.442695, %v1177_v16  ;;  %v1438_v49 = vpack.c.bf16 %v2716_v47, %v2719_v45 }
 0xab1   :  { %v1182_v55 = vsel %vm402_vm5, %v2139_v17, 0.0 }
 0xab2   :  { %2140 = vpow2.f32 %v1180_v22  ;;  %1183 = vadd.xlane.f32.xlu0 %v1182_v55 }
 0xab3   :  { %1467 = vmatpush.bf16.msra.mxu3 %v2514_v61  ;;  %v2183_v61 = vld [vmem:[%s3045_s1 + $0x8] sm:$0xff] }
 0xab4   :  { %v2752_v15 = vpack.c.bf16 %v2183_v61, %v2182_v60 }
 0xab8   :  { %v2141_v27 = vpop.eup %2140 }
 0xab9   :  { %v1185_v62 = vsel %vm402_vm5, %v2141_v27, 0.0 }
 0xaba   :  { %1186 = vadd.xlane.f32.xlu1 %v1185_v62 }
 0xb25   :  { %v1184_v31 = vpop.xlane.xlu0 %1183 }
 0xb26   :  { %2142 = vrcp.f32 %v1184_v31 }
 0xb2c   :  { %v2143_v40 = vpop.eup %2142 }
 0xb2d   :  { %v1187_v39 = vpop.xlane.xlu1 %1186  ;;  %v1190_v24 = vmul.f32 %v2143_v40, %v2139_v17 }
 0xb2e   :  { %2144 = vrcp.f32 %v1187_v39 }
 0xb34   :  { %v2145_v41 = vpop.eup %2144 }
 0xb35   :  { %v1191_v5 = vmul.f32 %v2145_v41, %v2141_v27 }
 0xb37   :  { %v1192_v42 = vpack.c.bf16 %v1191_v5, %v1190_v24 }
 0xb39   :  { %1992 = vmatmul.msk.bf16.vlgmr.msrb.gmra.mxu2 %vm402_vm5, %v1192_v42 }
 0xb49   :  { %2020 = vmatmul.msk.bf16.vlgmr.msra.gmra.mxu2 %vm149_vm0, %v1438_v49 }
 0xbbc   :  { %v1206_v43 = vpop.f32.mrf.mxu2 }
 0xbc4   :  { %v1208_v13 = vpop.f32.mrf.mxu2 }
 0xbc5   :  { %v2079_v44 = vpack.i.bf16 %v1208_v13, %v1206_v43  ;;  %v2780_v43 = vld [vmem:[%s3053_s8 + $0x10] sm:$0xff] }
 0xbc7   :  { %2080 = vrot.lane.b32.xlu1 %v2079_v44, %s2188_s2 }
 0xc39   :  { %v2081_v51 = vpop.permute.xlu1 %2080 }
 0xc3a   :  { %v2083_v57 = vunpack.i.h.bf16 %v2081_v51  ;;  %v2082_v3 = vunpack.i.l.bf16 %v2081_v51 }
 0xc3c   :  { %v1220_v4 = vsel %vm402_vm5, %v2696_v38, %v2083_v57  ;;  %v1219_v12 = vsel %vm402_vm5, %v2685_v34, %v2082_v3  ;;  %v2758_v34 = vperm.slane %v2568_v1, 5 }
 0xc3d   :  { %v1221_v52 = vpack.c.bf16 %v1220_v4, %v1219_v12 }
 0xc3f   :  { %2001 = vmatmul.msk.bf16.vlgmr.msrb.gmra.mxu3 %vm149_vm0, %v1221_v52 }
 0xc40   :  { %1563 = vmatpush.bf16.msrb.mxu3 %v2536_v8 }
 0xc44   :  { %1564 = vmatpush.bf16.msrb.mxu3 %v2550_v21 }
 0xc4f   :  { %2021 = vmatmul.msk.bf16.vlgmr.msra.gmra.mxu3 %vm149_vm0, %v2752_v15 }
 0xc5f   :  { %2025 = vmatmul.msk.bf16.vlgmr.msrb.gmra.mxu3 %vm149_vm0, %v1438_v49 }
 0xcc2   :  { %v1247_v8 = vpop.f32.mrf.mxu3 }
 0xcc3   :  { %v1248_v21 = vadd.f32 %v1247_v8, %v2758_v34 }
 0xcc5   :  { %v1252_v38 = vadd.f32 %v1248_v21, %v2588_v23 }
 0xcc7   :  { %v1254_v16 = vsel %vm149_vm0, %v1252_v38, 0.0 }
 0xcc8   :  { %1255 = vadd.xlane.f32.xlu2 %v1254_v16 }
 0xcca   :  { %v1249_v17 = vpop.f32.mrf.mxu3 }
 0xccb   :  { %v1250_v22 = vadd.f32 %v1249_v17, %v2758_v34 }
 0xccd   :  { %v1253_v55 = vadd.f32 %v1250_v22, %v2591_v25  ;;  %v2773_v25 = vld [vmem:[%s3053_s8 + $0x18] sm:$0xff] }
 0xcce   :  { %1327 = vmatpush.bf16.msra.mxu0 %v2773_v25 }
 0xccf   :  { %v1257_v27 = vsel %vm149_vm0, %v1253_v55, 0.0 }
 0xcd0   :  { %1258 = vadd.xlane.f32.xlu1 %v1257_v27 }
 0xcd2   :  { %1328 = vmatpush.bf16.msra.mxu0 %v2780_v43 }
 0xcd6   :  { %1480 = vmatpush.bf16.msrb.mxu0 %v2621_v53 }
 0xcda   :  { %1481 = vmatpush.bf16.msrb.mxu0 %v2627_v58  ;;  %v2787_v58 = vperm.slane %v2568_v1, 6 }
 0xd3b   :  { %v1256_v62 = vpop.xlane.xlu2 %1255 }
 0xd3c   :  { %v1260_v31 = vmul.f32 %v1256_v62, %v2281_v14  ;;  %v2790_v62 = vperm.slane %v2568_v1, 7  ;;  %v2806_v1 = vld [vmem:[%s3053_s8 + $0x28] sm:$0xff] }
 0xd3d   :  { %1360 = vmatpush.bf16.msra.mxu1 %v2806_v1 }
 0xd3e   :  { %v1262_v39 = vsub.f32 %v1252_v38, %v1260_v31 }
 0xd40   :  { %v1264_v40 = vmul.f32 %v1262_v39, %v1262_v39 }
 0xd42   :  { %v1266_v41 = vsel %vm149_vm0, %v1264_v40, 0.0 }
 0xd43   :  { %v1259_v24 = vpop.xlane.xlu1 %1258  ;;  %1267 = vadd.xlane.f32.xlu0 %v1266_v41 }
 0xd44   :  { %v1261_v23 = vmul.f32 %v1259_v24, %v2281_v14 }
 0xd46   :  { %v1263_v5 = vsub.f32 %v1253_v55, %v1261_v23 }
 0xd48   :  { %v1265_v42 = vmul.f32 %v1263_v5, %v1263_v5 }
 0xd4a   :  { %v1269_v19 = vsel %vm149_vm0, %v1265_v42, 0.0 }
 0xd4b   :  { %1270 = vadd.xlane.f32.xlu0 %v1269_v19 }
 0xdb6   :  { %v1268_v18 = vpop.xlane.xlu0 %1267 }
 0xdb7   :  { %v1272_v49 = vmul.f32 %v1268_v18, %v2281_v14 }
 0xdb9   :  { %v1274_v13 = vadd.f32 1e-08, %v1272_v49 }
 0xdbb   :  { %2146 = vrsqrt.f32 %v1274_v13  ;;  %vm1282_vm11 = vweird.f32 %v1274_v13 }
 0xdbe   :  { %v1271_v44 = vpop.xlane.xlu0 %1270 }
 0xdbf   :  { %v1273_v51 = vmul.f32 %v1271_v44, %v2281_v14 }
 0xdc1   :  { %v2147_v57 = vpop.eup %2146  ;;  %v1275_v3 = vadd.f32 1e-08, %v1273_v51 }
 0xdc2   :  { %v1277_v4 = vmul.f32 %v2147_v57, %v1274_v13  ;;  %vm1283_vm10 = vweird.f32 %v2147_v57 }
 0xdc3   :  { %2148 = vrsqrt.f32 %v1275_v3  ;;  %vm1284_vm12 = vmor %vm1282_vm11, %vm1283_vm10  ;;  %vm1292_vm14 = vweird.f32 %v1275_v3 }
 0xdc4   :  { %v1278_v12 = vmul.f32 %v2147_v57, %v1277_v4  ;;  %v1451_v4 = vpop.f32.mrf.mxu2 }
 0xdc6   :  { %v1279_v52 = vmul.f32 0.5, %v1278_v12 }
 0xdc8   :  { %v1280_v60 = vsub.f32 1.5, %v1279_v52 }
 0xdc9   :  { %v2149_v61 = vpop.eup %2148 }
 0xdca   :  { %v1281_v8 = vmul.f32 %v2147_v57, %v1280_v60  ;;  %v1287_v21 = vmul.f32 %v2149_v61, %v1275_v3  ;;  %vm1293_vm13 = vweird.f32 %v2149_v61 }
 0xdcb   :  { %vm1294_vm15 = vmor %vm1292_vm14, %vm1293_vm13 }
 0xdcc   :  { %v1288_v38 = vmul.f32 %v2149_v61, %v1287_v21  ;;  %v1285_v53 = vsel %vm1284_vm12, %v2147_v57, %v1281_v8  ;;  %v1453_v60 = vpop.f32.mrf.mxu2 }
 0xdcd   :  { %v1296_v22 = vmul.f32 %v1285_v53, %v1262_v39  ;;  %v1454_v21 = vadd.f32 %v1453_v60, %v2612_v48  ;;  %v1452_v53 = vadd.f32 %v1451_v4, %v2612_v48 }
 0xdce   :  { %v1289_v16 = vmul.f32 0.5, %v1288_v38 }
 0xdcf   :  { %v1299_v31 = vmul.f32 %v2787_v58, %v1296_v22 }
 0xdd0   :  { %v1290_v17 = vsub.f32 1.5, %v1289_v16 }
 0xdd1   :  { %v2795_v24 = vadd.f32 %v2790_v62, %v1299_v31 }
 0xdd2   :  { %v1291_v55 = vmul.f32 %v2149_v61, %v1290_v17  ;;  %v1488_v17 = vpack.c.bf16 %v1454_v21, %v1452_v53 }
 0xdd4   :  { %v1295_v27 = vsel %vm1294_vm15, %v2149_v61, %v1291_v55 }
 0xdd5   :  { %v1297_v40 = vmul.f32 %v1295_v27, %v1263_v5  ;;  %v1469_v5 = vpop.f32.mrf.mxu3 }
 0xdd6   :  { %v1470_v19 = vadd.f32 %v1469_v5, %v2601_v28 }
 0xdd7   :  { %v1300_v41 = vmul.f32 %v2787_v58, %v1297_v40 }
 0xdd9   :  { %v2798_v23 = vadd.f32 %v2790_v62, %v1300_v41 }
 0xddb   :  { %v1304_v39 = vpack.c.bf16 %v2798_v23, %v2795_v24 }
 0xddd   :  { %2010 = vmatmul.msk.bf16.vlgmr.msra.gmra.mxu0 %vm149_vm0, %v1304_v39  ;;  %v1471_v42 = vpop.f32.mrf.mxu3 }
 0xdde   :  { %1577 = vmatpush.bf16.msra.mxu0 %v2636_v59  ;;  %v1472_v59 = vadd.f32 %v1471_v42, %v2601_v28 }
 0xde0   :  { %v1489_v18 = vpack.c.bf16 %v1472_v59, %v1470_v19 }
 0xde2   :  { %1578 = vmatpush.bf16.msra.mxu0 %v2643_v0  ;;  %v2822_v0 = vld [vmem:[%s3053_s8 + $0x20] sm:$0xff]  ;;  %v1494_v49 = vsel %vm402_vm5, %v1489_v18, 0 }
 0xde3   :  { %1361 = vmatpush.bf16.msra.mxu1 %v2822_v0 }
 0xde7   :  { %1503 = vmatpush.bf16.xpose.msrb.mxu1 %v1494_v49 }
 0xded   :  { %2022 = vmatmul.msk.bf16.vlgmr.msrb.gmra.mxu0 %vm149_vm0, %v2752_v15 }
 0xdee   :  { %1688 = vmatpush.bf16.msrb.mxu0 %v2727_v63  ;;  %v2829_v63 = vld [vmem:[%s3052_s6 + $0x8] sm:$0xf] }
 0xdef   :  { %v2832_v13 = vperm.slane %v2829_v63, 0 }
 0xdf2   :  { %1689 = vmatpush.bf16.msrb.mxu0 %v2733_v35 }
 0xdfd   :  { %2026 = vmatmul.msk.bf16.vlgmr.msra.gmra.mxu0 %vm149_vm0, %v2752_v15 }
 0xe5a   :  { %v1330_v35 = vpop.f32.mrf.mxu0 }
 0xe5b   :  { %v1331_v28 = vadd.f32 %v1330_v35, %v2832_v13 }
 0xe5d   :  { %v1335_v57 = vmax.f32 %v1331_v28, 0.0 }
 0xe62   :  { %v1332_v44 = vpop.f32.mrf.mxu0 }
 0xe63   :  { %v1333_v51 = vadd.f32 %v1332_v44, %v2832_v13 }
 0xe65   :  { %v1336_v3 = vmax.f32 %v1333_v51, 0.0 }
 0xe67   :  { %v1337_v12 = vpack.c.bf16 %v1336_v3, %v1335_v57 }
 0xe69   :  { %2019 = vmatmul.msk.bf16.vlgmr.msra.gmra.mxu1 %vm149_vm0, %v1337_v12 }
 0xe6a   :  { %v1483_v52 = vpop.f32.mrf.mxu0  ;;  %1591 = vmatpush.bf16.msra.mxu1 %v2683_v33 }
 0xe6b   :  { %v1484_v61 = vadd.f32 %v1483_v52, %v2659_v32 }
 0xe6e   :  { %1592 = vmatpush.bf16.msra.mxu1 %v2691_v36 }
 0xe72   :  { %v1485_v8 = vpop.f32.mrf.mxu0 }
 0xe73   :  { %v1486_v38 = vadd.f32 %v1485_v8, %v2659_v32 }
 0xe75   :  { %v1539_v16 = vpack.c.bf16 %v1486_v38, %v1484_v61 }
 0xe77   :  { %1550 = vmatpush.bf16.msrb.mxu2 %v1539_v16  ;;  %v1566_v16 = vpop.f32.mrf.mxu3 }
 0xe79   :  { %2023 = vmatmul.msk.bf16.vlgmr.msrb.gmra.mxu1 %vm402_vm5, %v1488_v17 }
 0xe7a   :  { %v1580_v22 = vpop.f32.mrf.mxu0  ;;  %1756 = vmatpush.bf16.msrb.mxu1 %v2773_v25 }
 0xe7b   :  { %v1581_v36 = vadd.f32 %v1580_v22, %v2669_v46 }
 0xe7e   :  { %1757 = vmatpush.bf16.msrb.mxu1 %v2780_v43 }
 0xe7f   :  { %v1568_v22 = vpop.f32.mrf.mxu3 }
 0xe82   :  { %v1582_v33 = vpop.f32.mrf.mxu0 }
 0xe83   :  { %v1583_v55 = vadd.f32 %v1582_v33, %v2669_v46  ;;  %v1569_v33 = vadd.f32 %v1568_v22, %v2675_v26 }
 0xe85   :  { %v1600_v27 = vpack.c.bf16 %v1583_v55, %v1581_v36  ;;  %v1567_v36 = vadd.f32 %v1566_v16, %v2675_v26 }
 0xe87   :  { %v1605_v32 = vsel %vm402_vm5, %v1600_v27, 0  ;;  %v1599_v55 = vpack.c.bf16 %v1569_v33, %v1567_v36 }
 0xe88   :  { %1614 = vmatpush.bf16.xpose.msra.mxu2 %v1605_v32 }
 0xe89   :  { %2027 = vmatmul.msk.bf16.vlgmr.msra.gmra.mxu1 %vm149_vm0, %v2752_v15 }
 0xee6   :  { %v2851_v48 = vpop.f32.mrf.mxu1 }
 0xeee   :  { %v2853_v31 = vpop.f32.mrf.mxu1 }
 0xef6   :  { %v1505_v40 = vpop.f32.mrf.mxu1 }
 0xef7   :  { %v1510_v25 = vmul.f32 0.25, %v1505_v40 }
 0xef9   :  { %v1512_v43 = vadd.f32 %v1510_v25, %v2416_v30 }
 0xefb   :  { %v1514_v41 = vadd.f32 %v1512_v43, %v2437_v11 }
 0xefd   :  { %v1516_v39 = vsel %vm402_vm5, %v1514_v41, -inf }
 0xefe   :  { %1517 = vmax.xlane.f32.xlu2 %v1516_v39  ;;  %v1507_v46 = vpop.f32.mrf.mxu1 }
 0xeff   :  { %v1511_v5 = vmul.f32 0.25, %v1507_v46 }
 0xf01   :  { %v1513_v42 = vadd.f32 %v1511_v5, %v2425_v56 }
 0xf03   :  { %v1515_v19 = vadd.f32 %v1513_v42, %v2439_v37 }
 0xf05   :  { %v1519_v15 = vsel %vm402_vm5, %v1515_v19, -inf }
 0xf06   :  { %v1594_v59 = vpop.f32.mrf.mxu1  ;;  %1520 = vmax.xlane.f32.xlu0 %v1519_v15 }
 0xf07   :  { %v1595_v49 = vadd.f32 %v1594_v59, %v2702_v29 }
 0xf0e   :  { %v1596_v18 = vpop.f32.mrf.mxu1 }
 0xf0f   :  { %v1597_v35 = vadd.f32 %v1596_v18, %v2702_v29 }
 0xf11   :  { %v1650_v28 = vpack.c.bf16 %v1597_v35, %v1595_v49 }
 0xf13   :  { %1661 = vmatpush.bf16.msra.mxu3 %v1650_v28 }
 0xf71   :  { %v1518_v11 = vpop.xlane.xlu2 %1517 }
 0xf72   :  { %v1522_v44 = vsub.f32 %v1514_v41, %v1518_v11 }
 0xf74   :  { %v1524_v51 = vmul.f32 1.442695, %v1522_v44 }
 0xf76   :  { %2150 = vpow2.f32 %v1524_v51 }
 0xf79   :  { %v1521_v57 = vpop.xlane.xlu0 %1520 }
 0xf7a   :  { %v1523_v3 = vsub.f32 %v1515_v19, %v1521_v57 }
 0xf7c   :  { %v2151_v4 = vpop.eup %2150  ;;  %v1526_v12 = vmul.f32 1.442695, %v1523_v3 }
 0xf7d   :  { %v1528_v37 = vsel %vm402_vm5, %v2151_v4, 0.0 }
 0xf7e   :  { %2152 = vpow2.f32 %v1526_v12  ;;  %1529 = vadd.xlane.f32.xlu2 %v1528_v37 }
 0xf84   :  { %v2153_v52 = vpop.eup %2152 }
 0xf85   :  { %v1531_v60 = vsel %vm402_vm5, %v2153_v52, 0.0 }
 0xf86   :  { %1532 = vadd.xlane.f32.xlu0 %v1531_v60  ;;  %v56_v60 = vld [vmem:[%s3054_s5 + $0x8] sm:$0xff] }
 0xff1   :  { %v1530_v61 = vpop.xlane.xlu2 %1529 }
 0xff2   :  { %2154 = vrcp.f32 %v1530_v61  ;;  %v54_v61 = vld [vmem:[%s3055_s4 + $0x8] sm:$0xff] }
 0xff8   :  { %v2155_v8 = vpop.eup %2154 }
 0xff9   :  { %v1533_v29 = vpop.xlane.xlu0 %1532  ;;  %v1536_v38 = vmul.f32 %v2155_v8, %v2151_v4  ;;  %v2189_v4 = vmov 0  }
 0xffa   :  { %2156 = vrcp.f32 %v1533_v29  ;;  %2090 = vset.pattern.permute.xlu0 %v2189_v4  ;;  %2089 = vset.pattern.permute.xlu1 %v2189_v4 }
 0xffb   :  { %2091 = vset.pattern.permute.xlu2 %v2189_v4 }
0x1000   :  { %v2157_v21 = vpop.eup %2156 }
0x1001   :  { %v1537_v53 = vmul.f32 %v2157_v21, %v2153_v52 }
0x1003   :  { %v1538_v17 = vpack.c.bf16 %v1537_v53, %v1536_v38  ;;  %v780_v38 = vadd.f32 %v2647_v2, %v752_v50 }
0x1005   :  { %2024 = vmatmul.msk.bf16.vlgmr.msrb.gmra.mxu2 %vm402_vm5, %v1538_v17  ;;  %v783_v22 = vadd.f32 %v780_v38, %v2573_v10 }
0x1006   :  { %1776 = vmatpush.bf16.msrb.mxu2 %v2806_v1 }
0x100a   :  { %1777 = vmatpush.bf16.msrb.mxu2 %v2822_v0 }
0x1015   :  { %2028 = vmatmul.msk.bf16.vlgmr.msra.gmra.mxu2 %vm402_vm5, %v1599_v55 }
0x1088   :  { %v1552_v27 = vpop.f32.mrf.mxu2 }
0x1090   :  { %v1554_v32 = vpop.f32.mrf.mxu2 }
0x1098   :  { %v1616_v40 = vpop.f32.mrf.mxu2 }
0x1099   :  { %v1621_v25 = vmul.f32 0.25, %v1616_v40 }
0x109b   :  { %v1623_v43 = vadd.f32 %v1621_v25, %v2416_v30 }
0x109d   :  { %v1625_v41 = vadd.f32 %v1623_v43, %v2451_v6 }
0x109f   :  { %v1627_v1 = vsel %vm402_vm5, %v1625_v41, -inf }
0x10a0   :  { %1628 = vmax.xlane.f32.xlu2 %v1627_v1  ;;  %v1618_v0 = vpop.f32.mrf.mxu2 }
0x10a1   :  { %v1622_v39 = vmul.f32 0.25, %v1618_v0 }
0x10a3   :  { %v1624_v46 = vadd.f32 %v1622_v39, %v2425_v56 }
0x10a5   :  { %v1626_v26 = vadd.f32 %v1624_v46, %v2453_v7 }
0x10a7   :  { %v1630_v5 = vsel %vm402_vm5, %v1626_v26, -inf }
0x10a8   :  { %1631 = vmax.xlane.f32.xlu0 %v1630_v5 }
0x1113   :  { %v1629_v42 = vpop.xlane.xlu2 %1628 }
0x1114   :  { %v1633_v19 = vsub.f32 %v1625_v41, %v1629_v42  ;;  %v53_v42 = vld [vmem:[%s3055_s4] sm:$0xff] }
0x1116   :  { %v1635_v15 = vmul.f32 1.442695, %v1633_v19 }
0x1118   :  { %2158 = vpow2.f32 %v1635_v15 }
0x111b   :  { %v1632_v59 = vpop.xlane.xlu0 %1631 }
0x111c   :  { %v1634_v30 = vsub.f32 %v1626_v26, %v1632_v59 }
0x111e   :  { %v2159_v18 = vpop.eup %2158  ;;  %v1637_v6 = vmul.f32 1.442695, %v1634_v30  ;;  %v2916_v30 = vperm.slane %v2829_v63, 1 }
0x111f   :  { %v1639_v49 = vsel %vm402_vm5, %v2159_v18, 0.0 }
0x1120   :  { %2160 = vpow2.f32 %v1637_v6  ;;  %1640 = vadd.xlane.f32.xlu1 %v1639_v49 }
0x1126   :  { %v2161_v35 = vpop.eup %2160 }
0x1127   :  { %v1642_v56 = vsel %vm402_vm5, %v2161_v35, 0.0 }
0x1128   :  { %1643 = vadd.xlane.f32.xlu2 %v1642_v56 }
0x1193   :  { %v1641_v7 = vpop.xlane.xlu1 %1640 }
0x1194   :  { %2162 = vrcp.f32 %v1641_v7 }
0x119a   :  { %v2163_v11 = vpop.eup %2162 }
0x119b   :  { %v1644_v28 = vpop.xlane.xlu2 %1643  ;;  %v1647_v51 = vmul.f32 %v2163_v11, %v2159_v18 }
0x119c   :  { %2164 = vrcp.f32 %v1644_v28 }
0x11a2   :  { %v2165_v44 = vpop.eup %2164 }
0x11a3   :  { %v1648_v57 = vmul.f32 %v2165_v44, %v2161_v35  ;;  %v1364_v35 = vadd.f32 %v2851_v48, %v2916_v30 }
0x11a5   :  { %v1649_v3 = vpack.c.bf16 %v1648_v57, %v1647_v51  ;;  %v1368_v11 = vadd.f32 %v1364_v35, %v2795_v24  ;;  %v782_v24 = vadd.f32 %v2631_v20, %v2571_v9 }
0x11a7   :  { %2029 = vmatmul.msk.bf16.vlgmr.msra.gmra.mxu3 %vm402_vm5, %v1649_v3 }
0x122a   :  { %v1663_v12 = vpop.f32.mrf.mxu3 }
0x1232   :  { %v1665_v37 = vpop.f32.mrf.mxu3 }
0x1233   :  { %v2084_v52 = vpack.i.bf16 %v1665_v37, %v1663_v12 }
0x1235   :  { %2085 = vrot.lane.b32.xlu0 %v2084_v52, %s2188_s2 }
0x123d   :  { %791 = vperm.xlu0 %2090, %v56_v60  }
0x1245   :  { %1377 = vperm.xlu0 %2090, %v54_v61  }
0x12a7   :  { %v2086_v29 = vpop.permute.xlu0 %2085 }
0x12a8   :  { %v2088_v8 = vunpack.i.h.bf16 %v2086_v29  ;;  %v2087_v21 = vunpack.i.l.bf16 %v2086_v29 }
0x12aa   :  { %v1677_v53 = vsel %vm402_vm5, %v1554_v32, %v2088_v8  ;;  %v1676_v16 = vsel %vm402_vm5, %v1552_v27, %v2087_v21  ;;  %v1366_v8 = vadd.f32 %v2853_v31, %v2916_v30 }
0x12ab   :  { %v1678_v17 = vpack.c.bf16 %v1677_v53, %v1676_v16 }
0x12ad   :  { %2030 = vmatmul.msk.bf16.vlgmr.msrb.gmra.mxu0 %vm149_vm0, %v1678_v17 }
0x12af   :  { %v792_v33 = vpop.permute.xlu0 %791 }
0x12b0   :  { %v2894_v36 = vmul.f32 %v792_v33, %v783_v22  ;;  %v1369_v33 = vadd.f32 %v1366_v8, %v2798_v23 }
0x12b2   :  { %v799_v55 = vsel %vm149_vm0, %v2894_v36, 0.0 }
0x12b3   :  { %800 = vadd.xlane.f32.xlu0 %v799_v55 }
0x12b7   :  { %v2934_v17 = vpop.permute.xlu0 %1377 }
0x12b8   :  { %v1381_v20 = vmul.f32 %v2934_v17, %v1369_v33 }
0x132a   :  { %v1691_v40 = vpop.f32.mrf.mxu0 }
0x132b   :  { %v1692_v54 = vadd.f32 %v1691_v40, %v2758_v34 }
0x132d   :  { %v1696_v50 = vadd.f32 %v1692_v54, %v2719_v45 }
0x132f   :  { %v1698_v2 = vsel %vm149_vm0, %v1696_v50, 0.0 }
0x1330   :  { %1699 = vadd.xlane.f32.xlu1 %v1698_v2  ;;  %v1385_v2 = vsel %vm149_vm0, %v1381_v20, 0.0 }
0x1332   :  { %v1693_v27 = vpop.f32.mrf.mxu0 }
0x1333   :  { %v1694_v32 = vadd.f32 %v1693_v27, %v2758_v34 }
0x1335   :  { %v1697_v10 = vadd.f32 %v1694_v32, %v2716_v47  ;;  %v55_v47 = vld [vmem:[%s3054_s5] sm:$0xff] }
0x1337   :  { %v1701_v25 = vsel %vm149_vm0, %v1697_v10, 0.0 }
0x1338   :  { %1702 = vadd.xlane.f32.xlu2 %v1701_v25 }
0x13a3   :  { %v1700_v43 = vpop.xlane.xlu1 %1699 }
0x13a4   :  { %v1704_v41 = vmul.f32 %v1700_v43, %v2281_v14 }
0x13a6   :  { %v1706_v1 = vsub.f32 %v1696_v50, %v1704_v41 }
0x13a8   :  { %v1708_v0 = vmul.f32 %v1706_v1, %v1706_v1 }
0x13aa   :  { %v1710_v39 = vsel %vm149_vm0, %v1708_v0, 0.0 }
0x13ab   :  { %v1703_v46 = vpop.xlane.xlu2 %1702  ;;  %1711 = vadd.xlane.f32.xlu1 %v1710_v39 }
0x13ac   :  { %v1705_v45 = vmul.f32 %v1703_v46, %v2281_v14 }
0x13ae   :  { %v1707_v26 = vsub.f32 %v1697_v10, %v1705_v45 }
0x13b0   :  { %v1709_v5 = vmul.f32 %v1707_v26, %v1707_v26 }
0x13b2   :  { %v1713_v34 = vsel %vm149_vm0, %v1709_v5, 0.0 }
0x13b3   :  { %1714 = vadd.xlane.f32.xlu2 %v1713_v34 }
0x13c4   :  { %786 = vperm.xlu1 %2089, %v55_v47  }
0x13cb   :  { %1372 = vperm.xlu2 %2091, %v53_v42  }
0x141e   :  { %v1712_v19 = vpop.xlane.xlu1 %1711 }
0x141f   :  { %v1716_v15 = vmul.f32 %v1712_v19, %v2281_v14 }
0x1421   :  { %v1718_v59 = vadd.f32 1e-08, %v1716_v15 }
0x1423   :  { %2166 = vrsqrt.f32 %v1718_v59  ;;  %vm1726_vm1 = vweird.f32 %v1718_v59 }
0x1426   :  { %v1715_v18 = vpop.xlane.xlu2 %1714 }
0x1427   :  { %v1717_v6 = vmul.f32 %v1715_v18, %v2281_v14 }
0x1429   :  { %v2167_v49 = vpop.eup %2166  ;;  %v1719_v56 = vadd.f32 1e-08, %v1717_v6 }
0x142a   :  { %v1721_v7 = vmul.f32 %v2167_v49, %v1718_v59  ;;  %vm1727_vm5 = vweird.f32 %v2167_v49 }
0x142b   :  { %2168 = vrsqrt.f32 %v1719_v56  ;;  %vm1728_vm2 = vmor %vm1726_vm1, %vm1727_vm5  ;;  %vm1736_vm4 = vweird.f32 %v1719_v56 }
0x142c   :  { %v1722_v28 = vmul.f32 %v2167_v49, %v1721_v7 }
0x142e   :  { %v1723_v44 = vmul.f32 0.5, %v1722_v28  ;;  %v2922_v51 = vpop.permute.xlu2 %1372 }
0x142f   :  { %v2925_v57 = vmul.f32 %v2922_v51, %v1368_v11 }
0x1430   :  { %v1724_v3 = vsub.f32 1.5, %v1723_v44 }
0x1431   :  { %v2169_v4 = vpop.eup %2168  ;;  %v1382_v12 = vsel %vm149_vm0, %v2925_v57, 0.0 }
0x1432   :  { %v1725_v37 = vmul.f32 %v2167_v49, %v1724_v3  ;;  %v1731_v48 = vmul.f32 %v2169_v4, %v1719_v56  ;;  %1383 = vadd.xlane.f32.xlu2 %v1382_v12  ;;  %vm1737_vm3 = vweird.f32 %v2169_v4  ;;  %v2962_v3 = vld [vmem:[%s3048_s9 + $0x8] sm:$0xff] }
0x1433   :  { %vm1738_vm6 = vmor %vm1736_vm4, %vm1737_vm3 }
0x1434   :  { %v1732_v52 = vmul.f32 %v2169_v4, %v1731_v48  ;;  %v1729_v60 = vsel %vm1728_vm2, %v2167_v49, %v1725_v37  ;;  %v843_v48 = vperm.slane %v2962_v3, 7 }
0x1435   :  { %v1740_v53 = vmul.f32 %v1729_v60, %v1706_v1 }
0x1436   :  { %v1733_v61 = vmul.f32 0.5, %v1732_v52  ;;  %v787_v29 = vpop.permute.xlu1 %786 }
0x1437   :  { %v794_v21 = vmul.f32 %v787_v29, %v782_v24  ;;  %v1742_v55 = vmul.f32 %v1740_v53, %v2787_v58  ;;  %v2978_v53 = vperm.slane %v2829_v63, 3 }
0x1438   :  { %v1734_v38 = vsub.f32 1.5, %v1733_v61 }
0x1439   :  { %v796_v16 = vsel %vm149_vm0, %v794_v21, 0.0  ;;  %v2941_v54 = vadd.f32 %v1742_v55, %v2790_v62 }
0x143a   :  { %v1735_v22 = vmul.f32 %v2169_v4, %v1734_v38  ;;  %797 = vadd.xlane.f32.xlu1 %v796_v16 }
0x143c   :  { %v1739_v9 = vsel %vm1738_vm6, %v2169_v4, %v1735_v22  ;;  %v840_v4 = vperm.slane %v2962_v3, 6 }
0x143d   :  { %v1741_v31 = vmul.f32 %v1739_v9, %v1707_v26  ;;  %v801_v9 = vpop.xlane.xlu0 %800 }
0x143f   :  { %v1743_v40 = vmul.f32 %v1741_v31, %v2787_v58  ;;  %v803_v31 = vmul.f32 %v801_v9, %v2281_v14 }
0x1441   :  { %v2944_v50 = vadd.f32 %v1743_v40, %v2790_v62 }
0x1442   :  { %1386 = vadd.xlane.f32.xlu1 %v1385_v2  ;;  %v805_v2 = vsub.f32 %v2894_v36, %v803_v31 }
0x1443   :  { %v1746_v23 = vpack.c.bf16 %v2944_v50, %v2941_v54 }
0x1445   :  { %2031 = vmatmul.msk.bf16.vlgmr.msrb.gmra.mxu1 %vm149_vm0, %v1746_v23 }
0x14ad   :  { %v798_v27 = vpop.xlane.xlu1 %797 }
0x14ae   :  { %v802_v32 = vmul.f32 %v798_v27, %v2281_v14  ;;  %v1384_v27 = vpop.xlane.xlu2 %1383 }
0x14b0   :  { %v804_v10 = vsub.f32 %v794_v21, %v802_v32  ;;  %v2971_v21 = vperm.slane %v2829_v63, 2 }
0x14b2   :  { %v806_v25 = vmul.f32 %v804_v10, %v804_v10 }
0x14b4   :  { %v808_v58 = vsel %vm149_vm0, %v806_v25, 0.0  ;;  %v1388_v25 = vmul.f32 %v1384_v27, %v2281_v14 }
0x14b5   :  { %809 = vadd.xlane.f32.xlu1 %v808_v58  ;;  %v1387_v43 = vpop.xlane.xlu1 %1386 }
0x14b6   :  { %v1389_v62 = vmul.f32 %v1387_v43, %v2281_v14  ;;  %v807_v43 = vmul.f32 %v805_v2, %v805_v2 }
0x14b8   :  { %v1391_v41 = vsub.f32 %v1381_v20, %v1389_v62  ;;  %v811_v36 = vsel %vm149_vm0, %v807_v43, 0.0 }
0x14ba   :  { %v1393_v1 = vmul.f32 %v1391_v41, %v1391_v41 }
0x14bc   :  { %v1397_v0 = vsel %vm149_vm0, %v1393_v1, 0.0 }
0x14bd   :  { %1398 = vadd.xlane.f32.xlu1 %v1397_v0 }
0x14c2   :  { %v1759_v39 = vpop.f32.mrf.mxu1 }
0x14c3   :  { %v1760_v46 = vadd.f32 %v1759_v39, %v2832_v13 }
0x14c5   :  { %v1764_v5 = vmax.f32 %v1760_v46, 0.0 }
0x14ca   :  { %v1761_v45 = vpop.f32.mrf.mxu1 }
0x14cb   :  { %v1762_v26 = vadd.f32 %v1761_v45, %v2832_v13 }
0x14cd   :  { %v1765_v34 = vmax.f32 %v1762_v26, 0.0 }
0x14cf   :  { %v1766_v47 = vpack.c.bf16 %v1765_v34, %v1764_v5 }
0x14d1   :  { %2032 = vmatmul.msk.bf16.vlgmr.msrb.gmra.mxu2 %vm149_vm0, %v1766_v47 }
0x1528   :  { %v810_v42 = vpop.xlane.xlu1 %809 }
0x1529   :  { %v814_v19 = vmul.f32 %v810_v42, %v2281_v14 }
0x152b   :  { %v816_v15 = vadd.f32 1e-08, %v814_v19 }
0x152d   :  { %2170 = vrsqrt.f32 %v816_v15  ;;  %vm824_vm8 = vweird.f32 %v816_v15 }
0x1530   :  { %v1399_v59 = vpop.xlane.xlu1 %1398 }
0x1531   :  { %v1401_v18 = vmul.f32 %v1399_v59, %v2281_v14 }
0x1533   :  { %v2171_v6 = vpop.eup %2170  ;;  %v1403_v49 = vadd.f32 1e-08, %v1401_v18 }
0x1534   :  { %v819_v35 = vmul.f32 %v2171_v6, %v816_v15  ;;  %vm825_vm7 = vweird.f32 %v2171_v6 }
0x1535   :  { %2172 = vrsqrt.f32 %v1403_v49  ;;  %vm826_vm9 = vmor %vm824_vm8, %vm825_vm7  ;;  %vm1420_vm11 = vweird.f32 %v1403_v49 }
0x1536   :  { %v820_v56 = vmul.f32 %v2171_v6, %v819_v35 }
0x1538   :  { %v821_v7 = vmul.f32 0.5, %v820_v56 }
0x153a   :  { %v822_v13 = vsub.f32 1.5, %v821_v7 }
0x153b   :  { %v2173_v28 = vpop.eup %2172 }
0x153c   :  { %v823_v11 = vmul.f32 %v2171_v6, %v822_v13  ;;  %v1415_v44 = vmul.f32 %v2173_v28, %v1403_v49  ;;  %vm1421_vm10 = vweird.f32 %v2173_v28 }
0x153d   :  { %vm1422_vm12 = vmor %vm1420_vm11, %vm1421_vm10 }
0x153e   :  { %v827_v12 = vsel %vm826_vm9, %v2171_v6, %v823_v11  ;;  %v1416_v37 = vmul.f32 %v2173_v28, %v1415_v44 }
0x153f   :  { %v838_v52 = vmul.f32 %v827_v12, %v804_v10 }
0x1540   :  { %v1417_v24 = vmul.f32 0.5, %v1416_v37 }
0x1541   :  { %v841_v60 = vmul.f32 %v840_v4, %v838_v52 }
0x1542   :  { %v1418_v61 = vsub.f32 1.5, %v1417_v24 }
0x1543   :  { %v844_v29 = vadd.f32 %v843_v48, %v841_v60 }
0x1544   :  { %v1419_v8 = vmul.f32 %v2173_v28, %v1418_v61 }
0x1545   :  { %846 = vst.msk [vmem:[%s3056_s13] sm:$0xff] %vm149_vm0, %v844_v29 }
0x1546   :  { %v1423_v38 = vsel %vm1422_vm12, %v2173_v28, %v1419_v8 }
0x1547   :  { %v1425_v16 = vmul.f32 %v1423_v38, %v1391_v41 }
0x1549   :  { %v1428_v22 = vmul.f32 %v2971_v21, %v1425_v16 }
0x154b   :  { %v1431_v33 = vadd.f32 %v2978_v53, %v1428_v22 }
0x154d   :  { %1433 = vst.msk [vmem:[%s3057_s12 + $0x8] sm:$0xff] %vm149_vm0, %v1431_v33 }
0x1554   :  { %v1779_v20 = vpop.f32.mrf.mxu2 }
0x1555   :  { %v1780_v55 = vadd.f32 %v1779_v20, %v2916_v30 }
0x1557   :  { %v1784_v40 = vadd.f32 %v1780_v55, %v2941_v54  ;;  %v1390_v54 = vsub.f32 %v2925_v57, %v1388_v25 }
0x1559   :  { %v1786_v63 = vmul.f32 %v1784_v40, %v2922_v51  ;;  %v1392_v41 = vmul.f32 %v1390_v54, %v1390_v54 }
0x155b   :  { %v1788_v23 = vsel %vm149_vm0, %v1786_v63, 0.0  ;;  %v1394_v1 = vsel %vm149_vm0, %v1392_v41, 0.0 }
0x155c   :  { %v1781_v32 = vpop.f32.mrf.mxu2  ;;  %1789 = vadd.xlane.f32.xlu0 %v1788_v23 }
0x155d   :  { %v1782_v10 = vadd.f32 %v1781_v32, %v2916_v30 }
0x155f   :  { %v1785_v58 = vadd.f32 %v1782_v10, %v2944_v50 }
0x1561   :  { %v1787_v62 = vmul.f32 %v1785_v58, %v2934_v17 }
0x1563   :  { %v1791_v51 = vsel %vm149_vm0, %v1787_v62, 0.0 }
0x1564   :  { %1792 = vadd.xlane.f32.xlu2 %v1791_v51  ;;  %812 = vadd.xlane.f32.xlu0 %v811_v36 }
0x156c   :  { %1395 = vadd.xlane.f32.xlu2 %v1394_v1 }
0x15cf   :  { %v1790_v30 = vpop.xlane.xlu0 %1789 }
0x15d0   :  { %v1794_v0 = vmul.f32 %v1790_v30, %v2281_v14 }
0x15d2   :  { %v3001_v39 = vsub.f32 %v1786_v63, %v1794_v0 }
0x15d4   :  { %v1798_v17 = vmul.f32 %v3001_v39, %v3001_v39 }
0x15d6   :  { %v1800_v57 = vsel %vm149_vm0, %v1798_v17, 0.0 }
0x15d7   :  { %v1793_v50 = vpop.xlane.xlu2 %1792  ;;  %1801 = vadd.xlane.f32.xlu0 %v1800_v57  ;;  %v813_v46 = vpop.xlane.xlu0 %812 }
0x15d8   :  { %v1795_v45 = vmul.f32 %v1793_v50, %v2281_v14  ;;  %v815_v26 = vmul.f32 %v813_v46, %v2281_v14 }
0x15da   :  { %v3008_v5 = vsub.f32 %v1787_v62, %v1795_v45  ;;  %v817_v34 = vadd.f32 1e-08, %v815_v26 }
0x15dc   :  { %2174 = vrsqrt.f32 %v817_v34  ;;  %v1799_v47 = vmul.f32 %v3008_v5, %v3008_v5  ;;  %vm834_vm14 = vweird.f32 %v817_v34 }
0x15de   :  { %v1803_v42 = vsel %vm149_vm0, %v1799_v47, 0.0 }
0x15df   :  { %1804 = vadd.xlane.f32.xlu2 %v1803_v42  ;;  %v1396_v19 = vpop.xlane.xlu2 %1395 }
0x15e0   :  { %v1400_v15 = vmul.f32 %v1396_v19, %v2281_v14 }
0x15e2   :  { %v2175_v59 = vpop.eup %2174  ;;  %v1402_v18 = vadd.f32 1e-08, %v1400_v15 }
0x15e3   :  { %v829_v6 = vmul.f32 %v2175_v59, %v817_v34  ;;  %vm835_vm13 = vweird.f32 %v2175_v59 }
0x15e4   :  { %2176 = vrsqrt.f32 %v1402_v18  ;;  %vm836_vm15 = vmor %vm834_vm14, %vm835_vm13  ;;  %vm1410_vm1 = vweird.f32 %v1402_v18 }
0x15e5   :  { %v830_v49 = vmul.f32 %v2175_v59, %v829_v6 }
0x15e7   :  { %v831_v35 = vmul.f32 0.5, %v830_v49 }
0x15e9   :  { %v832_v56 = vsub.f32 1.5, %v831_v35 }
0x15ea   :  { %v2177_v7 = vpop.eup %2176 }
0x15eb   :  { %v833_v13 = vmul.f32 %v2175_v59, %v832_v56  ;;  %v1405_v28 = vmul.f32 %v2177_v7, %v1402_v18  ;;  %vm1411_vm5 = vweird.f32 %v2177_v7 }
0x15ec   :  { %vm1412_vm2 = vmor %vm1410_vm1, %vm1411_vm5 }
0x15ed   :  { %v837_v11 = vsel %vm836_vm15, %v2175_v59, %v833_v13  ;;  %v1406_v44 = vmul.f32 %v2177_v7, %v1405_v28 }
0x15ee   :  { %v839_v12 = vmul.f32 %v837_v11, %v805_v2 }
0x15ef   :  { %v1407_v37 = vmul.f32 0.5, %v1406_v44 }
0x15f0   :  { %v842_v52 = vmul.f32 %v840_v4, %v839_v12 }
0x15f1   :  { %v1408_v24 = vsub.f32 1.5, %v1407_v37 }
0x15f2   :  { %v845_v60 = vadd.f32 %v843_v48, %v842_v52 }
0x15f3   :  { %v1409_v61 = vmul.f32 %v2177_v7, %v1408_v24 }
0x15f4   :  { %847 = vst.msk [vmem:[%s3056_s13 + $0x8] sm:$0xff] %vm149_vm0, %v845_v60 }
0x15f5   :  { %v1413_v29 = vsel %vm1412_vm2, %v2177_v7, %v1409_v61 }
0x15f6   :  { %v1424_v8 = vmul.f32 %v1413_v29, %v1390_v54 }
0x15f8   :  { %v1427_v38 = vmul.f32 %v2971_v21, %v1424_v8 }
0x15fa   :  { %v1430_v16 = vadd.f32 %v2978_v53, %v1427_v38 }
0x15fc   :  { %1432 = vst.msk [vmem:[%s3057_s12] sm:$0xff] %vm149_vm0, %v1430_v16 }
0x164a   :  { %v1802_v3 = vpop.xlane.xlu0 %1801 }
0x164b   :  { %v1806_v4 = vmul.f32 %v1802_v3, %v2281_v14 }
0x164d   :  { %v1808_v48 = vadd.f32 1e-08, %v1806_v4 }
0x164f   :  { %2178 = vrsqrt.f32 %v1808_v48  ;;  %vm1816_vm4 = vweird.f32 %v1808_v48 }
0x1652   :  { %v1805_v22 = vpop.xlane.xlu2 %1804 }
0x1653   :  { %v1807_v33 = vmul.f32 %v1805_v22, %v2281_v14 }
0x1655   :  { %v2179_v9 = vpop.eup %2178  ;;  %v1809_v20 = vadd.f32 1e-08, %v1807_v33 }
0x1656   :  { %v1811_v55 = vmul.f32 %v2179_v9, %v1808_v48  ;;  %vm1817_vm3 = vweird.f32 %v2179_v9 }
0x1657   :  { %2180 = vrsqrt.f32 %v1809_v20  ;;  %vm1818_vm6 = vmor %vm1816_vm4, %vm1817_vm3  ;;  %vm1826_vm8 = vweird.f32 %v1809_v20 }
0x1658   :  { %v1812_v31 = vmul.f32 %v2179_v9, %v1811_v55 }
0x165a   :  { %v1813_v40 = vmul.f32 0.5, %v1812_v31 }
0x165c   :  { %v1814_v63 = vsub.f32 1.5, %v1813_v40 }
0x165d   :  { %v2181_v2 = vpop.eup %2180 }
0x165e   :  { %v1815_v23 = vmul.f32 %v2179_v9, %v1814_v63  ;;  %v1821_v27 = vmul.f32 %v2181_v2, %v1809_v20  ;;  %vm1827_vm7 = vweird.f32 %v2181_v2 }
0x165f   :  { %vm1828_vm9 = vmor %vm1826_vm8, %vm1827_vm7 }
0x1660   :  { %v1819_v32 = vsel %vm1818_vm6, %v2179_v9, %v1815_v23  ;;  %v1822_v10 = vmul.f32 %v2181_v2, %v1821_v27 }
0x1661   :  { %v1830_v25 = vmul.f32 %v1819_v32, %v3001_v39 }
0x1662   :  { %v1823_v58 = vmul.f32 0.5, %v1822_v10 }
0x1663   :  { %v1832_v14 = vmul.f32 %v1830_v25, %v2971_v21 }
0x1664   :  { %v1824_v43 = vsub.f32 1.5, %v1823_v58 }
0x1665   :  { %v1834_v62 = vadd.f32 %v1832_v14, %v2978_v53 }
0x1666   :  { %v1825_v54 = vmul.f32 %v2181_v2, %v1824_v43 }
0x1667   :  { %1836 = vst.msk [vmem:[%s3058_s14] sm:$0xff] %vm149_vm0, %v1834_v62 }
0x1668   :  { %v1829_v51 = vsel %vm1828_vm9, %v2181_v2, %v1825_v54 }
0x1669   :  { %v1831_v36 = vmul.f32 %v1829_v51, %v3008_v5 }
0x166b   :  { %v1833_v41 = vmul.f32 %v1831_v36, %v2971_v21 }
0x166d   :  { %v1835_v1 = vadd.f32 %v1833_v41, %v2978_v53 }
0x166f   :  { %1837 = vst.msk [vmem:[%s3058_s14 + $0x8] sm:$0xff] %vm149_vm0, %v1835_v1 }

</bundles_post_ra>
